<compile_context>
chip_gen: v7x
topology: tpu7x:2x2x1
jax: 0.10.0
libtpu: 0.0.40
codegen_flags: <defaults>
</compile_context>

<pallas_src>
import math
import functools

import jax
import jax.numpy as jnp
from jax.experimental import pallas as pl
from jax.experimental.pallas import tpu as pltpu


def kernel_size(in_channel):
    """Same rule as the PyTorch module (eca-net kernel size)."""
    k = int((math.log2(in_channel) + 1) // 2)
    return k + 1 if k % 2 == 0 else k


def _sigmoid(x):
    # sigmoid(d) == softmax([a, b])[0] with d = a - b; tanh rides the EUP.
    return 0.5 * (jnp.tanh(0.5 * x) + 1.0)


def _ceil_to(x, m):
    return -(-x // m) * m


# ----------------------------- Pallas kernel ------------------------------ #
def _fm_kernel(t1_ref, t2_ref, dcw_ref, dcb_ref, dsw_ref, dsb_ref,
               out_ref, cpad_ref, spad_ref, *, K, W, lpad):
    f32 = jnp.float32
    Bt, C, HW = t1_ref.shape
    pad = K // 2
    spad_w = spad_ref.shape[1]

    # Re-zero only the pad borders (cheap, a few KiB); interiors are fully
    # rewritten for every batch row below.  Done every grid step so it stays
    # correct when the "parallel" axis is sharded across TensorCores.
    if pad > 0:
        cpad_ref[0:pad, :] = jnp.zeros((pad, 4), f32)
        cpad_ref[pad + C:, :] = jnp.zeros((pad, 4), f32)
    spad_ref[:, 0:lpad] = jnp.zeros((4, lpad), f32)
    spad_ref[:, lpad + HW:] = jnp.zeros((4, spad_w - lpad - HW), f32)

    # Loop-invariant constants (hoisted out of the batch / tap loops).
    ones_hw = jnp.ones((HW, 1), f32)
    ones_c = jnp.ones((1, C), f32)
    inv_hw = 1.0 / HW
    inv_c = 1.0 / C
    col = jax.lax.broadcasted_iota(jnp.int32, (1, HW), 1) % W
    col_masks = [(col >= -dw) & (col <= (W - 1) - dw) for dw in range(-3, 4)]

    for b in range(Bt):
        t1 = t1_ref[b].astype(f32)                 # (C, HW), lane-dense
        t2 = t2_ref[b].astype(f32)

        # ----- channel pooling: avg on the MXU, max via lane reduction ---- #
        t1_avg = jnp.dot(t1, ones_hw, preferred_element_type=f32) * inv_hw
        t2_avg = jnp.dot(t2, ones_hw, preferred_element_type=f32) * inv_hw
        t1_max = jnp.max(t1, axis=1, keepdims=True)
        t2_max = jnp.max(t2, axis=1, keepdims=True)
        cp = jnp.concatenate([t1_avg, t1_max, t2_avg, t2_max], axis=1)   # (C,4)

        # channel conv (difference of the two Conv1d branches) as one small
        # MXU dot: concat the K shifted (C,4) views -> (C,4K) @ (4K,1).
        cpad_ref[pad:pad + C, :] = cp
        cat = jnp.concatenate([cpad_ref[j:j + C, :] for j in range(K)], axis=1)
        cacc = jnp.dot(cat, dcw_ref[...], preferred_element_type=f32)    # (C,1)
        ca1 = _sigmoid(cacc + dcb_ref[0])          # (C,1); ca2 = 1 - ca1

        # ----- spatial pooling: mean on the MXU, max via sublane reduce --- #
        s1a = jnp.dot(ones_c, t1, preferred_element_type=f32) * inv_c    # (1,HW)
        s2a = jnp.dot(ones_c, t2, preferred_element_type=f32) * inv_c
        s1m = jnp.max(t1, axis=0, keepdims=True)
        s2m = jnp.max(t2, axis=0, keepdims=True)
        sp4 = jnp.concatenate([s1a, s1m, s2a, s2m], axis=0)              # (4,HW)

        # 7x7 conv (difference of the two Conv2d branches) in flattened
        # space: 49 shared shifted (4,HW) slices, each reduced over the 4
        # pooled channels by a tiny (1,4)@(4,HW) MXU dot.  Row wrap handled
        # by 7 precomputed column masks; vertical borders by the zero pads.
        spad_ref[:, lpad:lpad + HW] = sp4
        sacc = jnp.zeros((1, HW), f32)
        for di, dw in enumerate(range(-3, 4)):
            part = jnp.zeros((1, HW), f32)
            for dh in range(-3, 4):
                start = lpad + dh * W + dw
                blk = spad_ref[:, start:start + HW]                      # (4,HW)
                tap = (dh + 3) * 7 + (dw + 3)
                part = part + jnp.dot(dsw_ref[tap:tap + 1, :], blk,
                                      preferred_element_type=f32)        # (1,HW)
            sacc = sacc + jnp.where(col_masks[di], part, 0.0)
        sa1 = _sigmoid(sacc + dsb_ref[0])          # (1,HW); sa2 = 1 - sa1

        # ----- fuse: att1 = ca1 + sa1 + 1, att2 = 4 - att1 ---------------- #
        att1 = ca1 + sa1 + 1.0                     # (C,HW) broadcast
        out_ref[b] = (4.0 * t2 + att1 * (t1 - t2)).astype(out_ref.dtype)


# ------------------------------- wrapper ----------------------------------- #
def _vmem_capacity_bytes():
    try:
        return int(pltpu.get_tpu_info().vmem_capacity_bytes)
    except Exception:
        return 64 * 1024 * 1024        # conservative (v7x-sized) fallback


def fm_forward(t1, t2, params, K):
    B, C, H, W = t1.shape
    HW = H * W
    cw1, cb1, cw2, cb2, sw1, sb1, sw2, sb2 = params

    io_dtype = t1.dtype
    t1f = t1.reshape(B, C, HW)
    t2f = t2.reshape(B, C, HW).astype(io_dtype)

    # Only the difference of the two conv branches is needed:
    # softmax([a1, a2])[0] = sigmoid(a1 - a2) and att2 = 4 - att1.
    dcw = (cw1 - cw2).astype(jnp.float32)
    dcb = (cb1 - cb2).astype(jnp.float32)
    dsw = (sw1 - sw2).astype(jnp.float32)
    dsb = (sb1 - sb2).astype(jnp.float32)

    # Reorder for the in-kernel MXU dots:
    #  * channel conv weights as a (4K,1) column in (tap j, pooled-chan ci)
    #    order, matching the (C,4K) concat of the K shifted (C,4) views,
    #  * spatial conv weights as a (49,4) table: row = tap, col = pooled chan.
    dcw_col = dcw.reshape(4, K).T.reshape(4 * K, 1)
    dsw_tbl = dsw.reshape(4, 49).T

    pad = K // 2
    lpad = _ceil_to(3 * W + 3, 128)                  # aligned left zero-pad
    spad_w = lpad + HW + 3 * W + 3

    itemsize = jnp.dtype(io_dtype).itemsize
    slab_bytes = lambda bt: bt * _ceil_to(C, 8) * _ceil_to(HW, 128) * itemsize
    spad_bytes = 8 * _ceil_to(spad_w, 128) * 4
    fixed_bytes = spad_bytes + (2 << 20)             # scratch + weights + slack

    # ---- pick the batch block Bt (largest divisor of B that fits VMEM) ---- #
    vmem_cap = _vmem_capacity_bytes()
    budget = int(0.75 * vmem_cap)      # ~48 MiB on v7x, ~96 MiB on v5e/v6e
    bt_cap = min(max(1, B // 2), 8)    # keep >=2 grid steps; bound the unroll
    bt = 1
    for cand in range(bt_cap, 0, -1):
        if B % cand == 0 and 8 * slab_bytes(cand) + fixed_bytes <= budget:
            bt = cand
            break
    grid = (B // bt,)

    vmem_need = 6 * slab_bytes(bt) + fixed_bytes
    vmem_limit = min(int(0.9 * vmem_cap), max(vmem_need, 32 * 1024 * 1024))
    # TODO(synk): if C*HW is so large that even Bt=1 overflows v7x's 64 MiB
    # VMEM, the final apply should additionally be tiled over HW (two-level
    # pipeline) instead of relying on the clamp above.

    slab_spec = pl.BlockSpec((bt, C, HW), lambda i: (i, 0, 0))
    smem_spec = pl.BlockSpec(memory_space=pltpu.MemorySpace.SMEM)

    out = pl.pallas_call(
        functools.partial(_fm_kernel, K=K, W=W, lpad=lpad),
        out_shape=jax.ShapeDtypeStruct((B, C, HW), io_dtype),
        grid=grid,
        in_specs=[
            slab_spec,                                       # t1 (lane-dense)
            slab_spec,                                       # t2 (lane-dense)
            pl.BlockSpec((4 * K, 1), lambda i: (0, 0)),      # channel conv diff w
            smem_spec,                                       # channel conv diff b
            pl.BlockSpec((49, 4), lambda i: (0, 0)),         # spatial conv diff w
            smem_spec,                                       # spatial conv diff b
        ],
        out_specs=slab_spec,
        scratch_shapes=[
            pltpu.VMEM((C + 2 * pad, 4), jnp.float32),   # padded channel pool
            pltpu.VMEM((4, spad_w), jnp.float32),        # padded flat spatial pool
        ],
        compiler_params=pltpu.CompilerParams(
            dimension_semantics=("parallel",),
            vmem_limit_bytes=int(vmem_limit),
        ),
    )(t1f, t2f, dcw_col, dcb, dsw_tbl, dsb)

    return out.reshape(B, C, H, W)


# --------------------------- pure-JAX reference ----------------------------- #
def fm_reference(t1, t2, params, K):
    cw1, cb1, cw2, cb2, sw1, sb1, sw2, sb2 = params
    B, C, H, W = t1.shape
    pad = K // 2

    t1_a = jnp.mean(t1, axis=(2, 3), keepdims=True)
    t1_m = jnp.max(t1, axis=(2, 3), keepdims=True)
    t2_a = jnp.mean(t2, axis=(2, 3), keepdims=True)
    t2_m = jnp.max(t2, axis=(2, 3), keepdims=True)
    channel_pool = jnp.concatenate([t1_a, t1_m, t2_a, t2_m], axis=2)   # (B,C,4,1)
    channel_pool = jnp.squeeze(channel_pool, -1).transpose(0, 2, 1)    # (B,4,C)

    def conv1d(x, w, b):
        y = jax.lax.conv_general_dilated(
            x, w.reshape(1, 4, K), window_strides=(1,), padding=[(pad, pad)],
            dimension_numbers=('NCH', 'OIH', 'NCH'))
        return y + b[0]

    ca = jax.nn.softmax(jnp.stack([conv1d(channel_pool, cw1, cb1),
                                   conv1d(channel_pool, cw2, cb2)], axis=0), axis=0)
    ca = jnp.swapaxes(ca, -1, -2)[..., None]                           # (2,B,C,1,1)

    sp = jnp.concatenate([jnp.mean(t1, axis=1, keepdims=True),
                          jnp.max(t1, axis=1, keepdims=True),
                          jnp.mean(t2, axis=1, keepdims=True),
                          jnp.max(t2, axis=1, keepdims=True)], axis=1)  # (B,4,H,W)

    def conv2d(x, w, b):
        y = jax.lax.conv_general_dilated(
            x, w.reshape(1, 4, 7, 7), window_strides=(1, 1),
            padding=[(3, 3), (3, 3)],
            dimension_numbers=('NCHW', 'OIHW', 'NCHW'))
        return y + b[0]

    sa = jax.nn.softmax(jnp.stack([conv2d(sp, sw1, sb1),
                                   conv2d(sp, sw2, sb2)], axis=0), axis=0)  # (2,B,1,H,W)

    att = ca + sa + 1.0                                                 # (2,B,C,H,W)
    return att[1] * t2 + att[0] * t1


# TODO(synk): log_feature_2 (cv2/PIL file logging) has no Pallas equivalent and
# is not part of the numeric forward pass; it is intentionally omitted.

if __name__ == "__main__":
    B, C, H, W = 4, 16, 16, 16
    K = kernel_size(C)                 # -> 3 for C=16

    key = jax.random.PRNGKey(0)
    ks = jax.random.split(key, 10)
    t1 = jax.random.normal(ks[0], (B, C, H, W), jnp.float32)
    t2 = jax.random.normal(ks[1], (B, C, H, W), jnp.float32)

    # Deterministic parameter init (uniform, torch-like fan-in scaling).
    s1 = 1.0 / math.sqrt(4 * K)
    s2 = 1.0 / math.sqrt(4 * 7 * 7)
    cw1 = jax.random.uniform(ks[2], (4 * K,), jnp.float32, -s1, s1)
    cb1 = jax.random.uniform(ks[3], (1,), jnp.float32, -s1, s1)
    cw2 = jax.random.uniform(ks[4], (4 * K,), jnp.float32, -s1, s1)
    cb2 = jax.random.uniform(ks[5], (1,), jnp.float32, -s1, s1)
    sw1 = jax.random.uniform(ks[6], (4 * 49,), jnp.float32, -s2, s2)
    sb1 = jax.random.uniform(ks[7], (1,), jnp.float32, -s2, s2)
    sw2 = jax.random.uniform(ks[8], (4 * 49,), jnp.float32, -s2, s2)
    sb2 = jax.random.uniform(ks[9], (1,), jnp.float32, -s2, s2)
    params = (cw1, cb1, cw2, cb2, sw1, sb1, sw2, sb2)

    out = jax.block_until_ready(fm_forward(t1, t2, params, K))

    ref = fm_reference(t1, t2, params, K)
    err = float(jnp.max(jnp.abs(out - ref)))
    assert out.shape == (B, C, H, W)
    assert jnp.allclose(out, ref, atol=1e-4, rtol=1e-4), f"max abs err = {err}"
    print("KERNEL_OK")
</pallas_src>

<mosaic_0001>
module attributes {stable_mosaic.version = 11 : i64} {
  func.func @_fm_kernel(%arg0: i32, %arg1: memref<2x16x256xf32, #tpu.memory_space<vmem>>, %arg2: memref<2x16x256xf32, #tpu.memory_space<vmem>>, %arg3: memref<12x1xf32, #tpu.memory_space<vmem>>, %arg4: memref<1xf32, #tpu.memory_space<smem>>, %arg5: memref<49x4xf32, #tpu.memory_space<vmem>>, %arg6: memref<1xf32, #tpu.memory_space<smem>>, %arg7: memref<2x16x256xf32, #tpu.memory_space<vmem>>, %arg8: memref<18x4xf32, #tpu.memory_space<vmem>>, %arg9: memref<4x435xf32, #tpu.memory_space<vmem>>) attributes {dimension_semantics = [#tpu.dimension_semantics<parallel>], iteration_bounds = array<i64: 2>, scalar_prefetch = 0 : i64, scratch_operands = 2 : i64, tpu.core_type = #tpu.core_type<tc>, window_params = [{transform_indices = @transform_0, window_bounds = array<i64: 2, 16, 256>}, {transform_indices = @transform_1, window_bounds = array<i64: 2, 16, 256>}, {pipeline_mode = #tpu.pipeline_mode<synchronous>, transform_indices = @transform_2, window_bounds = array<i64: 12, 1>}, {transform_indices = @transform_3, window_bounds = array<i64: 1>}, {pipeline_mode = #tpu.pipeline_mode<synchronous>, transform_indices = @transform_4, window_bounds = array<i64: 49, 4>}, {transform_indices = @transform_5, window_bounds = array<i64: 1>}, {transform_indices = @transform_6, window_bounds = array<i64: 2, 16, 256>}]} {
    %cst = arith.constant 0.000000e+00 : f32
    %0 = vector.broadcast %cst : f32 to vector<1x4xf32>
    %c0 = arith.constant 0 : index
    %c0_0 = arith.constant 0 : index
    %1 = vector.load %arg8[%c0, %c0_0] : memref<18x4xf32, #tpu.memory_space<vmem>>, vector<1x4xf32>
    tpu.vector_store %arg8[%c0, %c0_0], %0 {strides = array<i32>} : memref<18x4xf32, #tpu.memory_space<vmem>>, vector<1x4xf32>,
    %cst_1 = arith.constant 0.000000e+00 : f32
    %2 = vector.broadcast %cst_1 : f32 to vector<1x4xf32>
    %c17 = arith.constant 17 : index
    %c0_2 = arith.constant 0 : index
    %3 = vector.load %arg8[%c17, %c0_2] : memref<18x4xf32, #tpu.memory_space<vmem>>, vector<1x4xf32>
    tpu.vector_store %arg8[%c17, %c0_2], %2 {strides = array<i32>} : memref<18x4xf32, #tpu.memory_space<vmem>>, vector<1x4xf32>,
    %cst_3 = arith.constant 0.000000e+00 : f32
    %4 = vector.broadcast %cst_3 : f32 to vector<4x128xf32>
    %c0_4 = arith.constant 0 : index
    %c0_5 = arith.constant 0 : index
    %5 = vector.load %arg9[%c0_4, %c0_5] : memref<4x435xf32, #tpu.memory_space<vmem>>, vector<4x128xf32>
    tpu.vector_store %arg9[%c0_4, %c0_5], %4 {strides = array<i32>} : memref<4x435xf32, #tpu.memory_space<vmem>>, vector<4x128xf32>,
    %cst_6 = arith.constant 0.000000e+00 : f32
    %6 = vector.broadcast %cst_6 : f32 to vector<4x51xf32>
    %c0_7 = arith.constant 0 : index
    %c384 = arith.constant 384 : index
    %7 = vector.load %arg9[%c0_7, %c384] : memref<4x435xf32, #tpu.memory_space<vmem>>, vector<4x51xf32>
    tpu.vector_store %arg9[%c0_7, %c384], %6 {strides = array<i32>} : memref<4x435xf32, #tpu.memory_space<vmem>>, vector<4x51xf32>,
    %cst_8 = arith.constant 1.000000e+00 : f32
    %8 = vector.broadcast %cst_8 : f32 to vector<256x1xf32>
    %cst_9 = arith.constant 1.000000e+00 : f32
    %9 = vector.broadcast %cst_9 : f32 to vector<1x16xf32>
    %10 = tpu.iota {dimensions = array<i32: 1>} : vector<1x256xi32>
    %c16_i32 = arith.constant 16 : i32
    %c0_i32 = arith.constant 0 : i32
    %11 = arith.cmpi eq, %c16_i32, %c0_i32 : i32
    %c1_i32 = arith.constant 1 : i32
    %12 = arith.select %11, %c1_i32, %c16_i32 : i32
    %13 = vector.broadcast %12 : i32 to vector<1x256xi32>
    %14 = arith.remsi %10, %13 : vector<1x256xi32>
    %c0_i32_10 = arith.constant 0 : i32
    %15 = vector.broadcast %c0_i32_10 : i32 to vector<1x256xi32>
    %16 = arith.cmpi ne, %14, %15 : vector<1x256xi32>
    %c0_i32_11 = arith.constant 0 : i32
    %17 = vector.broadcast %c0_i32_11 : i32 to vector<1x256xi32>
    %18 = arith.cmpi slt, %14, %17 : vector<1x256xi32>
    %c0_i32_12 = arith.constant 0 : i32
    %19 = arith.cmpi slt, %12, %c0_i32_12 : i32
    %20 = vector.broadcast %19 : i1 to vector<1x256xi1>
    %21 = vector.broadcast %20 : vector<1x256xi1> to vector<1x256xi1>
    %22 = arith.xori %18, %21 : vector<1x256xi1>
    %23 = arith.andi %22, %16 : vector<1x256xi1>
    %24 = vector.broadcast %12 : i32 to vector<1x256xi32>
    %25 = arith.addi %14, %24 : vector<1x256xi32>
    %26 = arith.select %23, %25, %14 : vector<1x256xi1>, vector<1x256xi32>
    %c3_i32 = arith.constant 3 : i32
    %27 = vector.broadcast %c3_i32 : i32 to vector<1x256xi32>
    %28 = arith.cmpi sge, %26, %27 : vector<1x256xi32>
    %c18_i32 = arith.constant 18 : i32
    %29 = vector.broadcast %c18_i32 : i32 to vector<1x256xi32>
    %30 = arith.cmpi sle, %26, %29 : vector<1x256xi32>
    %31 = arith.andi %28, %30 : vector<1x256xi1>
    %c2_i32 = arith.constant 2 : i32
    %32 = vector.broadcast %c2_i32 : i32 to vector<1x256xi32>
    %33 = arith.cmpi sge, %26, %32 : vector<1x256xi32>
    %c17_i32 = arith.constant 17 : i32
    %34 = vector.broadcast %c17_i32 : i32 to vector<1x256xi32>
    %35 = arith.cmpi sle, %26, %34 : vector<1x256xi32>
    %36 = arith.andi %33, %35 : vector<1x256xi1>
    %c1_i32_13 = arith.constant 1 : i32
    %37 = vector.broadcast %c1_i32_13 : i32 to vector<1x256xi32>
    %38 = arith.cmpi sge, %26, %37 : vector<1x256xi32>
    %c16_i32_14 = arith.constant 16 : i32
    %39 = vector.broadcast %c16_i32_14 : i32 to vector<1x256xi32>
    %40 = arith.cmpi sle, %26, %39 : vector<1x256xi32>
    %41 = arith.andi %38, %40 : vector<1x256xi1>
    %c0_i32_15 = arith.constant 0 : i32
    %42 = vector.broadcast %c0_i32_15 : i32 to vector<1x256xi32>
    %43 = arith.cmpi sge, %26, %42 : vector<1x256xi32>
    %c15_i32 = arith.constant 15 : i32
    %44 = vector.broadcast %c15_i32 : i32 to vector<1x256xi32>
    %45 = arith.cmpi sle, %26, %44 : vector<1x256xi32>
    %46 = arith.andi %43, %45 : vector<1x256xi1>
    %c-1_i32 = arith.constant -1 : i32
    %47 = vector.broadcast %c-1_i32 : i32 to vector<1x256xi32>
    %48 = arith.cmpi sge, %26, %47 : vector<1x256xi32>
    %c14_i32 = arith.constant 14 : i32
    %49 = vector.broadcast %c14_i32 : i32 to vector<1x256xi32>
    %50 = arith.cmpi sle, %26, %49 : vector<1x256xi32>
    %51 = arith.andi %48, %50 : vector<1x256xi1>
    %c-2_i32 = arith.constant -2 : i32
    %52 = vector.broadcast %c-2_i32 : i32 to vector<1x256xi32>
    %53 = arith.cmpi sge, %26, %52 : vector<1x256xi32>
    %c13_i32 = arith.constant 13 : i32
    %54 = vector.broadcast %c13_i32 : i32 to vector<1x256xi32>
    %55 = arith.cmpi sle, %26, %54 : vector<1x256xi32>
    %56 = arith.andi %53, %55 : vector<1x256xi1>
    %c-3_i32 = arith.constant -3 : i32
    %57 = vector.broadcast %c-3_i32 : i32 to vector<1x256xi32>
    %58 = arith.cmpi sge, %26, %57 : vector<1x256xi32>
    %c12_i32 = arith.constant 12 : i32
    %59 = vector.broadcast %c12_i32 : i32 to vector<1x256xi32>
    %60 = arith.cmpi sle, %26, %59 : vector<1x256xi32>
    %61 = arith.andi %58, %60 : vector<1x256xi1>
    %c0_16 = arith.constant 0 : index
    %c0_17 = arith.constant 0 : index
    %c0_18 = arith.constant 0 : index
    %62 = vector.load %arg1[%c0_16, %c0_17, %c0_18] : memref<2x16x256xf32, #tpu.memory_space<vmem>>, vector<1x16x256xf32>
    %63 = vector.shape_cast %62 : vector<1x16x256xf32> to vector<16x256xf32>
    %c0_19 = arith.constant 0 : index
    %c0_20 = arith.constant 0 : index
    %c0_21 = arith.constant 0 : index
    %64 = vector.load %arg2[%c0_19, %c0_20, %c0_21] : memref<2x16x256xf32, #tpu.memory_space<vmem>>, vector<1x16x256xf32>
    %65 = vector.shape_cast %64 : vector<1x16x256xf32> to vector<16x256xf32>
    %cst_22 = arith.constant dense<0.000000e+00> : vector<16x1xf32>
    %66 = tpu.matmul %63, %8, %cst_22 {dimension_numbers = #tpu.dot_dimension_numbers<[1], [0], [0], [1], [0, 0, 1, 1], [], []>} : vector<16x256xf32>, vector<256x1xf32>, vector<16x1xf32> -> vector<16x1xf32>
    %cst_23 = arith.constant 3.906250e-03 : f32
    %67 = vector.broadcast %cst_23 : f32 to vector<16x1xf32>
    %68 = arith.mulf %66, %67 : vector<16x1xf32>
    %cst_24 = arith.constant dense<0.000000e+00> : vector<16x1xf32>
    %69 = tpu.matmul %65, %8, %cst_24 {dimension_numbers = #tpu.dot_dimension_numbers<[1], [0], [0], [1], [0, 0, 1, 1], [], []>} : vector<16x256xf32>, vector<256x1xf32>, vector<16x1xf32> -> vector<16x1xf32>
    %cst_25 = arith.constant 3.906250e-03 : f32
    %70 = vector.broadcast %cst_25 : f32 to vector<16x1xf32>
    %71 = arith.mulf %69, %70 : vector<16x1xf32>
    %cst_26 = arith.constant dense<0xFF800000> : vector<16xf32>
    %72 = vector.multi_reduction <maximumf>, %63, %cst_26 [1] : vector<16x256xf32> to vector<16xf32>
    %73 = vector.shape_cast %72 : vector<16xf32> to vector<16x1xf32>
    %cst_27 = arith.constant dense<0xFF800000> : vector<16xf32>
    %74 = vector.multi_reduction <maximumf>, %65, %cst_27 [1] : vector<16x256xf32> to vector<16xf32>
    %75 = vector.shape_cast %74 : vector<16xf32> to vector<16x1xf32>
    %76 = tpu.concatenate %68, %73, %71, %75 in 1 : vector<16x1xf32>, vector<16x1xf32>, vector<16x1xf32>, vector<16x1xf32> -> vector<16x4xf32>
    %c1 = arith.constant 1 : index
    %c0_28 = arith.constant 0 : index
    %77 = vector.load %arg8[%c1, %c0_28] : memref<18x4xf32, #tpu.memory_space<vmem>>, vector<16x4xf32>
    tpu.vector_store %arg8[%c1, %c0_28], %76 {strides = array<i32>} : memref<18x4xf32, #tpu.memory_space<vmem>>, vector<16x4xf32>,
    %c0_29 = arith.constant 0 : index
    %c0_30 = arith.constant 0 : index
    %78 = vector.load %arg8[%c0_29, %c0_30] : memref<18x4xf32, #tpu.memory_space<vmem>>, vector<16x4xf32>
    %c1_31 = arith.constant 1 : index
    %c0_32 = arith.constant 0 : index
    %79 = vector.load %arg8[%c1_31, %c0_32] : memref<18x4xf32, #tpu.memory_space<vmem>>, vector<16x4xf32>
    %c2 = arith.constant 2 : index
    %c0_33 = arith.constant 0 : index
    %80 = vector.load %arg8[%c2, %c0_33] : memref<18x4xf32, #tpu.memory_space<vmem>>, vector<16x4xf32>
    %81 = tpu.concatenate %78, %79, %80 in 1 : vector<16x4xf32>, vector<16x4xf32>, vector<16x4xf32> -> vector<16x12xf32>
    %c0_34 = arith.constant 0 : index
    %c0_35 = arith.constant 0 : index
    %82 = vector.load %arg3[%c0_34, %c0_35] : memref<12x1xf32, #tpu.memory_space<vmem>>, vector<12x1xf32>
    %cst_36 = arith.constant dense<0.000000e+00> : vector<16x1xf32>
    %83 = tpu.matmul %81, %82, %cst_36 {dimension_numbers = #tpu.dot_dimension_numbers<[1], [0], [0], [1], [0, 0, 1, 1], [], []>} : vector<16x12xf32>, vector<12x1xf32>, vector<16x1xf32> -> vector<16x1xf32>
    %c0_37 = arith.constant 0 : index
    %84 = memref.load %arg4[%c0_37] : memref<1xf32, #tpu.memory_space<smem>>
    %85 = vector.broadcast %84 : f32 to vector<16x1xf32>
    %86 = arith.addf %83, %85 : vector<16x1xf32>
    %cst_38 = arith.constant 5.000000e-01 : f32
    %87 = vector.broadcast %cst_38 : f32 to vector<16x1xf32>
    %88 = arith.mulf %87, %86 : vector<16x1xf32>
    %89 = math.tanh %88 : vector<16x1xf32>
    %cst_39 = arith.constant 1.000000e+00 : f32
    %90 = vector.broadcast %cst_39 : f32 to vector<16x1xf32>
    %91 = arith.addf %89, %90 : vector<16x1xf32>
    %cst_40 = arith.constant 5.000000e-01 : f32
    %92 = vector.broadcast %cst_40 : f32 to vector<16x1xf32>
    %93 = arith.mulf %92, %91 : vector<16x1xf32>
    %cst_41 = arith.constant dense<0.000000e+00> : vector<1x256xf32>
    %94 = tpu.matmul %9, %63, %cst_41 {dimension_numbers = #tpu.dot_dimension_numbers<[1], [0], [0], [1], [0, 0, 1, 1], [], []>} : vector<1x16xf32>, vector<16x256xf32>, vector<1x256xf32> -> vector<1x256xf32>
    %cst_42 = arith.constant 6.250000e-02 : f32
    %95 = vector.broadcast %cst_42 : f32 to vector<1x256xf32>
    %96 = arith.mulf %94, %95 : vector<1x256xf32>
    %cst_43 = arith.constant dense<0.000000e+00> : vector<1x256xf32>
    %97 = tpu.matmul %9, %65, %cst_43 {dimension_numbers = #tpu.dot_dimension_numbers<[1], [0], [0], [1], [0, 0, 1, 1], [], []>} : vector<1x16xf32>, vector<16x256xf32>, vector<1x256xf32> -> vector<1x256xf32>
    %cst_44 = arith.constant 6.250000e-02 : f32
    %98 = vector.broadcast %cst_44 : f32 to vector<1x256xf32>
    %99 = arith.mulf %97, %98 : vector<1x256xf32>
    %cst_45 = arith.constant dense<0xFF800000> : vector<256xf32>
    %100 = vector.multi_reduction <maximumf>, %63, %cst_45 [0] : vector<16x256xf32> to vector<256xf32>
    %101 = vector.shape_cast %100 : vector<256xf32> to vector<1x256xf32>
    %cst_46 = arith.constant dense<0xFF800000> : vector<256xf32>
    %102 = vector.multi_reduction <maximumf>, %65, %cst_46 [0] : vector<16x256xf32> to vector<256xf32>
    %103 = vector.shape_cast %102 : vector<256xf32> to vector<1x256xf32>
    %104 = tpu.concatenate %96, %101, %99, %103 in 0 : vector<1x256xf32>, vector<1x256xf32>, vector<1x256xf32>, vector<1x256xf32> -> vector<4x256xf32>
    %c0_47 = arith.constant 0 : index
    %c128 = arith.constant 128 : index
    %105 = vector.load %arg9[%c0_47, %c128] : memref<4x435xf32, #tpu.memory_space<vmem>>, vector<4x256xf32>
    tpu.vector_store %arg9[%c0_47, %c128], %104 {strides = array<i32>} : memref<4x435xf32, #tpu.memory_space<vmem>>, vector<4x256xf32>,
    %cst_48 = arith.constant 0.000000e+00 : f32
    %106 = vector.broadcast %cst_48 : f32 to vector<1x256xf32>
    %cst_49 = arith.constant 0.000000e+00 : f32
    %107 = vector.broadcast %cst_49 : f32 to vector<1x256xf32>
    %c0_50 = arith.constant 0 : index
    %c77 = arith.constant 77 : index
    %108 = vector.load %arg9[%c0_50, %c77] : memref<4x435xf32, #tpu.memory_space<vmem>>, vector<4x256xf32>
    %c0_51 = arith.constant 0 : index
    %c0_52 = arith.constant 0 : index
    %109 = vector.load %arg5[%c0_51, %c0_52] : memref<49x4xf32, #tpu.memory_space<vmem>>, vector<1x4xf32>
    %cst_53 = arith.constant dense<0.000000e+00> : vector<1x256xf32>
    %110 = tpu.matmul %109, %108, %cst_53 {dimension_numbers = #tpu.dot_dimension_numbers<[1], [0], [0], [1], [0, 0, 1, 1], [], []>} : vector<1x4xf32>, vector<4x256xf32>, vector<1x256xf32> -> vector<1x256xf32>
    %111 = arith.addf %107, %110 : vector<1x256xf32>
    %c0_54 = arith.constant 0 : index
    %c93 = arith.constant 93 : index
    %112 = vector.load %arg9[%c0_54, %c93] : memref<4x435xf32, #tpu.memory_space<vmem>>, vector<4x256xf32>
    %c7 = arith.constant 7 : index
    %c0_55 = arith.constant 0 : index
    %113 = vector.load %arg5[%c7, %c0_55] : memref<49x4xf32, #tpu.memory_space<vmem>>, vector<1x4xf32>
    %cst_56 = arith.constant dense<0.000000e+00> : vector<1x256xf32>
    %114 = tpu.matmul %113, %112, %cst_56 {dimension_numbers = #tpu.dot_dimension_numbers<[1], [0], [0], [1], [0, 0, 1, 1], [], []>} : vector<1x4xf32>, vector<4x256xf32>, vector<1x256xf32> -> vector<1x256xf32>
    %115 = arith.addf %111, %114 : vector<1x256xf32>
    %c0_57 = arith.constant 0 : index
    %c109 = arith.constant 109 : index
    %116 = vector.load %arg9[%c0_57, %c109] : memref<4x435xf32, #tpu.memory_space<vmem>>, vector<4x256xf32>
    %c14 = arith.constant 14 : index
    %c0_58 = arith.constant 0 : index
    %117 = vector.load %arg5[%c14, %c0_58] : memref<49x4xf32, #tpu.memory_space<vmem>>, vector<1x4xf32>
    %cst_59 = arith.constant dense<0.000000e+00> : vector<1x256xf32>
    %118 = tpu.matmul %117, %116, %cst_59 {dimension_numbers = #tpu.dot_dimension_numbers<[1], [0], [0], [1], [0, 0, 1, 1], [], []>} : vector<1x4xf32>, vector<4x256xf32>, vector<1x256xf32> -> vector<1x256xf32>
    %119 = arith.addf %115, %118 : vector<1x256xf32>
    %c0_60 = arith.constant 0 : index
    %c125 = arith.constant 125 : index
    %120 = vector.load %arg9[%c0_60, %c125] : memref<4x435xf32, #tpu.memory_space<vmem>>, vector<4x256xf32>
    %c21 = arith.constant 21 : index
    %c0_61 = arith.constant 0 : index
    %121 = vector.load %arg5[%c21, %c0_61] : memref<49x4xf32, #tpu.memory_space<vmem>>, vector<1x4xf32>
    %cst_62 = arith.constant dense<0.000000e+00> : vector<1x256xf32>
    %122 = tpu.matmul %121, %120, %cst_62 {dimension_numbers = #tpu.dot_dimension_numbers<[1], [0], [0], [1], [0, 0, 1, 1], [], []>} : vector<1x4xf32>, vector<4x256xf32>, vector<1x256xf32> -> vector<1x256xf32>
    %123 = arith.addf %119, %122 : vector<1x256xf32>
    %c0_63 = arith.constant 0 : index
    %c141 = arith.constant 141 : index
    %124 = vector.load %arg9[%c0_63, %c141] : memref<4x435xf32, #tpu.memory_space<vmem>>, vector<4x256xf32>
    %c28 = arith.constant 28 : index
    %c0_64 = arith.constant 0 : index
    %125 = vector.load %arg5[%c28, %c0_64] : memref<49x4xf32, #tpu.memory_space<vmem>>, vector<1x4xf32>
    %cst_65 = arith.constant dense<0.000000e+00> : vector<1x256xf32>
    %126 = tpu.matmul %125, %124, %cst_65 {dimension_numbers = #tpu.dot_dimension_numbers<[1], [0], [0], [1], [0, 0, 1, 1], [], []>} : vector<1x4xf32>, vector<4x256xf32>, vector<1x256xf32> -> vector<1x256xf32>
    %127 = arith.addf %123, %126 : vector<1x256xf32>
    %c0_66 = arith.constant 0 : index
    %c157 = arith.constant 157 : index
    %128 = vector.load %arg9[%c0_66, %c157] : memref<4x435xf32, #tpu.memory_space<vmem>>, vector<4x256xf32>
    %c35 = arith.constant 35 : index
    %c0_67 = arith.constant 0 : index
    %129 = vector.load %arg5[%c35, %c0_67] : memref<49x4xf32, #tpu.memory_space<vmem>>, vector<1x4xf32>
    %cst_68 = arith.constant dense<0.000000e+00> : vector<1x256xf32>
    %130 = tpu.matmul %129, %128, %cst_68 {dimension_numbers = #tpu.dot_dimension_numbers<[1], [0], [0], [1], [0, 0, 1, 1], [], []>} : vector<1x4xf32>, vector<4x256xf32>, vector<1x256xf32> -> vector<1x256xf32>
    %131 = arith.addf %127, %130 : vector<1x256xf32>
    %c0_69 = arith.constant 0 : index
    %c173 = arith.constant 173 : index
    %132 = vector.load %arg9[%c0_69, %c173] : memref<4x435xf32, #tpu.memory_space<vmem>>, vector<4x256xf32>
    %c42 = arith.constant 42 : index
    %c0_70 = arith.constant 0 : index
    %133 = vector.load %arg5[%c42, %c0_70] : memref<49x4xf32, #tpu.memory_space<vmem>>, vector<1x4xf32>
    %cst_71 = arith.constant dense<0.000000e+00> : vector<1x256xf32>
    %134 = tpu.matmul %133, %132, %cst_71 {dimension_numbers = #tpu.dot_dimension_numbers<[1], [0], [0], [1], [0, 0, 1, 1], [], []>} : vector<1x4xf32>, vector<4x256xf32>, vector<1x256xf32> -> vector<1x256xf32>
    %135 = arith.addf %131, %134 : vector<1x256xf32>
    %cst_72 = arith.constant 0.000000e+00 : f32
    %136 = vector.broadcast %cst_72 : f32 to vector<1x256xf32>
    %137 = arith.select %31, %135, %136 : vector<1x256xi1>, vector<1x256xf32>
    %138 = arith.addf %106, %137 : vector<1x256xf32>
    %cst_73 = arith.constant 0.000000e+00 : f32
    %139 = vector.broadcast %cst_73 : f32 to vector<1x256xf32>
    %c0_74 = arith.constant 0 : index
    %c78 = arith.constant 78 : index
    %140 = vector.load %arg9[%c0_74, %c78] : memref<4x435xf32, #tpu.memory_space<vmem>>, vector<4x256xf32>
    %c1_75 = arith.constant 1 : index
    %c0_76 = arith.constant 0 : index
    %141 = vector.load %arg5[%c1_75, %c0_76] : memref<49x4xf32, #tpu.memory_space<vmem>>, vector<1x4xf32>
    %cst_77 = arith.constant dense<0.000000e+00> : vector<1x256xf32>
    %142 = tpu.matmul %141, %140, %cst_77 {dimension_numbers = #tpu.dot_dimension_numbers<[1], [0], [0], [1], [0, 0, 1, 1], [], []>} : vector<1x4xf32>, vector<4x256xf32>, vector<1x256xf32> -> vector<1x256xf32>
    %143 = arith.addf %139, %142 : vector<1x256xf32>
    %c0_78 = arith.constant 0 : index
    %c94 = arith.constant 94 : index
    %144 = vector.load %arg9[%c0_78, %c94] : memref<4x435xf32, #tpu.memory_space<vmem>>, vector<4x256xf32>
    %c8 = arith.constant 8 : index
    %c0_79 = arith.constant 0 : index
    %145 = vector.load %arg5[%c8, %c0_79] : memref<49x4xf32, #tpu.memory_space<vmem>>, vector<1x4xf32>
    %cst_80 = arith.constant dense<0.000000e+00> : vector<1x256xf32>
    %146 = tpu.matmul %145, %144, %cst_80 {dimension_numbers = #tpu.dot_dimension_numbers<[1], [0], [0], [1], [0, 0, 1, 1], [], []>} : vector<1x4xf32>, vector<4x256xf32>, vector<1x256xf32> -> vector<1x256xf32>
    %147 = arith.addf %143, %146 : vector<1x256xf32>
    %c0_81 = arith.constant 0 : index
    %c110 = arith.constant 110 : index
    %148 = vector.load %arg9[%c0_81, %c110] : memref<4x435xf32, #tpu.memory_space<vmem>>, vector<4x256xf32>
    %c15 = arith.constant 15 : index
    %c0_82 = arith.constant 0 : index
    %149 = vector.load %arg5[%c15, %c0_82] : memref<49x4xf32, #tpu.memory_space<vmem>>, vector<1x4xf32>
    %cst_83 = arith.constant dense<0.000000e+00> : vector<1x256xf32>
    %150 = tpu.matmul %149, %148, %cst_83 {dimension_numbers = #tpu.dot_dimension_numbers<[1], [0], [0], [1], [0, 0, 1, 1], [], []>} : vector<1x4xf32>, vector<4x256xf32>, vector<1x256xf32> -> vector<1x256xf32>
    %151 = arith.addf %147, %150 : vector<1x256xf32>
    %c0_84 = arith.constant 0 : index
    %c126 = arith.constant 126 : index
    %152 = vector.load %arg9[%c0_84, %c126] : memref<4x435xf32, #tpu.memory_space<vmem>>, vector<4x256xf32>
    %c22 = arith.constant 22 : index
    %c0_85 = arith.constant 0 : index
    %153 = vector.load %arg5[%c22, %c0_85] : memref<49x4xf32, #tpu.memory_space<vmem>>, vector<1x4xf32>
    %cst_86 = arith.constant dense<0.000000e+00> : vector<1x256xf32>
    %154 = tpu.matmul %153, %152, %cst_86 {dimension_numbers = #tpu.dot_dimension_numbers<[1], [0], [0], [1], [0, 0, 1, 1], [], []>} : vector<1x4xf32>, vector<4x256xf32>, vector<1x256xf32> -> vector<1x256xf32>
    %155 = arith.addf %151, %154 : vector<1x256xf32>
    %c0_87 = arith.constant 0 : index
    %c142 = arith.constant 142 : index
    %156 = vector.load %arg9[%c0_87, %c142] : memref<4x435xf32, #tpu.memory_space<vmem>>, vector<4x256xf32>
    %c29 = arith.constant 29 : index
    %c0_88 = arith.constant 0 : index
    %157 = vector.load %arg5[%c29, %c0_88] : memref<49x4xf32, #tpu.memory_space<vmem>>, vector<1x4xf32>
    %cst_89 = arith.constant dense<0.000000e+00> : vector<1x256xf32>
    %158 = tpu.matmul %157, %156, %cst_89 {dimension_numbers = #tpu.dot_dimension_numbers<[1], [0], [0], [1], [0, 0, 1, 1], [], []>} : vector<1x4xf32>, vector<4x256xf32>, vector<1x256xf32> -> vector<1x256xf32>
    %159 = arith.addf %155, %158 : vector<1x256xf32>
    %c0_90 = arith.constant 0 : index
    %c158 = arith.constant 158 : index
    %160 = vector.load %arg9[%c0_90, %c158] : memref<4x435xf32, #tpu.memory_space<vmem>>, vector<4x256xf32>
    %c36 = arith.constant 36 : index
    %c0_91 = arith.constant 0 : index
    %161 = vector.load %arg5[%c36, %c0_91] : memref<49x4xf32, #tpu.memory_space<vmem>>, vector<1x4xf32>
    %cst_92 = arith.constant dense<0.000000e+00> : vector<1x256xf32>
    %162 = tpu.matmul %161, %160, %cst_92 {dimension_numbers = #tpu.dot_dimension_numbers<[1], [0], [0], [1], [0, 0, 1, 1], [], []>} : vector<1x4xf32>, vector<4x256xf32>, vector<1x256xf32> -> vector<1x256xf32>
    %163 = arith.addf %159, %162 : vector<1x256xf32>
    %c0_93 = arith.constant 0 : index
    %c174 = arith.constant 174 : index
    %164 = vector.load %arg9[%c0_93, %c174] : memref<4x435xf32, #tpu.memory_space<vmem>>, vector<4x256xf32>
    %c43 = arith.constant 43 : index
    %c0_94 = arith.constant 0 : index
    %165 = vector.load %arg5[%c43, %c0_94] : memref<49x4xf32, #tpu.memory_space<vmem>>, vector<1x4xf32>
    %cst_95 = arith.constant dense<0.000000e+00> : vector<1x256xf32>
    %166 = tpu.matmul %165, %164, %cst_95 {dimension_numbers = #tpu.dot_dimension_numbers<[1], [0], [0], [1], [0, 0, 1, 1], [], []>} : vector<1x4xf32>, vector<4x256xf32>, vector<1x256xf32> -> vector<1x256xf32>
    %167 = arith.addf %163, %166 : vector<1x256xf32>
    %cst_96 = arith.constant 0.000000e+00 : f32
    %168 = vector.broadcast %cst_96 : f32 to vector<1x256xf32>
    %169 = arith.select %36, %167, %168 : vector<1x256xi1>, vector<1x256xf32>
    %170 = arith.addf %138, %169 : vector<1x256xf32>
    %cst_97 = arith.constant 0.000000e+00 : f32
    %171 = vector.broadcast %cst_97 : f32 to vector<1x256xf32>
    %c0_98 = arith.constant 0 : index
    %c79 = arith.constant 79 : index
    %172 = vector.load %arg9[%c0_98, %c79] : memref<4x435xf32, #tpu.memory_space<vmem>>, vector<4x256xf32>
    %c2_99 = arith.constant 2 : index
    %c0_100 = arith.constant 0 : index
    %173 = vector.load %arg5[%c2_99, %c0_100] : memref<49x4xf32, #tpu.memory_space<vmem>>, vector<1x4xf32>
    %cst_101 = arith.constant dense<0.000000e+00> : vector<1x256xf32>
    %174 = tpu.matmul %173, %172, %cst_101 {dimension_numbers = #tpu.dot_dimension_numbers<[1], [0], [0], [1], [0, 0, 1, 1], [], []>} : vector<1x4xf32>, vector<4x256xf32>, vector<1x256xf32> -> vector<1x256xf32>
    %175 = arith.addf %171, %174 : vector<1x256xf32>
    %c0_102 = arith.constant 0 : index
    %c95 = arith.constant 95 : index
    %176 = vector.load %arg9[%c0_102, %c95] : memref<4x435xf32, #tpu.memory_space<vmem>>, vector<4x256xf32>
    %c9 = arith.constant 9 : index
    %c0_103 = arith.constant 0 : index
    %177 = vector.load %arg5[%c9, %c0_103] : memref<49x4xf32, #tpu.memory_space<vmem>>, vector<1x4xf32>
    %cst_104 = arith.constant dense<0.000000e+00> : vector<1x256xf32>
    %178 = tpu.matmul %177, %176, %cst_104 {dimension_numbers = #tpu.dot_dimension_numbers<[1], [0], [0], [1], [0, 0, 1, 1], [], []>} : vector<1x4xf32>, vector<4x256xf32>, vector<1x256xf32> -> vector<1x256xf32>
    %179 = arith.addf %175, %178 : vector<1x256xf32>
    %c0_105 = arith.constant 0 : index
    %c111 = arith.constant 111 : index
    %180 = vector.load %arg9[%c0_105, %c111] : memref<4x435xf32, #tpu.memory_space<vmem>>, vector<4x256xf32>
    %c16 = arith.constant 16 : index
    %c0_106 = arith.constant 0 : index
    %181 = vector.load %arg5[%c16, %c0_106] : memref<49x4xf32, #tpu.memory_space<vmem>>, vector<1x4xf32>
    %cst_107 = arith.constant dense<0.000000e+00> : vector<1x256xf32>
    %182 = tpu.matmul %181, %180, %cst_107 {dimension_numbers = #tpu.dot_dimension_numbers<[1], [0], [0], [1], [0, 0, 1, 1], [], []>} : vector<1x4xf32>, vector<4x256xf32>, vector<1x256xf32> -> vector<1x256xf32>
    %183 = arith.addf %179, %182 : vector<1x256xf32>
    %c0_108 = arith.constant 0 : index
    %c127 = arith.constant 127 : index
    %184 = vector.load %arg9[%c0_108, %c127] : memref<4x435xf32, #tpu.memory_space<vmem>>, vector<4x256xf32>
    %c23 = arith.constant 23 : index
    %c0_109 = arith.constant 0 : index
    %185 = vector.load %arg5[%c23, %c0_109] : memref<49x4xf32, #tpu.memory_space<vmem>>, vector<1x4xf32>
    %cst_110 = arith.constant dense<0.000000e+00> : vector<1x256xf32>
    %186 = tpu.matmul %185, %184, %cst_110 {dimension_numbers = #tpu.dot_dimension_numbers<[1], [0], [0], [1], [0, 0, 1, 1], [], []>} : vector<1x4xf32>, vector<4x256xf32>, vector<1x256xf32> -> vector<1x256xf32>
    %187 = arith.addf %183, %186 : vector<1x256xf32>
    %c0_111 = arith.constant 0 : index
    %c143 = arith.constant 143 : index
    %188 = vector.load %arg9[%c0_111, %c143] : memref<4x435xf32, #tpu.memory_space<vmem>>, vector<4x256xf32>
    %c30 = arith.constant 30 : index
    %c0_112 = arith.constant 0 : index
    %189 = vector.load %arg5[%c30, %c0_112] : memref<49x4xf32, #tpu.memory_space<vmem>>, vector<1x4xf32>
    %cst_113 = arith.constant dense<0.000000e+00> : vector<1x256xf32>
    %190 = tpu.matmul %189, %188, %cst_113 {dimension_numbers = #tpu.dot_dimension_numbers<[1], [0], [0], [1], [0, 0, 1, 1], [], []>} : vector<1x4xf32>, vector<4x256xf32>, vector<1x256xf32> -> vector<1x256xf32>
    %191 = arith.addf %187, %190 : vector<1x256xf32>
    %c0_114 = arith.constant 0 : index
    %c159 = arith.constant 159 : index
    %192 = vector.load %arg9[%c0_114, %c159] : memref<4x435xf32, #tpu.memory_space<vmem>>, vector<4x256xf32>
    %c37 = arith.constant 37 : index
    %c0_115 = arith.constant 0 : index
    %193 = vector.load %arg5[%c37, %c0_115] : memref<49x4xf32, #tpu.memory_space<vmem>>, vector<1x4xf32>
    %cst_116 = arith.constant dense<0.000000e+00> : vector<1x256xf32>
    %194 = tpu.matmul %193, %192, %cst_116 {dimension_numbers = #tpu.dot_dimension_numbers<[1], [0], [0], [1], [0, 0, 1, 1], [], []>} : vector<1x4xf32>, vector<4x256xf32>, vector<1x256xf32> -> vector<1x256xf32>
    %195 = arith.addf %191, %194 : vector<1x256xf32>
    %c0_117 = arith.constant 0 : index
    %c175 = arith.constant 175 : index
    %196 = vector.load %arg9[%c0_117, %c175] : memref<4x435xf32, #tpu.memory_space<vmem>>, vector<4x256xf32>
    %c44 = arith.constant 44 : index
    %c0_118 = arith.constant 0 : index
    %197 = vector.load %arg5[%c44, %c0_118] : memref<49x4xf32, #tpu.memory_space<vmem>>, vector<1x4xf32>
    %cst_119 = arith.constant dense<0.000000e+00> : vector<1x256xf32>
    %198 = tpu.matmul %197, %196, %cst_119 {dimension_numbers = #tpu.dot_dimension_numbers<[1], [0], [0], [1], [0, 0, 1, 1], [], []>} : vector<1x4xf32>, vector<4x256xf32>, vector<1x256xf32> -> vector<1x256xf32>
    %199 = arith.addf %195, %198 : vector<1x256xf32>
    %cst_120 = arith.constant 0.000000e+00 : f32
    %200 = vector.broadcast %cst_120 : f32 to vector<1x256xf32>
    %201 = arith.select %41, %199, %200 : vector<1x256xi1>, vector<1x256xf32>
    %202 = arith.addf %170, %201 : vector<1x256xf32>
    %cst_121 = arith.constant 0.000000e+00 : f32
    %203 = vector.broadcast %cst_121 : f32 to vector<1x256xf32>
    %c0_122 = arith.constant 0 : index
    %c80 = arith.constant 80 : index
    %204 = vector.load %arg9[%c0_122, %c80] : memref<4x435xf32, #tpu.memory_space<vmem>>, vector<4x256xf32>
    %c3 = arith.constant 3 : index
    %c0_123 = arith.constant 0 : index
    %205 = vector.load %arg5[%c3, %c0_123] : memref<49x4xf32, #tpu.memory_space<vmem>>, vector<1x4xf32>
    %cst_124 = arith.constant dense<0.000000e+00> : vector<1x256xf32>
    %206 = tpu.matmul %205, %204, %cst_124 {dimension_numbers = #tpu.dot_dimension_numbers<[1], [0], [0], [1], [0, 0, 1, 1], [], []>} : vector<1x4xf32>, vector<4x256xf32>, vector<1x256xf32> -> vector<1x256xf32>
    %207 = arith.addf %203, %206 : vector<1x256xf32>
    %c0_125 = arith.constant 0 : index
    %c96 = arith.constant 96 : index
    %208 = vector.load %arg9[%c0_125, %c96] : memref<4x435xf32, #tpu.memory_space<vmem>>, vector<4x256xf32>
    %c10 = arith.constant 10 : index
    %c0_126 = arith.constant 0 : index
    %209 = vector.load %arg5[%c10, %c0_126] : memref<49x4xf32, #tpu.memory_space<vmem>>, vector<1x4xf32>
    %cst_127 = arith.constant dense<0.000000e+00> : vector<1x256xf32>
    %210 = tpu.matmul %209, %208, %cst_127 {dimension_numbers = #tpu.dot_dimension_numbers<[1], [0], [0], [1], [0, 0, 1, 1], [], []>} : vector<1x4xf32>, vector<4x256xf32>, vector<1x256xf32> -> vector<1x256xf32>
    %211 = arith.addf %207, %210 : vector<1x256xf32>
    %c0_128 = arith.constant 0 : index
    %c112 = arith.constant 112 : index
    %212 = vector.load %arg9[%c0_128, %c112] : memref<4x435xf32, #tpu.memory_space<vmem>>, vector<4x256xf32>
    %c17_129 = arith.constant 17 : index
    %c0_130 = arith.constant 0 : index
    %213 = vector.load %arg5[%c17_129, %c0_130] : memref<49x4xf32, #tpu.memory_space<vmem>>, vector<1x4xf32>
    %cst_131 = arith.constant dense<0.000000e+00> : vector<1x256xf32>
    %214 = tpu.matmul %213, %212, %cst_131 {dimension_numbers = #tpu.dot_dimension_numbers<[1], [0], [0], [1], [0, 0, 1, 1], [], []>} : vector<1x4xf32>, vector<4x256xf32>, vector<1x256xf32> -> vector<1x256xf32>
    %215 = arith.addf %211, %214 : vector<1x256xf32>
    %c0_132 = arith.constant 0 : index
    %c128_133 = arith.constant 128 : index
    %216 = vector.load %arg9[%c0_132, %c128_133] : memref<4x435xf32, #tpu.memory_space<vmem>>, vector<4x256xf32>
    %c24 = arith.constant 24 : index
    %c0_134 = arith.constant 0 : index
    %217 = vector.load %arg5[%c24, %c0_134] : memref<49x4xf32, #tpu.memory_space<vmem>>, vector<1x4xf32>
    %cst_135 = arith.constant dense<0.000000e+00> : vector<1x256xf32>
    %218 = tpu.matmul %217, %216, %cst_135 {dimension_numbers = #tpu.dot_dimension_numbers<[1], [0], [0], [1], [0, 0, 1, 1], [], []>} : vector<1x4xf32>, vector<4x256xf32>, vector<1x256xf32> -> vector<1x256xf32>
    %219 = arith.addf %215, %218 : vector<1x256xf32>
    %c0_136 = arith.constant 0 : index
    %c144 = arith.constant 144 : index
    %220 = vector.load %arg9[%c0_136, %c144] : memref<4x435xf32, #tpu.memory_space<vmem>>, vector<4x256xf32>
    %c31 = arith.constant 31 : index
    %c0_137 = arith.constant 0 : index
    %221 = vector.load %arg5[%c31, %c0_137] : memref<49x4xf32, #tpu.memory_space<vmem>>, vector<1x4xf32>
    %cst_138 = arith.constant dense<0.000000e+00> : vector<1x256xf32>
    %222 = tpu.matmul %221, %220, %cst_138 {dimension_numbers = #tpu.dot_dimension_numbers<[1], [0], [0], [1], [0, 0, 1, 1], [], []>} : vector<1x4xf32>, vector<4x256xf32>, vector<1x256xf32> -> vector<1x256xf32>
    %223 = arith.addf %219, %222 : vector<1x256xf32>
    %c0_139 = arith.constant 0 : index
    %c160 = arith.constant 160 : index
    %224 = vector.load %arg9[%c0_139, %c160] : memref<4x435xf32, #tpu.memory_space<vmem>>, vector<4x256xf32>
    %c38 = arith.constant 38 : index
    %c0_140 = arith.constant 0 : index
    %225 = vector.load %arg5[%c38, %c0_140] : memref<49x4xf32, #tpu.memory_space<vmem>>, vector<1x4xf32>
    %cst_141 = arith.constant dense<0.000000e+00> : vector<1x256xf32>
    %226 = tpu.matmul %225, %224, %cst_141 {dimension_numbers = #tpu.dot_dimension_numbers<[1], [0], [0], [1], [0, 0, 1, 1], [], []>} : vector<1x4xf32>, vector<4x256xf32>, vector<1x256xf32> -> vector<1x256xf32>
    %227 = arith.addf %223, %226 : vector<1x256xf32>
    %c0_142 = arith.constant 0 : index
    %c176 = arith.constant 176 : index
    %228 = vector.load %arg9[%c0_142, %c176] : memref<4x435xf32, #tpu.memory_space<vmem>>, vector<4x256xf32>
    %c45 = arith.constant 45 : index
    %c0_143 = arith.constant 0 : index
    %229 = vector.load %arg5[%c45, %c0_143] : memref<49x4xf32, #tpu.memory_space<vmem>>, vector<1x4xf32>
    %cst_144 = arith.constant dense<0.000000e+00> : vector<1x256xf32>
    %230 = tpu.matmul %229, %228, %cst_144 {dimension_numbers = #tpu.dot_dimension_numbers<[1], [0], [0], [1], [0, 0, 1, 1], [], []>} : vector<1x4xf32>, vector<4x256xf32>, vector<1x256xf32> -> vector<1x256xf32>
    %231 = arith.addf %227, %230 : vector<1x256xf32>
    %cst_145 = arith.constant 0.000000e+00 : f32
    %232 = vector.broadcast %cst_145 : f32 to vector<1x256xf32>
    %233 = arith.select %46, %231, %232 : vector<1x256xi1>, vector<1x256xf32>
    %234 = arith.addf %202, %233 : vector<1x256xf32>
    %cst_146 = arith.constant 0.000000e+00 : f32
    %235 = vector.broadcast %cst_146 : f32 to vector<1x256xf32>
    %c0_147 = arith.constant 0 : index
    %c81 = arith.constant 81 : index
    %236 = vector.load %arg9[%c0_147, %c81] : memref<4x435xf32, #tpu.memory_space<vmem>>, vector<4x256xf32>
    %c4 = arith.constant 4 : index
    %c0_148 = arith.constant 0 : index
    %237 = vector.load %arg5[%c4, %c0_148] : memref<49x4xf32, #tpu.memory_space<vmem>>, vector<1x4xf32>
    %cst_149 = arith.constant dense<0.000000e+00> : vector<1x256xf32>
    %238 = tpu.matmul %237, %236, %cst_149 {dimension_numbers = #tpu.dot_dimension_numbers<[1], [0], [0], [1], [0, 0, 1, 1], [], []>} : vector<1x4xf32>, vector<4x256xf32>, vector<1x256xf32> -> vector<1x256xf32>
    %239 = arith.addf %235, %238 : vector<1x256xf32>
    %c0_150 = arith.constant 0 : index
    %c97 = arith.constant 97 : index
    %240 = vector.load %arg9[%c0_150, %c97] : memref<4x435xf32, #tpu.memory_space<vmem>>, vector<4x256xf32>
    %c11 = arith.constant 11 : index
    %c0_151 = arith.constant 0 : index
    %241 = vector.load %arg5[%c11, %c0_151] : memref<49x4xf32, #tpu.memory_space<vmem>>, vector<1x4xf32>
    %cst_152 = arith.constant dense<0.000000e+00> : vector<1x256xf32>
    %242 = tpu.matmul %241, %240, %cst_152 {dimension_numbers = #tpu.dot_dimension_numbers<[1], [0], [0], [1], [0, 0, 1, 1], [], []>} : vector<1x4xf32>, vector<4x256xf32>, vector<1x256xf32> -> vector<1x256xf32>
    %243 = arith.addf %239, %242 : vector<1x256xf32>
    %c0_153 = arith.constant 0 : index
    %c113 = arith.constant 113 : index
    %244 = vector.load %arg9[%c0_153, %c113] : memref<4x435xf32, #tpu.memory_space<vmem>>, vector<4x256xf32>
    %c18 = arith.constant 18 : index
    %c0_154 = arith.constant 0 : index
    %245 = vector.load %arg5[%c18, %c0_154] : memref<49x4xf32, #tpu.memory_space<vmem>>, vector<1x4xf32>
    %cst_155 = arith.constant dense<0.000000e+00> : vector<1x256xf32>
    %246 = tpu.matmul %245, %244, %cst_155 {dimension_numbers = #tpu.dot_dimension_numbers<[1], [0], [0], [1], [0, 0, 1, 1], [], []>} : vector<1x4xf32>, vector<4x256xf32>, vector<1x256xf32> -> vector<1x256xf32>
    %247 = arith.addf %243, %246 : vector<1x256xf32>
    %c0_156 = arith.constant 0 : index
    %c129 = arith.constant 129 : index
    %248 = vector.load %arg9[%c0_156, %c129] : memref<4x435xf32, #tpu.memory_space<vmem>>, vector<4x256xf32>
    %c25 = arith.constant 25 : index
    %c0_157 = arith.constant 0 : index
    %249 = vector.load %arg5[%c25, %c0_157] : memref<49x4xf32, #tpu.memory_space<vmem>>, vector<1x4xf32>
    %cst_158 = arith.constant dense<0.000000e+00> : vector<1x256xf32>
    %250 = tpu.matmul %249, %248, %cst_158 {dimension_numbers = #tpu.dot_dimension_numbers<[1], [0], [0], [1], [0, 0, 1, 1], [], []>} : vector<1x4xf32>, vector<4x256xf32>, vector<1x256xf32> -> vector<1x256xf32>
    %251 = arith.addf %247, %250 : vector<1x256xf32>
    %c0_159 = arith.constant 0 : index
    %c145 = arith.constant 145 : index
    %252 = vector.load %arg9[%c0_159, %c145] : memref<4x435xf32, #tpu.memory_space<vmem>>, vector<4x256xf32>
    %c32 = arith.constant 32 : index
    %c0_160 = arith.constant 0 : index
    %253 = vector.load %arg5[%c32, %c0_160] : memref<49x4xf32, #tpu.memory_space<vmem>>, vector<1x4xf32>
    %cst_161 = arith.constant dense<0.000000e+00> : vector<1x256xf32>
    %254 = tpu.matmul %253, %252, %cst_161 {dimension_numbers = #tpu.dot_dimension_numbers<[1], [0], [0], [1], [0, 0, 1, 1], [], []>} : vector<1x4xf32>, vector<4x256xf32>, vector<1x256xf32> -> vector<1x256xf32>
    %255 = arith.addf %251, %254 : vector<1x256xf32>
    %c0_162 = arith.constant 0 : index
    %c161 = arith.constant 161 : index
    %256 = vector.load %arg9[%c0_162, %c161] : memref<4x435xf32, #tpu.memory_space<vmem>>, vector<4x256xf32>
    %c39 = arith.constant 39 : index
    %c0_163 = arith.constant 0 : index
    %257 = vector.load %arg5[%c39, %c0_163] : memref<49x4xf32, #tpu.memory_space<vmem>>, vector<1x4xf32>
    %cst_164 = arith.constant dense<0.000000e+00> : vector<1x256xf32>
    %258 = tpu.matmul %257, %256, %cst_164 {dimension_numbers = #tpu.dot_dimension_numbers<[1], [0], [0], [1], [0, 0, 1, 1], [], []>} : vector<1x4xf32>, vector<4x256xf32>, vector<1x256xf32> -> vector<1x256xf32>
    %259 = arith.addf %255, %258 : vector<1x256xf32>
    %c0_165 = arith.constant 0 : index
    %c177 = arith.constant 177 : index
    %260 = vector.load %arg9[%c0_165, %c177] : memref<4x435xf32, #tpu.memory_space<vmem>>, vector<4x256xf32>
    %c46 = arith.constant 46 : index
    %c0_166 = arith.constant 0 : index
    %261 = vector.load %arg5[%c46, %c0_166] : memref<49x4xf32, #tpu.memory_space<vmem>>, vector<1x4xf32>
    %cst_167 = arith.constant dense<0.000000e+00> : vector<1x256xf32>
    %262 = tpu.matmul %261, %260, %cst_167 {dimension_numbers = #tpu.dot_dimension_numbers<[1], [0], [0], [1], [0, 0, 1, 1], [], []>} : vector<1x4xf32>, vector<4x256xf32>, vector<1x256xf32> -> vector<1x256xf32>
    %263 = arith.addf %259, %262 : vector<1x256xf32>
    %cst_168 = arith.constant 0.000000e+00 : f32
    %264 = vector.broadcast %cst_168 : f32 to vector<1x256xf32>
    %265 = arith.select %51, %263, %264 : vector<1x256xi1>, vector<1x256xf32>
    %266 = arith.addf %234, %265 : vector<1x256xf32>
    %cst_169 = arith.constant 0.000000e+00 : f32
    %267 = vector.broadcast %cst_169 : f32 to vector<1x256xf32>
    %c0_170 = arith.constant 0 : index
    %c82 = arith.constant 82 : index
    %268 = vector.load %arg9[%c0_170, %c82] : memref<4x435xf32, #tpu.memory_space<vmem>>, vector<4x256xf32>
    %c5 = arith.constant 5 : index
    %c0_171 = arith.constant 0 : index
    %269 = vector.load %arg5[%c5, %c0_171] : memref<49x4xf32, #tpu.memory_space<vmem>>, vector<1x4xf32>
    %cst_172 = arith.constant dense<0.000000e+00> : vector<1x256xf32>
    %270 = tpu.matmul %269, %268, %cst_172 {dimension_numbers = #tpu.dot_dimension_numbers<[1], [0], [0], [1], [0, 0, 1, 1], [], []>} : vector<1x4xf32>, vector<4x256xf32>, vector<1x256xf32> -> vector<1x256xf32>
    %271 = arith.addf %267, %270 : vector<1x256xf32>
    %c0_173 = arith.constant 0 : index
    %c98 = arith.constant 98 : index
    %272 = vector.load %arg9[%c0_173, %c98] : memref<4x435xf32, #tpu.memory_space<vmem>>, vector<4x256xf32>
    %c12 = arith.constant 12 : index
    %c0_174 = arith.constant 0 : index
    %273 = vector.load %arg5[%c12, %c0_174] : memref<49x4xf32, #tpu.memory_space<vmem>>, vector<1x4xf32>
    %cst_175 = arith.constant dense<0.000000e+00> : vector<1x256xf32>
    %274 = tpu.matmul %273, %272, %cst_175 {dimension_numbers = #tpu.dot_dimension_numbers<[1], [0], [0], [1], [0, 0, 1, 1], [], []>} : vector<1x4xf32>, vector<4x256xf32>, vector<1x256xf32> -> vector<1x256xf32>
    %275 = arith.addf %271, %274 : vector<1x256xf32>
    %c0_176 = arith.constant 0 : index
    %c114 = arith.constant 114 : index
    %276 = vector.load %arg9[%c0_176, %c114] : memref<4x435xf32, #tpu.memory_space<vmem>>, vector<4x256xf32>
    %c19 = arith.constant 19 : index
    %c0_177 = arith.constant 0 : index
    %277 = vector.load %arg5[%c19, %c0_177] : memref<49x4xf32, #tpu.memory_space<vmem>>, vector<1x4xf32>
    %cst_178 = arith.constant dense<0.000000e+00> : vector<1x256xf32>
    %278 = tpu.matmul %277, %276, %cst_178 {dimension_numbers = #tpu.dot_dimension_numbers<[1], [0], [0], [1], [0, 0, 1, 1], [], []>} : vector<1x4xf32>, vector<4x256xf32>, vector<1x256xf32> -> vector<1x256xf32>
    %279 = arith.addf %275, %278 : vector<1x256xf32>
    %c0_179 = arith.constant 0 : index
    %c130 = arith.constant 130 : index
    %280 = vector.load %arg9[%c0_179, %c130] : memref<4x435xf32, #tpu.memory_space<vmem>>, vector<4x256xf32>
    %c26 = arith.constant 26 : index
    %c0_180 = arith.constant 0 : index
    %281 = vector.load %arg5[%c26, %c0_180] : memref<49x4xf32, #tpu.memory_space<vmem>>, vector<1x4xf32>
    %cst_181 = arith.constant dense<0.000000e+00> : vector<1x256xf32>
    %282 = tpu.matmul %281, %280, %cst_181 {dimension_numbers = #tpu.dot_dimension_numbers<[1], [0], [0], [1], [0, 0, 1, 1], [], []>} : vector<1x4xf32>, vector<4x256xf32>, vector<1x256xf32> -> vector<1x256xf32>
    %283 = arith.addf %279, %282 : vector<1x256xf32>
    %c0_182 = arith.constant 0 : index
    %c146 = arith.constant 146 : index
    %284 = vector.load %arg9[%c0_182, %c146] : memref<4x435xf32, #tpu.memory_space<vmem>>, vector<4x256xf32>
    %c33 = arith.constant 33 : index
    %c0_183 = arith.constant 0 : index
    %285 = vector.load %arg5[%c33, %c0_183] : memref<49x4xf32, #tpu.memory_space<vmem>>, vector<1x4xf32>
    %cst_184 = arith.constant dense<0.000000e+00> : vector<1x256xf32>
    %286 = tpu.matmul %285, %284, %cst_184 {dimension_numbers = #tpu.dot_dimension_numbers<[1], [0], [0], [1], [0, 0, 1, 1], [], []>} : vector<1x4xf32>, vector<4x256xf32>, vector<1x256xf32> -> vector<1x256xf32>
    %287 = arith.addf %283, %286 : vector<1x256xf32>
    %c0_185 = arith.constant 0 : index
    %c162 = arith.constant 162 : index
    %288 = vector.load %arg9[%c0_185, %c162] : memref<4x435xf32, #tpu.memory_space<vmem>>, vector<4x256xf32>
    %c40 = arith.constant 40 : index
    %c0_186 = arith.constant 0 : index
    %289 = vector.load %arg5[%c40, %c0_186] : memref<49x4xf32, #tpu.memory_space<vmem>>, vector<1x4xf32>
    %cst_187 = arith.constant dense<0.000000e+00> : vector<1x256xf32>
    %290 = tpu.matmul %289, %288, %cst_187 {dimension_numbers = #tpu.dot_dimension_numbers<[1], [0], [0], [1], [0, 0, 1, 1], [], []>} : vector<1x4xf32>, vector<4x256xf32>, vector<1x256xf32> -> vector<1x256xf32>
    %291 = arith.addf %287, %290 : vector<1x256xf32>
    %c0_188 = arith.constant 0 : index
    %c178 = arith.constant 178 : index
    %292 = vector.load %arg9[%c0_188, %c178] : memref<4x435xf32, #tpu.memory_space<vmem>>, vector<4x256xf32>
    %c47 = arith.constant 47 : index
    %c0_189 = arith.constant 0 : index
    %293 = vector.load %arg5[%c47, %c0_189] : memref<49x4xf32, #tpu.memory_space<vmem>>, vector<1x4xf32>
    %cst_190 = arith.constant dense<0.000000e+00> : vector<1x256xf32>
    %294 = tpu.matmul %293, %292, %cst_190 {dimension_numbers = #tpu.dot_dimension_numbers<[1], [0], [0], [1], [0, 0, 1, 1], [], []>} : vector<1x4xf32>, vector<4x256xf32>, vector<1x256xf32> -> vector<1x256xf32>
    %295 = arith.addf %291, %294 : vector<1x256xf32>
    %cst_191 = arith.constant 0.000000e+00 : f32
    %296 = vector.broadcast %cst_191 : f32 to vector<1x256xf32>
    %297 = arith.select %56, %295, %296 : vector<1x256xi1>, vector<1x256xf32>
    %298 = arith.addf %266, %297 : vector<1x256xf32>
    %cst_192 = arith.constant 0.000000e+00 : f32
    %299 = vector.broadcast %cst_192 : f32 to vector<1x256xf32>
    %c0_193 = arith.constant 0 : index
    %c83 = arith.constant 83 : index
    %300 = vector.load %arg9[%c0_193, %c83] : memref<4x435xf32, #tpu.memory_space<vmem>>, vector<4x256xf32>
    %c6 = arith.constant 6 : index
    %c0_194 = arith.constant 0 : index
    %301 = vector.load %arg5[%c6, %c0_194] : memref<49x4xf32, #tpu.memory_space<vmem>>, vector<1x4xf32>
    %cst_195 = arith.constant dense<0.000000e+00> : vector<1x256xf32>
    %302 = tpu.matmul %301, %300, %cst_195 {dimension_numbers = #tpu.dot_dimension_numbers<[1], [0], [0], [1], [0, 0, 1, 1], [], []>} : vector<1x4xf32>, vector<4x256xf32>, vector<1x256xf32> -> vector<1x256xf32>
    %303 = arith.addf %299, %302 : vector<1x256xf32>
    %c0_196 = arith.constant 0 : index
    %c99 = arith.constant 99 : index
    %304 = vector.load %arg9[%c0_196, %c99] : memref<4x435xf32, #tpu.memory_space<vmem>>, vector<4x256xf32>
    %c13 = arith.constant 13 : index
    %c0_197 = arith.constant 0 : index
    %305 = vector.load %arg5[%c13, %c0_197] : memref<49x4xf32, #tpu.memory_space<vmem>>, vector<1x4xf32>
    %cst_198 = arith.constant dense<0.000000e+00> : vector<1x256xf32>
    %306 = tpu.matmul %305, %304, %cst_198 {dimension_numbers = #tpu.dot_dimension_numbers<[1], [0], [0], [1], [0, 0, 1, 1], [], []>} : vector<1x4xf32>, vector<4x256xf32>, vector<1x256xf32> -> vector<1x256xf32>
    %307 = arith.addf %303, %306 : vector<1x256xf32>
    %c0_199 = arith.constant 0 : index
    %c115 = arith.constant 115 : index
    %308 = vector.load %arg9[%c0_199, %c115] : memref<4x435xf32, #tpu.memory_space<vmem>>, vector<4x256xf32>
    %c20 = arith.constant 20 : index
    %c0_200 = arith.constant 0 : index
    %309 = vector.load %arg5[%c20, %c0_200] : memref<49x4xf32, #tpu.memory_space<vmem>>, vector<1x4xf32>
    %cst_201 = arith.constant dense<0.000000e+00> : vector<1x256xf32>
    %310 = tpu.matmul %309, %308, %cst_201 {dimension_numbers = #tpu.dot_dimension_numbers<[1], [0], [0], [1], [0, 0, 1, 1], [], []>} : vector<1x4xf32>, vector<4x256xf32>, vector<1x256xf32> -> vector<1x256xf32>
    %311 = arith.addf %307, %310 : vector<1x256xf32>
    %c0_202 = arith.constant 0 : index
    %c131 = arith.constant 131 : index
    %312 = vector.load %arg9[%c0_202, %c131] : memref<4x435xf32, #tpu.memory_space<vmem>>, vector<4x256xf32>
    %c27 = arith.constant 27 : index
    %c0_203 = arith.constant 0 : index
    %313 = vector.load %arg5[%c27, %c0_203] : memref<49x4xf32, #tpu.memory_space<vmem>>, vector<1x4xf32>
    %cst_204 = arith.constant dense<0.000000e+00> : vector<1x256xf32>
    %314 = tpu.matmul %313, %312, %cst_204 {dimension_numbers = #tpu.dot_dimension_numbers<[1], [0], [0], [1], [0, 0, 1, 1], [], []>} : vector<1x4xf32>, vector<4x256xf32>, vector<1x256xf32> -> vector<1x256xf32>
    %315 = arith.addf %311, %314 : vector<1x256xf32>
    %c0_205 = arith.constant 0 : index
    %c147 = arith.constant 147 : index
    %316 = vector.load %arg9[%c0_205, %c147] : memref<4x435xf32, #tpu.memory_space<vmem>>, vector<4x256xf32>
    %c34 = arith.constant 34 : index
    %c0_206 = arith.constant 0 : index
    %317 = vector.load %arg5[%c34, %c0_206] : memref<49x4xf32, #tpu.memory_space<vmem>>, vector<1x4xf32>
    %cst_207 = arith.constant dense<0.000000e+00> : vector<1x256xf32>
    %318 = tpu.matmul %317, %316, %cst_207 {dimension_numbers = #tpu.dot_dimension_numbers<[1], [0], [0], [1], [0, 0, 1, 1], [], []>} : vector<1x4xf32>, vector<4x256xf32>, vector<1x256xf32> -> vector<1x256xf32>
    %319 = arith.addf %315, %318 : vector<1x256xf32>
    %c0_208 = arith.constant 0 : index
    %c163 = arith.constant 163 : index
    %320 = vector.load %arg9[%c0_208, %c163] : memref<4x435xf32, #tpu.memory_space<vmem>>, vector<4x256xf32>
    %c41 = arith.constant 41 : index
    %c0_209 = arith.constant 0 : index
    %321 = vector.load %arg5[%c41, %c0_209] : memref<49x4xf32, #tpu.memory_space<vmem>>, vector<1x4xf32>
    %cst_210 = arith.constant dense<0.000000e+00> : vector<1x256xf32>
    %322 = tpu.matmul %321, %320, %cst_210 {dimension_numbers = #tpu.dot_dimension_numbers<[1], [0], [0], [1], [0, 0, 1, 1], [], []>} : vector<1x4xf32>, vector<4x256xf32>, vector<1x256xf32> -> vector<1x256xf32>
    %323 = arith.addf %319, %322 : vector<1x256xf32>
    %c0_211 = arith.constant 0 : index
    %c179 = arith.constant 179 : index
    %324 = vector.load %arg9[%c0_211, %c179] : memref<4x435xf32, #tpu.memory_space<vmem>>, vector<4x256xf32>
    %c48 = arith.constant 48 : index
    %c0_212 = arith.constant 0 : index
    %325 = vector.load %arg5[%c48, %c0_212] : memref<49x4xf32, #tpu.memory_space<vmem>>, vector<1x4xf32>
    %cst_213 = arith.constant dense<0.000000e+00> : vector<1x256xf32>
    %326 = tpu.matmul %325, %324, %cst_213 {dimension_numbers = #tpu.dot_dimension_numbers<[1], [0], [0], [1], [0, 0, 1, 1], [], []>} : vector<1x4xf32>, vector<4x256xf32>, vector<1x256xf32> -> vector<1x256xf32>
    %327 = arith.addf %323, %326 : vector<1x256xf32>
    %cst_214 = arith.constant 0.000000e+00 : f32
    %328 = vector.broadcast %cst_214 : f32 to vector<1x256xf32>
    %329 = arith.select %61, %327, %328 : vector<1x256xi1>, vector<1x256xf32>
    %330 = arith.addf %298, %329 : vector<1x256xf32>
    %c0_215 = arith.constant 0 : index
    %331 = memref.load %arg6[%c0_215] : memref<1xf32, #tpu.memory_space<smem>>
    %332 = vector.broadcast %331 : f32 to vector<1x256xf32>
    %333 = arith.addf %330, %332 : vector<1x256xf32>
    %cst_216 = arith.constant 5.000000e-01 : f32
    %334 = vector.broadcast %cst_216 : f32 to vector<1x256xf32>
    %335 = arith.mulf %334, %333 : vector<1x256xf32>
    %336 = math.tanh %335 : vector<1x256xf32>
    %cst_217 = arith.constant 1.000000e+00 : f32
    %337 = vector.broadcast %cst_217 : f32 to vector<1x256xf32>
    %338 = arith.addf %336, %337 : vector<1x256xf32>
    %cst_218 = arith.constant 5.000000e-01 : f32
    %339 = vector.broadcast %cst_218 : f32 to vector<1x256xf32>
    %340 = arith.mulf %339, %338 : vector<1x256xf32>
    %341 = vector.broadcast %93 : vector<16x1xf32> to vector<16x256xf32>
    %342 = vector.broadcast %340 : vector<1x256xf32> to vector<16x256xf32>
    %343 = arith.addf %341, %342 : vector<16x256xf32>
    %cst_219 = arith.constant 1.000000e+00 : f32
    %344 = vector.broadcast %cst_219 : f32 to vector<16x256xf32>
    %345 = arith.addf %343, %344 : vector<16x256xf32>
    %cst_220 = arith.constant 4.000000e+00 : f32
    %346 = vector.broadcast %cst_220 : f32 to vector<16x256xf32>
    %347 = arith.mulf %346, %65 : vector<16x256xf32>
    %348 = arith.subf %63, %65 : vector<16x256xf32>
    %349 = arith.mulf %345, %348 : vector<16x256xf32>
    %350 = arith.addf %347, %349 : vector<16x256xf32>
    %c0_221 = arith.constant 0 : index
    %c0_222 = arith.constant 0 : index
    %c0_223 = arith.constant 0 : index
    %351 = vector.load %arg7[%c0_221, %c0_222, %c0_223] : memref<2x16x256xf32, #tpu.memory_space<vmem>>, vector<1x16x256xf32>
    %352 = vector.shape_cast %351 : vector<1x16x256xf32> to vector<16x256xf32>
    %353 = vector.shape_cast %350 : vector<16x256xf32> to vector<1x16x256xf32>
    tpu.vector_store %arg7[%c0_221, %c0_222, %c0_223], %353 {strides = array<i32>} : memref<2x16x256xf32, #tpu.memory_space<vmem>>, vector<1x16x256xf32>,
    %c1_224 = arith.constant 1 : index
    %c0_225 = arith.constant 0 : index
    %c0_226 = arith.constant 0 : index
    %354 = vector.load %arg1[%c1_224, %c0_225, %c0_226] : memref<2x16x256xf32, #tpu.memory_space<vmem>>, vector<1x16x256xf32>
    %355 = vector.shape_cast %354 : vector<1x16x256xf32> to vector<16x256xf32>
    %c1_227 = arith.constant 1 : index
    %c0_228 = arith.constant 0 : index
    %c0_229 = arith.constant 0 : index
    %356 = vector.load %arg2[%c1_227, %c0_228, %c0_229] : memref<2x16x256xf32, #tpu.memory_space<vmem>>, vector<1x16x256xf32>
    %357 = vector.shape_cast %356 : vector<1x16x256xf32> to vector<16x256xf32>
    %cst_230 = arith.constant dense<0.000000e+00> : vector<16x1xf32>
    %358 = tpu.matmul %355, %8, %cst_230 {dimension_numbers = #tpu.dot_dimension_numbers<[1], [0], [0], [1], [0, 0, 1, 1], [], []>} : vector<16x256xf32>, vector<256x1xf32>, vector<16x1xf32> -> vector<16x1xf32>
    %cst_231 = arith.constant 3.906250e-03 : f32
    %359 = vector.broadcast %cst_231 : f32 to vector<16x1xf32>
    %360 = arith.mulf %358, %359 : vector<16x1xf32>
    %cst_232 = arith.constant dense<0.000000e+00> : vector<16x1xf32>
    %361 = tpu.matmul %357, %8, %cst_232 {dimension_numbers = #tpu.dot_dimension_numbers<[1], [0], [0], [1], [0, 0, 1, 1], [], []>} : vector<16x256xf32>, vector<256x1xf32>, vector<16x1xf32> -> vector<16x1xf32>
    %cst_233 = arith.constant 3.906250e-03 : f32
    %362 = vector.broadcast %cst_233 : f32 to vector<16x1xf32>
    %363 = arith.mulf %361, %362 : vector<16x1xf32>
    %cst_234 = arith.constant dense<0xFF800000> : vector<16xf32>
    %364 = vector.multi_reduction <maximumf>, %355, %cst_234 [1] : vector<16x256xf32> to vector<16xf32>
    %365 = vector.shape_cast %364 : vector<16xf32> to vector<16x1xf32>
    %cst_235 = arith.constant dense<0xFF800000> : vector<16xf32>
    %366 = vector.multi_reduction <maximumf>, %357, %cst_235 [1] : vector<16x256xf32> to vector<16xf32>
    %367 = vector.shape_cast %366 : vector<16xf32> to vector<16x1xf32>
    %368 = tpu.concatenate %360, %365, %363, %367 in 1 : vector<16x1xf32>, vector<16x1xf32>, vector<16x1xf32>, vector<16x1xf32> -> vector<16x4xf32>
    %c1_236 = arith.constant 1 : index
    %c0_237 = arith.constant 0 : index
    %369 = vector.load %arg8[%c1_236, %c0_237] : memref<18x4xf32, #tpu.memory_space<vmem>>, vector<16x4xf32>
    tpu.vector_store %arg8[%c1_236, %c0_237], %368 {strides = array<i32>} : memref<18x4xf32, #tpu.memory_space<vmem>>, vector<16x4xf32>,
    %c0_238 = arith.constant 0 : index
    %c0_239 = arith.constant 0 : index
    %370 = vector.load %arg8[%c0_238, %c0_239] : memref<18x4xf32, #tpu.memory_space<vmem>>, vector<16x4xf32>
    %c1_240 = arith.constant 1 : index
    %c0_241 = arith.constant 0 : index
    %371 = vector.load %arg8[%c1_240, %c0_241] : memref<18x4xf32, #tpu.memory_space<vmem>>, vector<16x4xf32>
    %c2_242 = arith.constant 2 : index
    %c0_243 = arith.constant 0 : index
    %372 = vector.load %arg8[%c2_242, %c0_243] : memref<18x4xf32, #tpu.memory_space<vmem>>, vector<16x4xf32>
    %373 = tpu.concatenate %370, %371, %372 in 1 : vector<16x4xf32>, vector<16x4xf32>, vector<16x4xf32> -> vector<16x12xf32>
    %c0_244 = arith.constant 0 : index
    %c0_245 = arith.constant 0 : index
    %374 = vector.load %arg3[%c0_244, %c0_245] : memref<12x1xf32, #tpu.memory_space<vmem>>, vector<12x1xf32>
    %cst_246 = arith.constant dense<0.000000e+00> : vector<16x1xf32>
    %375 = tpu.matmul %373, %374, %cst_246 {dimension_numbers = #tpu.dot_dimension_numbers<[1], [0], [0], [1], [0, 0, 1, 1], [], []>} : vector<16x12xf32>, vector<12x1xf32>, vector<16x1xf32> -> vector<16x1xf32>
    %c0_247 = arith.constant 0 : index
    %376 = memref.load %arg4[%c0_247] : memref<1xf32, #tpu.memory_space<smem>>
    %377 = vector.broadcast %376 : f32 to vector<16x1xf32>
    %378 = arith.addf %375, %377 : vector<16x1xf32>
    %cst_248 = arith.constant 5.000000e-01 : f32
    %379 = vector.broadcast %cst_248 : f32 to vector<16x1xf32>
    %380 = arith.mulf %379, %378 : vector<16x1xf32>
    %381 = math.tanh %380 : vector<16x1xf32>
    %cst_249 = arith.constant 1.000000e+00 : f32
    %382 = vector.broadcast %cst_249 : f32 to vector<16x1xf32>
    %383 = arith.addf %381, %382 : vector<16x1xf32>
    %cst_250 = arith.constant 5.000000e-01 : f32
    %384 = vector.broadcast %cst_250 : f32 to vector<16x1xf32>
    %385 = arith.mulf %384, %383 : vector<16x1xf32>
    %cst_251 = arith.constant dense<0.000000e+00> : vector<1x256xf32>
    %386 = tpu.matmul %9, %355, %cst_251 {dimension_numbers = #tpu.dot_dimension_numbers<[1], [0], [0], [1], [0, 0, 1, 1], [], []>} : vector<1x16xf32>, vector<16x256xf32>, vector<1x256xf32> -> vector<1x256xf32>
    %cst_252 = arith.constant 6.250000e-02 : f32
    %387 = vector.broadcast %cst_252 : f32 to vector<1x256xf32>
    %388 = arith.mulf %386, %387 : vector<1x256xf32>
    %cst_253 = arith.constant dense<0.000000e+00> : vector<1x256xf32>
    %389 = tpu.matmul %9, %357, %cst_253 {dimension_numbers = #tpu.dot_dimension_numbers<[1], [0], [0], [1], [0, 0, 1, 1], [], []>} : vector<1x16xf32>, vector<16x256xf32>, vector<1x256xf32> -> vector<1x256xf32>
    %cst_254 = arith.constant 6.250000e-02 : f32
    %390 = vector.broadcast %cst_254 : f32 to vector<1x256xf32>
    %391 = arith.mulf %389, %390 : vector<1x256xf32>
    %cst_255 = arith.constant dense<0xFF800000> : vector<256xf32>
    %392 = vector.multi_reduction <maximumf>, %355, %cst_255 [0] : vector<16x256xf32> to vector<256xf32>
    %393 = vector.shape_cast %392 : vector<256xf32> to vector<1x256xf32>
    %cst_256 = arith.constant dense<0xFF800000> : vector<256xf32>
    %394 = vector.multi_reduction <maximumf>, %357, %cst_256 [0] : vector<16x256xf32> to vector<256xf32>
    %395 = vector.shape_cast %394 : vector<256xf32> to vector<1x256xf32>
    %396 = tpu.concatenate %388, %393, %391, %395 in 0 : vector<1x256xf32>, vector<1x256xf32>, vector<1x256xf32>, vector<1x256xf32> -> vector<4x256xf32>
    %c0_257 = arith.constant 0 : index
    %c128_258 = arith.constant 128 : index
    %397 = vector.load %arg9[%c0_257, %c128_258] : memref<4x435xf32, #tpu.memory_space<vmem>>, vector<4x256xf32>
    tpu.vector_store %arg9[%c0_257, %c128_258], %396 {strides = array<i32>} : memref<4x435xf32, #tpu.memory_space<vmem>>, vector<4x256xf32>,
    %cst_259 = arith.constant 0.000000e+00 : f32
    %398 = vector.broadcast %cst_259 : f32 to vector<1x256xf32>
    %cst_260 = arith.constant 0.000000e+00 : f32
    %399 = vector.broadcast %cst_260 : f32 to vector<1x256xf32>
    %c0_261 = arith.constant 0 : index
    %c77_262 = arith.constant 77 : index
    %400 = vector.load %arg9[%c0_261, %c77_262] : memref<4x435xf32, #tpu.memory_space<vmem>>, vector<4x256xf32>
    %c0_263 = arith.constant 0 : index
    %c0_264 = arith.constant 0 : index
    %401 = vector.load %arg5[%c0_263, %c0_264] : memref<49x4xf32, #tpu.memory_space<vmem>>, vector<1x4xf32>
    %cst_265 = arith.constant dense<0.000000e+00> : vector<1x256xf32>
    %402 = tpu.matmul %401, %400, %cst_265 {dimension_numbers = #tpu.dot_dimension_numbers<[1], [0], [0], [1], [0, 0, 1, 1], [], []>} : vector<1x4xf32>, vector<4x256xf32>, vector<1x256xf32> -> vector<1x256xf32>
    %403 = arith.addf %399, %402 : vector<1x256xf32>
    %c0_266 = arith.constant 0 : index
    %c93_267 = arith.constant 93 : index
    %404 = vector.load %arg9[%c0_266, %c93_267] : memref<4x435xf32, #tpu.memory_space<vmem>>, vector<4x256xf32>
    %c7_268 = arith.constant 7 : index
    %c0_269 = arith.constant 0 : index
    %405 = vector.load %arg5[%c7_268, %c0_269] : memref<49x4xf32, #tpu.memory_space<vmem>>, vector<1x4xf32>
    %cst_270 = arith.constant dense<0.000000e+00> : vector<1x256xf32>
    %406 = tpu.matmul %405, %404, %cst_270 {dimension_numbers = #tpu.dot_dimension_numbers<[1], [0], [0], [1], [0, 0, 1, 1], [], []>} : vector<1x4xf32>, vector<4x256xf32>, vector<1x256xf32> -> vector<1x256xf32>
    %407 = arith.addf %403, %406 : vector<1x256xf32>
    %c0_271 = arith.constant 0 : index
    %c109_272 = arith.constant 109 : index
    %408 = vector.load %arg9[%c0_271, %c109_272] : memref<4x435xf32, #tpu.memory_space<vmem>>, vector<4x256xf32>
    %c14_273 = arith.constant 14 : index
    %c0_274 = arith.constant 0 : index
    %409 = vector.load %arg5[%c14_273, %c0_274] : memref<49x4xf32, #tpu.memory_space<vmem>>, vector<1x4xf32>
    %cst_275 = arith.constant dense<0.000000e+00> : vector<1x256xf32>
    %410 = tpu.matmul %409, %408, %cst_275 {dimension_numbers = #tpu.dot_dimension_numbers<[1], [0], [0], [1], [0, 0, 1, 1], [], []>} : vector<1x4xf32>, vector<4x256xf32>, vector<1x256xf32> -> vector<1x256xf32>
    %411 = arith.addf %407, %410 : vector<1x256xf32>
    %c0_276 = arith.constant 0 : index
    %c125_277 = arith.constant 125 : index
    %412 = vector.load %arg9[%c0_276, %c125_277] : memref<4x435xf32, #tpu.memory_space<vmem>>, vector<4x256xf32>
    %c21_278 = arith.constant 21 : index
    %c0_279 = arith.constant 0 : index
    %413 = vector.load %arg5[%c21_278, %c0_279] : memref<49x4xf32, #tpu.memory_space<vmem>>, vector<1x4xf32>
    %cst_280 = arith.constant dense<0.000000e+00> : vector<1x256xf32>
    %414 = tpu.matmul %413, %412, %cst_280 {dimension_numbers = #tpu.dot_dimension_numbers<[1], [0], [0], [1], [0, 0, 1, 1], [], []>} : vector<1x4xf32>, vector<4x256xf32>, vector<1x256xf32> -> vector<1x256xf32>
    %415 = arith.addf %411, %414 : vector<1x256xf32>
    %c0_281 = arith.constant 0 : index
    %c141_282 = arith.constant 141 : index
    %416 = vector.load %arg9[%c0_281, %c141_282] : memref<4x435xf32, #tpu.memory_space<vmem>>, vector<4x256xf32>
    %c28_283 = arith.constant 28 : index
    %c0_284 = arith.constant 0 : index
    %417 = vector.load %arg5[%c28_283, %c0_284] : memref<49x4xf32, #tpu.memory_space<vmem>>, vector<1x4xf32>
    %cst_285 = arith.constant dense<0.000000e+00> : vector<1x256xf32>
    %418 = tpu.matmul %417, %416, %cst_285 {dimension_numbers = #tpu.dot_dimension_numbers<[1], [0], [0], [1], [0, 0, 1, 1], [], []>} : vector<1x4xf32>, vector<4x256xf32>, vector<1x256xf32> -> vector<1x256xf32>
    %419 = arith.addf %415, %418 : vector<1x256xf32>
    %c0_286 = arith.constant 0 : index
    %c157_287 = arith.constant 157 : index
    %420 = vector.load %arg9[%c0_286, %c157_287] : memref<4x435xf32, #tpu.memory_space<vmem>>, vector<4x256xf32>
    %c35_288 = arith.constant 35 : index
    %c0_289 = arith.constant 0 : index
    %421 = vector.load %arg5[%c35_288, %c0_289] : memref<49x4xf32, #tpu.memory_space<vmem>>, vector<1x4xf32>
    %cst_290 = arith.constant dense<0.000000e+00> : vector<1x256xf32>
    %422 = tpu.matmul %421, %420, %cst_290 {dimension_numbers = #tpu.dot_dimension_numbers<[1], [0], [0], [1], [0, 0, 1, 1], [], []>} : vector<1x4xf32>, vector<4x256xf32>, vector<1x256xf32> -> vector<1x256xf32>
    %423 = arith.addf %419, %422 : vector<1x256xf32>
    %c0_291 = arith.constant 0 : index
    %c173_292 = arith.constant 173 : index
    %424 = vector.load %arg9[%c0_291, %c173_292] : memref<4x435xf32, #tpu.memory_space<vmem>>, vector<4x256xf32>
    %c42_293 = arith.constant 42 : index
    %c0_294 = arith.constant 0 : index
    %425 = vector.load %arg5[%c42_293, %c0_294] : memref<49x4xf32, #tpu.memory_space<vmem>>, vector<1x4xf32>
    %cst_295 = arith.constant dense<0.000000e+00> : vector<1x256xf32>
    %426 = tpu.matmul %425, %424, %cst_295 {dimension_numbers = #tpu.dot_dimension_numbers<[1], [0], [0], [1], [0, 0, 1, 1], [], []>} : vector<1x4xf32>, vector<4x256xf32>, vector<1x256xf32> -> vector<1x256xf32>
    %427 = arith.addf %423, %426 : vector<1x256xf32>
    %cst_296 = arith.constant 0.000000e+00 : f32
    %428 = vector.broadcast %cst_296 : f32 to vector<1x256xf32>
    %429 = arith.select %31, %427, %428 : vector<1x256xi1>, vector<1x256xf32>
    %430 = arith.addf %398, %429 : vector<1x256xf32>
    %cst_297 = arith.constant 0.000000e+00 : f32
    %431 = vector.broadcast %cst_297 : f32 to vector<1x256xf32>
    %c0_298 = arith.constant 0 : index
    %c78_299 = arith.constant 78 : index
    %432 = vector.load %arg9[%c0_298, %c78_299] : memref<4x435xf32, #tpu.memory_space<vmem>>, vector<4x256xf32>
    %c1_300 = arith.constant 1 : index
    %c0_301 = arith.constant 0 : index
    %433 = vector.load %arg5[%c1_300, %c0_301] : memref<49x4xf32, #tpu.memory_space<vmem>>, vector<1x4xf32>
    %cst_302 = arith.constant dense<0.000000e+00> : vector<1x256xf32>
    %434 = tpu.matmul %433, %432, %cst_302 {dimension_numbers = #tpu.dot_dimension_numbers<[1], [0], [0], [1], [0, 0, 1, 1], [], []>} : vector<1x4xf32>, vector<4x256xf32>, vector<1x256xf32> -> vector<1x256xf32>
    %435 = arith.addf %431, %434 : vector<1x256xf32>
    %c0_303 = arith.constant 0 : index
    %c94_304 = arith.constant 94 : index
    %436 = vector.load %arg9[%c0_303, %c94_304] : memref<4x435xf32, #tpu.memory_space<vmem>>, vector<4x256xf32>
    %c8_305 = arith.constant 8 : index
    %c0_306 = arith.constant 0 : index
    %437 = vector.load %arg5[%c8_305, %c0_306] : memref<49x4xf32, #tpu.memory_space<vmem>>, vector<1x4xf32>
    %cst_307 = arith.constant dense<0.000000e+00> : vector<1x256xf32>
    %438 = tpu.matmul %437, %436, %cst_307 {dimension_numbers = #tpu.dot_dimension_numbers<[1], [0], [0], [1], [0, 0, 1, 1], [], []>} : vector<1x4xf32>, vector<4x256xf32>, vector<1x256xf32> -> vector<1x256xf32>
    %439 = arith.addf %435, %438 : vector<1x256xf32>
    %c0_308 = arith.constant 0 : index
    %c110_309 = arith.constant 110 : index
    %440 = vector.load %arg9[%c0_308, %c110_309] : memref<4x435xf32, #tpu.memory_space<vmem>>, vector<4x256xf32>
    %c15_310 = arith.constant 15 : index
    %c0_311 = arith.constant 0 : index
    %441 = vector.load %arg5[%c15_310, %c0_311] : memref<49x4xf32, #tpu.memory_space<vmem>>, vector<1x4xf32>
    %cst_312 = arith.constant dense<0.000000e+00> : vector<1x256xf32>
    %442 = tpu.matmul %441, %440, %cst_312 {dimension_numbers = #tpu.dot_dimension_numbers<[1], [0], [0], [1], [0, 0, 1, 1], [], []>} : vector<1x4xf32>, vector<4x256xf32>, vector<1x256xf32> -> vector<1x256xf32>
    %443 = arith.addf %439, %442 : vector<1x256xf32>
    %c0_313 = arith.constant 0 : index
    %c126_314 = arith.constant 126 : index
    %444 = vector.load %arg9[%c0_313, %c126_314] : memref<4x435xf32, #tpu.memory_space<vmem>>, vector<4x256xf32>
    %c22_315 = arith.constant 22 : index
    %c0_316 = arith.constant 0 : index
    %445 = vector.load %arg5[%c22_315, %c0_316] : memref<49x4xf32, #tpu.memory_space<vmem>>, vector<1x4xf32>
    %cst_317 = arith.constant dense<0.000000e+00> : vector<1x256xf32>
    %446 = tpu.matmul %445, %444, %cst_317 {dimension_numbers = #tpu.dot_dimension_numbers<[1], [0], [0], [1], [0, 0, 1, 1], [], []>} : vector<1x4xf32>, vector<4x256xf32>, vector<1x256xf32> -> vector<1x256xf32>
    %447 = arith.addf %443, %446 : vector<1x256xf32>
    %c0_318 = arith.constant 0 : index
    %c142_319 = arith.constant 142 : index
    %448 = vector.load %arg9[%c0_318, %c142_319] : memref<4x435xf32, #tpu.memory_space<vmem>>, vector<4x256xf32>
    %c29_320 = arith.constant 29 : index
    %c0_321 = arith.constant 0 : index
    %449 = vector.load %arg5[%c29_320, %c0_321] : memref<49x4xf32, #tpu.memory_space<vmem>>, vector<1x4xf32>
    %cst_322 = arith.constant dense<0.000000e+00> : vector<1x256xf32>
    %450 = tpu.matmul %449, %448, %cst_322 {dimension_numbers = #tpu.dot_dimension_numbers<[1], [0], [0], [1], [0, 0, 1, 1], [], []>} : vector<1x4xf32>, vector<4x256xf32>, vector<1x256xf32> -> vector<1x256xf32>
    %451 = arith.addf %447, %450 : vector<1x256xf32>
    %c0_323 = arith.constant 0 : index
    %c158_324 = arith.constant 158 : index
    %452 = vector.load %arg9[%c0_323, %c158_324] : memref<4x435xf32, #tpu.memory_space<vmem>>, vector<4x256xf32>
    %c36_325 = arith.constant 36 : index
    %c0_326 = arith.constant 0 : index
    %453 = vector.load %arg5[%c36_325, %c0_326] : memref<49x4xf32, #tpu.memory_space<vmem>>, vector<1x4xf32>
    %cst_327 = arith.constant dense<0.000000e+00> : vector<1x256xf32>
    %454 = tpu.matmul %453, %452, %cst_327 {dimension_numbers = #tpu.dot_dimension_numbers<[1], [0], [0], [1], [0, 0, 1, 1], [], []>} : vector<1x4xf32>, vector<4x256xf32>, vector<1x256xf32> -> vector<1x256xf32>
    %455 = arith.addf %451, %454 : vector<1x256xf32>
    %c0_328 = arith.constant 0 : index
    %c174_329 = arith.constant 174 : index
    %456 = vector.load %arg9[%c0_328, %c174_329] : memref<4x435xf32, #tpu.memory_space<vmem>>, vector<4x256xf32>
    %c43_330 = arith.constant 43 : index
    %c0_331 = arith.constant 0 : index
    %457 = vector.load %arg5[%c43_330, %c0_331] : memref<49x4xf32, #tpu.memory_space<vmem>>, vector<1x4xf32>
    %cst_332 = arith.constant dense<0.000000e+00> : vector<1x256xf32>
    %458 = tpu.matmul %457, %456, %cst_332 {dimension_numbers = #tpu.dot_dimension_numbers<[1], [0], [0], [1], [0, 0, 1, 1], [], []>} : vector<1x4xf32>, vector<4x256xf32>, vector<1x256xf32> -> vector<1x256xf32>
    %459 = arith.addf %455, %458 : vector<1x256xf32>
    %cst_333 = arith.constant 0.000000e+00 : f32
    %460 = vector.broadcast %cst_333 : f32 to vector<1x256xf32>
    %461 = arith.select %36, %459, %460 : vector<1x256xi1>, vector<1x256xf32>
    %462 = arith.addf %430, %461 : vector<1x256xf32>
    %cst_334 = arith.constant 0.000000e+00 : f32
    %463 = vector.broadcast %cst_334 : f32 to vector<1x256xf32>
    %c0_335 = arith.constant 0 : index
    %c79_336 = arith.constant 79 : index
    %464 = vector.load %arg9[%c0_335, %c79_336] : memref<4x435xf32, #tpu.memory_space<vmem>>, vector<4x256xf32>
    %c2_337 = arith.constant 2 : index
    %c0_338 = arith.constant 0 : index
    %465 = vector.load %arg5[%c2_337, %c0_338] : memref<49x4xf32, #tpu.memory_space<vmem>>, vector<1x4xf32>
    %cst_339 = arith.constant dense<0.000000e+00> : vector<1x256xf32>
    %466 = tpu.matmul %465, %464, %cst_339 {dimension_numbers = #tpu.dot_dimension_numbers<[1], [0], [0], [1], [0, 0, 1, 1], [], []>} : vector<1x4xf32>, vector<4x256xf32>, vector<1x256xf32> -> vector<1x256xf32>
    %467 = arith.addf %463, %466 : vector<1x256xf32>
    %c0_340 = arith.constant 0 : index
    %c95_341 = arith.constant 95 : index
    %468 = vector.load %arg9[%c0_340, %c95_341] : memref<4x435xf32, #tpu.memory_space<vmem>>, vector<4x256xf32>
    %c9_342 = arith.constant 9 : index
    %c0_343 = arith.constant 0 : index
    %469 = vector.load %arg5[%c9_342, %c0_343] : memref<49x4xf32, #tpu.memory_space<vmem>>, vector<1x4xf32>
    %cst_344 = arith.constant dense<0.000000e+00> : vector<1x256xf32>
    %470 = tpu.matmul %469, %468, %cst_344 {dimension_numbers = #tpu.dot_dimension_numbers<[1], [0], [0], [1], [0, 0, 1, 1], [], []>} : vector<1x4xf32>, vector<4x256xf32>, vector<1x256xf32> -> vector<1x256xf32>
    %471 = arith.addf %467, %470 : vector<1x256xf32>
    %c0_345 = arith.constant 0 : index
    %c111_346 = arith.constant 111 : index
    %472 = vector.load %arg9[%c0_345, %c111_346] : memref<4x435xf32, #tpu.memory_space<vmem>>, vector<4x256xf32>
    %c16_347 = arith.constant 16 : index
    %c0_348 = arith.constant 0 : index
    %473 = vector.load %arg5[%c16_347, %c0_348] : memref<49x4xf32, #tpu.memory_space<vmem>>, vector<1x4xf32>
    %cst_349 = arith.constant dense<0.000000e+00> : vector<1x256xf32>
    %474 = tpu.matmul %473, %472, %cst_349 {dimension_numbers = #tpu.dot_dimension_numbers<[1], [0], [0], [1], [0, 0, 1, 1], [], []>} : vector<1x4xf32>, vector<4x256xf32>, vector<1x256xf32> -> vector<1x256xf32>
    %475 = arith.addf %471, %474 : vector<1x256xf32>
    %c0_350 = arith.constant 0 : index
    %c127_351 = arith.constant 127 : index
    %476 = vector.load %arg9[%c0_350, %c127_351] : memref<4x435xf32, #tpu.memory_space<vmem>>, vector<4x256xf32>
    %c23_352 = arith.constant 23 : index
    %c0_353 = arith.constant 0 : index
    %477 = vector.load %arg5[%c23_352, %c0_353] : memref<49x4xf32, #tpu.memory_space<vmem>>, vector<1x4xf32>
    %cst_354 = arith.constant dense<0.000000e+00> : vector<1x256xf32>
    %478 = tpu.matmul %477, %476, %cst_354 {dimension_numbers = #tpu.dot_dimension_numbers<[1], [0], [0], [1], [0, 0, 1, 1], [], []>} : vector<1x4xf32>, vector<4x256xf32>, vector<1x256xf32> -> vector<1x256xf32>
    %479 = arith.addf %475, %478 : vector<1x256xf32>
    %c0_355 = arith.constant 0 : index
    %c143_356 = arith.constant 143 : index
    %480 = vector.load %arg9[%c0_355, %c143_356] : memref<4x435xf32, #tpu.memory_space<vmem>>, vector<4x256xf32>
    %c30_357 = arith.constant 30 : index
    %c0_358 = arith.constant 0 : index
    %481 = vector.load %arg5[%c30_357, %c0_358] : memref<49x4xf32, #tpu.memory_space<vmem>>, vector<1x4xf32>
    %cst_359 = arith.constant dense<0.000000e+00> : vector<1x256xf32>
    %482 = tpu.matmul %481, %480, %cst_359 {dimension_numbers = #tpu.dot_dimension_numbers<[1], [0], [0], [1], [0, 0, 1, 1], [], []>} : vector<1x4xf32>, vector<4x256xf32>, vector<1x256xf32> -> vector<1x256xf32>
    %483 = arith.addf %479, %482 : vector<1x256xf32>
    %c0_360 = arith.constant 0 : index
    %c159_361 = arith.constant 159 : index
    %484 = vector.load %arg9[%c0_360, %c159_361] : memref<4x435xf32, #tpu.memory_space<vmem>>, vector<4x256xf32>
    %c37_362 = arith.constant 37 : index
    %c0_363 = arith.constant 0 : index
    %485 = vector.load %arg5[%c37_362, %c0_363] : memref<49x4xf32, #tpu.memory_space<vmem>>, vector<1x4xf32>
    %cst_364 = arith.constant dense<0.000000e+00> : vector<1x256xf32>
    %486 = tpu.matmul %485, %484, %cst_364 {dimension_numbers = #tpu.dot_dimension_numbers<[1], [0], [0], [1], [0, 0, 1, 1], [], []>} : vector<1x4xf32>, vector<4x256xf32>, vector<1x256xf32> -> vector<1x256xf32>
    %487 = arith.addf %483, %486 : vector<1x256xf32>
    %c0_365 = arith.constant 0 : index
    %c175_366 = arith.constant 175 : index
    %488 = vector.load %arg9[%c0_365, %c175_366] : memref<4x435xf32, #tpu.memory_space<vmem>>, vector<4x256xf32>
    %c44_367 = arith.constant 44 : index
    %c0_368 = arith.constant 0 : index
    %489 = vector.load %arg5[%c44_367, %c0_368] : memref<49x4xf32, #tpu.memory_space<vmem>>, vector<1x4xf32>
    %cst_369 = arith.constant dense<0.000000e+00> : vector<1x256xf32>
    %490 = tpu.matmul %489, %488, %cst_369 {dimension_numbers = #tpu.dot_dimension_numbers<[1], [0], [0], [1], [0, 0, 1, 1], [], []>} : vector<1x4xf32>, vector<4x256xf32>, vector<1x256xf32> -> vector<1x256xf32>
    %491 = arith.addf %487, %490 : vector<1x256xf32>
    %cst_370 = arith.constant 0.000000e+00 : f32
    %492 = vector.broadcast %cst_370 : f32 to vector<1x256xf32>
    %493 = arith.select %41, %491, %492 : vector<1x256xi1>, vector<1x256xf32>
    %494 = arith.addf %462, %493 : vector<1x256xf32>
    %cst_371 = arith.constant 0.000000e+00 : f32
    %495 = vector.broadcast %cst_371 : f32 to vector<1x256xf32>
    %c0_372 = arith.constant 0 : index
    %c80_373 = arith.constant 80 : index
    %496 = vector.load %arg9[%c0_372, %c80_373] : memref<4x435xf32, #tpu.memory_space<vmem>>, vector<4x256xf32>
    %c3_374 = arith.constant 3 : index
    %c0_375 = arith.constant 0 : index
    %497 = vector.load %arg5[%c3_374, %c0_375] : memref<49x4xf32, #tpu.memory_space<vmem>>, vector<1x4xf32>
    %cst_376 = arith.constant dense<0.000000e+00> : vector<1x256xf32>
    %498 = tpu.matmul %497, %496, %cst_376 {dimension_numbers = #tpu.dot_dimension_numbers<[1], [0], [0], [1], [0, 0, 1, 1], [], []>} : vector<1x4xf32>, vector<4x256xf32>, vector<1x256xf32> -> vector<1x256xf32>
    %499 = arith.addf %495, %498 : vector<1x256xf32>
    %c0_377 = arith.constant 0 : index
    %c96_378 = arith.constant 96 : index
    %500 = vector.load %arg9[%c0_377, %c96_378] : memref<4x435xf32, #tpu.memory_space<vmem>>, vector<4x256xf32>
    %c10_379 = arith.constant 10 : index
    %c0_380 = arith.constant 0 : index
    %501 = vector.load %arg5[%c10_379, %c0_380] : memref<49x4xf32, #tpu.memory_space<vmem>>, vector<1x4xf32>
    %cst_381 = arith.constant dense<0.000000e+00> : vector<1x256xf32>
    %502 = tpu.matmul %501, %500, %cst_381 {dimension_numbers = #tpu.dot_dimension_numbers<[1], [0], [0], [1], [0, 0, 1, 1], [], []>} : vector<1x4xf32>, vector<4x256xf32>, vector<1x256xf32> -> vector<1x256xf32>
    %503 = arith.addf %499, %502 : vector<1x256xf32>
    %c0_382 = arith.constant 0 : index
    %c112_383 = arith.constant 112 : index
    %504 = vector.load %arg9[%c0_382, %c112_383] : memref<4x435xf32, #tpu.memory_space<vmem>>, vector<4x256xf32>
    %c17_384 = arith.constant 17 : index
    %c0_385 = arith.constant 0 : index
    %505 = vector.load %arg5[%c17_384, %c0_385] : memref<49x4xf32, #tpu.memory_space<vmem>>, vector<1x4xf32>
    %cst_386 = arith.constant dense<0.000000e+00> : vector<1x256xf32>
    %506 = tpu.matmul %505, %504, %cst_386 {dimension_numbers = #tpu.dot_dimension_numbers<[1], [0], [0], [1], [0, 0, 1, 1], [], []>} : vector<1x4xf32>, vector<4x256xf32>, vector<1x256xf32> -> vector<1x256xf32>
    %507 = arith.addf %503, %506 : vector<1x256xf32>
    %c0_387 = arith.constant 0 : index
    %c128_388 = arith.constant 128 : index
    %508 = vector.load %arg9[%c0_387, %c128_388] : memref<4x435xf32, #tpu.memory_space<vmem>>, vector<4x256xf32>
    %c24_389 = arith.constant 24 : index
    %c0_390 = arith.constant 0 : index
    %509 = vector.load %arg5[%c24_389, %c0_390] : memref<49x4xf32, #tpu.memory_space<vmem>>, vector<1x4xf32>
    %cst_391 = arith.constant dense<0.000000e+00> : vector<1x256xf32>
    %510 = tpu.matmul %509, %508, %cst_391 {dimension_numbers = #tpu.dot_dimension_numbers<[1], [0], [0], [1], [0, 0, 1, 1], [], []>} : vector<1x4xf32>, vector<4x256xf32>, vector<1x256xf32> -> vector<1x256xf32>
    %511 = arith.addf %507, %510 : vector<1x256xf32>
    %c0_392 = arith.constant 0 : index
    %c144_393 = arith.constant 144 : index
    %512 = vector.load %arg9[%c0_392, %c144_393] : memref<4x435xf32, #tpu.memory_space<vmem>>, vector<4x256xf32>
    %c31_394 = arith.constant 31 : index
    %c0_395 = arith.constant 0 : index
    %513 = vector.load %arg5[%c31_394, %c0_395] : memref<49x4xf32, #tpu.memory_space<vmem>>, vector<1x4xf32>
    %cst_396 = arith.constant dense<0.000000e+00> : vector<1x256xf32>
    %514 = tpu.matmul %513, %512, %cst_396 {dimension_numbers = #tpu.dot_dimension_numbers<[1], [0], [0], [1], [0, 0, 1, 1], [], []>} : vector<1x4xf32>, vector<4x256xf32>, vector<1x256xf32> -> vector<1x256xf32>
    %515 = arith.addf %511, %514 : vector<1x256xf32>
    %c0_397 = arith.constant 0 : index
    %c160_398 = arith.constant 160 : index
    %516 = vector.load %arg9[%c0_397, %c160_398] : memref<4x435xf32, #tpu.memory_space<vmem>>, vector<4x256xf32>
    %c38_399 = arith.constant 38 : index
    %c0_400 = arith.constant 0 : index
    %517 = vector.load %arg5[%c38_399, %c0_400] : memref<49x4xf32, #tpu.memory_space<vmem>>, vector<1x4xf32>
    %cst_401 = arith.constant dense<0.000000e+00> : vector<1x256xf32>
    %518 = tpu.matmul %517, %516, %cst_401 {dimension_numbers = #tpu.dot_dimension_numbers<[1], [0], [0], [1], [0, 0, 1, 1], [], []>} : vector<1x4xf32>, vector<4x256xf32>, vector<1x256xf32> -> vector<1x256xf32>
    %519 = arith.addf %515, %518 : vector<1x256xf32>
    %c0_402 = arith.constant 0 : index
    %c176_403 = arith.constant 176 : index
    %520 = vector.load %arg9[%c0_402, %c176_403] : memref<4x435xf32, #tpu.memory_space<vmem>>, vector<4x256xf32>
    %c45_404 = arith.constant 45 : index
    %c0_405 = arith.constant 0 : index
    %521 = vector.load %arg5[%c45_404, %c0_405] : memref<49x4xf32, #tpu.memory_space<vmem>>, vector<1x4xf32>
    %cst_406 = arith.constant dense<0.000000e+00> : vector<1x256xf32>
    %522 = tpu.matmul %521, %520, %cst_406 {dimension_numbers = #tpu.dot_dimension_numbers<[1], [0], [0], [1], [0, 0, 1, 1], [], []>} : vector<1x4xf32>, vector<4x256xf32>, vector<1x256xf32> -> vector<1x256xf32>
    %523 = arith.addf %519, %522 : vector<1x256xf32>
    %cst_407 = arith.constant 0.000000e+00 : f32
    %524 = vector.broadcast %cst_407 : f32 to vector<1x256xf32>
    %525 = arith.select %46, %523, %524 : vector<1x256xi1>, vector<1x256xf32>
    %526 = arith.addf %494, %525 : vector<1x256xf32>
    %cst_408 = arith.constant 0.000000e+00 : f32
    %527 = vector.broadcast %cst_408 : f32 to vector<1x256xf32>
    %c0_409 = arith.constant 0 : index
    %c81_410 = arith.constant 81 : index
    %528 = vector.load %arg9[%c0_409, %c81_410] : memref<4x435xf32, #tpu.memory_space<vmem>>, vector<4x256xf32>
    %c4_411 = arith.constant 4 : index
    %c0_412 = arith.constant 0 : index
    %529 = vector.load %arg5[%c4_411, %c0_412] : memref<49x4xf32, #tpu.memory_space<vmem>>, vector<1x4xf32>
    %cst_413 = arith.constant dense<0.000000e+00> : vector<1x256xf32>
    %530 = tpu.matmul %529, %528, %cst_413 {dimension_numbers = #tpu.dot_dimension_numbers<[1], [0], [0], [1], [0, 0, 1, 1], [], []>} : vector<1x4xf32>, vector<4x256xf32>, vector<1x256xf32> -> vector<1x256xf32>
    %531 = arith.addf %527, %530 : vector<1x256xf32>
    %c0_414 = arith.constant 0 : index
    %c97_415 = arith.constant 97 : index
    %532 = vector.load %arg9[%c0_414, %c97_415] : memref<4x435xf32, #tpu.memory_space<vmem>>, vector<4x256xf32>
    %c11_416 = arith.constant 11 : index
    %c0_417 = arith.constant 0 : index
    %533 = vector.load %arg5[%c11_416, %c0_417] : memref<49x4xf32, #tpu.memory_space<vmem>>, vector<1x4xf32>
    %cst_418 = arith.constant dense<0.000000e+00> : vector<1x256xf32>
    %534 = tpu.matmul %533, %532, %cst_418 {dimension_numbers = #tpu.dot_dimension_numbers<[1], [0], [0], [1], [0, 0, 1, 1], [], []>} : vector<1x4xf32>, vector<4x256xf32>, vector<1x256xf32> -> vector<1x256xf32>
    %535 = arith.addf %531, %534 : vector<1x256xf32>
    %c0_419 = arith.constant 0 : index
    %c113_420 = arith.constant 113 : index
    %536 = vector.load %arg9[%c0_419, %c113_420] : memref<4x435xf32, #tpu.memory_space<vmem>>, vector<4x256xf32>
    %c18_421 = arith.constant 18 : index
    %c0_422 = arith.constant 0 : index
    %537 = vector.load %arg5[%c18_421, %c0_422] : memref<49x4xf32, #tpu.memory_space<vmem>>, vector<1x4xf32>
    %cst_423 = arith.constant dense<0.000000e+00> : vector<1x256xf32>
    %538 = tpu.matmul %537, %536, %cst_423 {dimension_numbers = #tpu.dot_dimension_numbers<[1], [0], [0], [1], [0, 0, 1, 1], [], []>} : vector<1x4xf32>, vector<4x256xf32>, vector<1x256xf32> -> vector<1x256xf32>
    %539 = arith.addf %535, %538 : vector<1x256xf32>
    %c0_424 = arith.constant 0 : index
    %c129_425 = arith.constant 129 : index
    %540 = vector.load %arg9[%c0_424, %c129_425] : memref<4x435xf32, #tpu.memory_space<vmem>>, vector<4x256xf32>
    %c25_426 = arith.constant 25 : index
    %c0_427 = arith.constant 0 : index
    %541 = vector.load %arg5[%c25_426, %c0_427] : memref<49x4xf32, #tpu.memory_space<vmem>>, vector<1x4xf32>
    %cst_428 = arith.constant dense<0.000000e+00> : vector<1x256xf32>
    %542 = tpu.matmul %541, %540, %cst_428 {dimension_numbers = #tpu.dot_dimension_numbers<[1], [0], [0], [1], [0, 0, 1, 1], [], []>} : vector<1x4xf32>, vector<4x256xf32>, vector<1x256xf32> -> vector<1x256xf32>
    %543 = arith.addf %539, %542 : vector<1x256xf32>
    %c0_429 = arith.constant 0 : index
    %c145_430 = arith.constant 145 : index
    %544 = vector.load %arg9[%c0_429, %c145_430] : memref<4x435xf32, #tpu.memory_space<vmem>>, vector<4x256xf32>
    %c32_431 = arith.constant 32 : index
    %c0_432 = arith.constant 0 : index
    %545 = vector.load %arg5[%c32_431, %c0_432] : memref<49x4xf32, #tpu.memory_space<vmem>>, vector<1x4xf32>
    %cst_433 = arith.constant dense<0.000000e+00> : vector<1x256xf32>
    %546 = tpu.matmul %545, %544, %cst_433 {dimension_numbers = #tpu.dot_dimension_numbers<[1], [0], [0], [1], [0, 0, 1, 1], [], []>} : vector<1x4xf32>, vector<4x256xf32>, vector<1x256xf32> -> vector<1x256xf32>
    %547 = arith.addf %543, %546 : vector<1x256xf32>
    %c0_434 = arith.constant 0 : index
    %c161_435 = arith.constant 161 : index
    %548 = vector.load %arg9[%c0_434, %c161_435] : memref<4x435xf32, #tpu.memory_space<vmem>>, vector<4x256xf32>
    %c39_436 = arith.constant 39 : index
    %c0_437 = arith.constant 0 : index
    %549 = vector.load %arg5[%c39_436, %c0_437] : memref<49x4xf32, #tpu.memory_space<vmem>>, vector<1x4xf32>
    %cst_438 = arith.constant dense<0.000000e+00> : vector<1x256xf32>
    %550 = tpu.matmul %549, %548, %cst_438 {dimension_numbers = #tpu.dot_dimension_numbers<[1], [0], [0], [1], [0, 0, 1, 1], [], []>} : vector<1x4xf32>, vector<4x256xf32>, vector<1x256xf32> -> vector<1x256xf32>
    %551 = arith.addf %547, %550 : vector<1x256xf32>
    %c0_439 = arith.constant 0 : index
    %c177_440 = arith.constant 177 : index
    %552 = vector.load %arg9[%c0_439, %c177_440] : memref<4x435xf32, #tpu.memory_space<vmem>>, vector<4x256xf32>
    %c46_441 = arith.constant 46 : index
    %c0_442 = arith.constant 0 : index
    %553 = vector.load %arg5[%c46_441, %c0_442] : memref<49x4xf32, #tpu.memory_space<vmem>>, vector<1x4xf32>
    %cst_443 = arith.constant dense<0.000000e+00> : vector<1x256xf32>
    %554 = tpu.matmul %553, %552, %cst_443 {dimension_numbers = #tpu.dot_dimension_numbers<[1], [0], [0], [1], [0, 0, 1, 1], [], []>} : vector<1x4xf32>, vector<4x256xf32>, vector<1x256xf32> -> vector<1x256xf32>
    %555 = arith.addf %551, %554 : vector<1x256xf32>
    %cst_444 = arith.constant 0.000000e+00 : f32
    %556 = vector.broadcast %cst_444 : f32 to vector<1x256xf32>
    %557 = arith.select %51, %555, %556 : vector<1x256xi1>, vector<1x256xf32>
    %558 = arith.addf %526, %557 : vector<1x256xf32>
    %cst_445 = arith.constant 0.000000e+00 : f32
    %559 = vector.broadcast %cst_445 : f32 to vector<1x256xf32>
    %c0_446 = arith.constant 0 : index
    %c82_447 = arith.constant 82 : index
    %560 = vector.load %arg9[%c0_446, %c82_447] : memref<4x435xf32, #tpu.memory_space<vmem>>, vector<4x256xf32>
    %c5_448 = arith.constant 5 : index
    %c0_449 = arith.constant 0 : index
    %561 = vector.load %arg5[%c5_448, %c0_449] : memref<49x4xf32, #tpu.memory_space<vmem>>, vector<1x4xf32>
    %cst_450 = arith.constant dense<0.000000e+00> : vector<1x256xf32>
    %562 = tpu.matmul %561, %560, %cst_450 {dimension_numbers = #tpu.dot_dimension_numbers<[1], [0], [0], [1], [0, 0, 1, 1], [], []>} : vector<1x4xf32>, vector<4x256xf32>, vector<1x256xf32> -> vector<1x256xf32>
    %563 = arith.addf %559, %562 : vector<1x256xf32>
    %c0_451 = arith.constant 0 : index
    %c98_452 = arith.constant 98 : index
    %564 = vector.load %arg9[%c0_451, %c98_452] : memref<4x435xf32, #tpu.memory_space<vmem>>, vector<4x256xf32>
    %c12_453 = arith.constant 12 : index
    %c0_454 = arith.constant 0 : index
    %565 = vector.load %arg5[%c12_453, %c0_454] : memref<49x4xf32, #tpu.memory_space<vmem>>, vector<1x4xf32>
    %cst_455 = arith.constant dense<0.000000e+00> : vector<1x256xf32>
    %566 = tpu.matmul %565, %564, %cst_455 {dimension_numbers = #tpu.dot_dimension_numbers<[1], [0], [0], [1], [0, 0, 1, 1], [], []>} : vector<1x4xf32>, vector<4x256xf32>, vector<1x256xf32> -> vector<1x256xf32>
    %567 = arith.addf %563, %566 : vector<1x256xf32>
    %c0_456 = arith.constant 0 : index
    %c114_457 = arith.constant 114 : index
    %568 = vector.load %arg9[%c0_456, %c114_457] : memref<4x435xf32, #tpu.memory_space<vmem>>, vector<4x256xf32>
    %c19_458 = arith.constant 19 : index
    %c0_459 = arith.constant 0 : index
    %569 = vector.load %arg5[%c19_458, %c0_459] : memref<49x4xf32, #tpu.memory_space<vmem>>, vector<1x4xf32>
    %cst_460 = arith.constant dense<0.000000e+00> : vector<1x256xf32>
    %570 = tpu.matmul %569, %568, %cst_460 {dimension_numbers = #tpu.dot_dimension_numbers<[1], [0], [0], [1], [0, 0, 1, 1], [], []>} : vector<1x4xf32>, vector<4x256xf32>, vector<1x256xf32> -> vector<1x256xf32>
    %571 = arith.addf %567, %570 : vector<1x256xf32>
    %c0_461 = arith.constant 0 : index
    %c130_462 = arith.constant 130 : index
    %572 = vector.load %arg9[%c0_461, %c130_462] : memref<4x435xf32, #tpu.memory_space<vmem>>, vector<4x256xf32>
    %c26_463 = arith.constant 26 : index
    %c0_464 = arith.constant 0 : index
    %573 = vector.load %arg5[%c26_463, %c0_464] : memref<49x4xf32, #tpu.memory_space<vmem>>, vector<1x4xf32>
    %cst_465 = arith.constant dense<0.000000e+00> : vector<1x256xf32>
    %574 = tpu.matmul %573, %572, %cst_465 {dimension_numbers = #tpu.dot_dimension_numbers<[1], [0], [0], [1], [0, 0, 1, 1], [], []>} : vector<1x4xf32>, vector<4x256xf32>, vector<1x256xf32> -> vector<1x256xf32>
    %575 = arith.addf %571, %574 : vector<1x256xf32>
    %c0_466 = arith.constant 0 : index
    %c146_467 = arith.constant 146 : index
    %576 = vector.load %arg9[%c0_466, %c146_467] : memref<4x435xf32, #tpu.memory_space<vmem>>, vector<4x256xf32>
    %c33_468 = arith.constant 33 : index
    %c0_469 = arith.constant 0 : index
    %577 = vector.load %arg5[%c33_468, %c0_469] : memref<49x4xf32, #tpu.memory_space<vmem>>, vector<1x4xf32>
    %cst_470 = arith.constant dense<0.000000e+00> : vector<1x256xf32>
    %578 = tpu.matmul %577, %576, %cst_470 {dimension_numbers = #tpu.dot_dimension_numbers<[1], [0], [0], [1], [0, 0, 1, 1], [], []>} : vector<1x4xf32>, vector<4x256xf32>, vector<1x256xf32> -> vector<1x256xf32>
    %579 = arith.addf %575, %578 : vector<1x256xf32>
    %c0_471 = arith.constant 0 : index
    %c162_472 = arith.constant 162 : index
    %580 = vector.load %arg9[%c0_471, %c162_472] : memref<4x435xf32, #tpu.memory_space<vmem>>, vector<4x256xf32>
    %c40_473 = arith.constant 40 : index
    %c0_474 = arith.constant 0 : index
    %581 = vector.load %arg5[%c40_473, %c0_474] : memref<49x4xf32, #tpu.memory_space<vmem>>, vector<1x4xf32>
    %cst_475 = arith.constant dense<0.000000e+00> : vector<1x256xf32>
    %582 = tpu.matmul %581, %580, %cst_475 {dimension_numbers = #tpu.dot_dimension_numbers<[1], [0], [0], [1], [0, 0, 1, 1], [], []>} : vector<1x4xf32>, vector<4x256xf32>, vector<1x256xf32> -> vector<1x256xf32>
    %583 = arith.addf %579, %582 : vector<1x256xf32>
    %c0_476 = arith.constant 0 : index
    %c178_477 = arith.constant 178 : index
    %584 = vector.load %arg9[%c0_476, %c178_477] : memref<4x435xf32, #tpu.memory_space<vmem>>, vector<4x256xf32>
    %c47_478 = arith.constant 47 : index
    %c0_479 = arith.constant 0 : index
    %585 = vector.load %arg5[%c47_478, %c0_479] : memref<49x4xf32, #tpu.memory_space<vmem>>, vector<1x4xf32>
    %cst_480 = arith.constant dense<0.000000e+00> : vector<1x256xf32>
    %586 = tpu.matmul %585, %584, %cst_480 {dimension_numbers = #tpu.dot_dimension_numbers<[1], [0], [0], [1], [0, 0, 1, 1], [], []>} : vector<1x4xf32>, vector<4x256xf32>, vector<1x256xf32> -> vector<1x256xf32>
    %587 = arith.addf %583, %586 : vector<1x256xf32>
    %cst_481 = arith.constant 0.000000e+00 : f32
    %588 = vector.broadcast %cst_481 : f32 to vector<1x256xf32>
    %589 = arith.select %56, %587, %588 : vector<1x256xi1>, vector<1x256xf32>
    %590 = arith.addf %558, %589 : vector<1x256xf32>
    %cst_482 = arith.constant 0.000000e+00 : f32
    %591 = vector.broadcast %cst_482 : f32 to vector<1x256xf32>
    %c0_483 = arith.constant 0 : index
    %c83_484 = arith.constant 83 : index
    %592 = vector.load %arg9[%c0_483, %c83_484] : memref<4x435xf32, #tpu.memory_space<vmem>>, vector<4x256xf32>
    %c6_485 = arith.constant 6 : index
    %c0_486 = arith.constant 0 : index
    %593 = vector.load %arg5[%c6_485, %c0_486] : memref<49x4xf32, #tpu.memory_space<vmem>>, vector<1x4xf32>
    %cst_487 = arith.constant dense<0.000000e+00> : vector<1x256xf32>
    %594 = tpu.matmul %593, %592, %cst_487 {dimension_numbers = #tpu.dot_dimension_numbers<[1], [0], [0], [1], [0, 0, 1, 1], [], []>} : vector<1x4xf32>, vector<4x256xf32>, vector<1x256xf32> -> vector<1x256xf32>
    %595 = arith.addf %591, %594 : vector<1x256xf32>
    %c0_488 = arith.constant 0 : index
    %c99_489 = arith.constant 99 : index
    %596 = vector.load %arg9[%c0_488, %c99_489] : memref<4x435xf32, #tpu.memory_space<vmem>>, vector<4x256xf32>
    %c13_490 = arith.constant 13 : index
    %c0_491 = arith.constant 0 : index
    %597 = vector.load %arg5[%c13_490, %c0_491] : memref<49x4xf32, #tpu.memory_space<vmem>>, vector<1x4xf32>
    %cst_492 = arith.constant dense<0.000000e+00> : vector<1x256xf32>
    %598 = tpu.matmul %597, %596, %cst_492 {dimension_numbers = #tpu.dot_dimension_numbers<[1], [0], [0], [1], [0, 0, 1, 1], [], []>} : vector<1x4xf32>, vector<4x256xf32>, vector<1x256xf32> -> vector<1x256xf32>
    %599 = arith.addf %595, %598 : vector<1x256xf32>
    %c0_493 = arith.constant 0 : index
    %c115_494 = arith.constant 115 : index
    %600 = vector.load %arg9[%c0_493, %c115_494] : memref<4x435xf32, #tpu.memory_space<vmem>>, vector<4x256xf32>
    %c20_495 = arith.constant 20 : index
    %c0_496 = arith.constant 0 : index
    %601 = vector.load %arg5[%c20_495, %c0_496] : memref<49x4xf32, #tpu.memory_space<vmem>>, vector<1x4xf32>
    %cst_497 = arith.constant dense<0.000000e+00> : vector<1x256xf32>
    %602 = tpu.matmul %601, %600, %cst_497 {dimension_numbers = #tpu.dot_dimension_numbers<[1], [0], [0], [1], [0, 0, 1, 1], [], []>} : vector<1x4xf32>, vector<4x256xf32>, vector<1x256xf32> -> vector<1x256xf32>
    %603 = arith.addf %599, %602 : vector<1x256xf32>
    %c0_498 = arith.constant 0 : index
    %c131_499 = arith.constant 131 : index
    %604 = vector.load %arg9[%c0_498, %c131_499] : memref<4x435xf32, #tpu.memory_space<vmem>>, vector<4x256xf32>
    %c27_500 = arith.constant 27 : index
    %c0_501 = arith.constant 0 : index
    %605 = vector.load %arg5[%c27_500, %c0_501] : memref<49x4xf32, #tpu.memory_space<vmem>>, vector<1x4xf32>
    %cst_502 = arith.constant dense<0.000000e+00> : vector<1x256xf32>
    %606 = tpu.matmul %605, %604, %cst_502 {dimension_numbers = #tpu.dot_dimension_numbers<[1], [0], [0], [1], [0, 0, 1, 1], [], []>} : vector<1x4xf32>, vector<4x256xf32>, vector<1x256xf32> -> vector<1x256xf32>
    %607 = arith.addf %603, %606 : vector<1x256xf32>
    %c0_503 = arith.constant 0 : index
    %c147_504 = arith.constant 147 : index
    %608 = vector.load %arg9[%c0_503, %c147_504] : memref<4x435xf32, #tpu.memory_space<vmem>>, vector<4x256xf32>
    %c34_505 = arith.constant 34 : index
    %c0_506 = arith.constant 0 : index
    %609 = vector.load %arg5[%c34_505, %c0_506] : memref<49x4xf32, #tpu.memory_space<vmem>>, vector<1x4xf32>
    %cst_507 = arith.constant dense<0.000000e+00> : vector<1x256xf32>
    %610 = tpu.matmul %609, %608, %cst_507 {dimension_numbers = #tpu.dot_dimension_numbers<[1], [0], [0], [1], [0, 0, 1, 1], [], []>} : vector<1x4xf32>, vector<4x256xf32>, vector<1x256xf32> -> vector<1x256xf32>
    %611 = arith.addf %607, %610 : vector<1x256xf32>
    %c0_508 = arith.constant 0 : index
    %c163_509 = arith.constant 163 : index
    %612 = vector.load %arg9[%c0_508, %c163_509] : memref<4x435xf32, #tpu.memory_space<vmem>>, vector<4x256xf32>
    %c41_510 = arith.constant 41 : index
    %c0_511 = arith.constant 0 : index
    %613 = vector.load %arg5[%c41_510, %c0_511] : memref<49x4xf32, #tpu.memory_space<vmem>>, vector<1x4xf32>
    %cst_512 = arith.constant dense<0.000000e+00> : vector<1x256xf32>
    %614 = tpu.matmul %613, %612, %cst_512 {dimension_numbers = #tpu.dot_dimension_numbers<[1], [0], [0], [1], [0, 0, 1, 1], [], []>} : vector<1x4xf32>, vector<4x256xf32>, vector<1x256xf32> -> vector<1x256xf32>
    %615 = arith.addf %611, %614 : vector<1x256xf32>
    %c0_513 = arith.constant 0 : index
    %c179_514 = arith.constant 179 : index
    %616 = vector.load %arg9[%c0_513, %c179_514] : memref<4x435xf32, #tpu.memory_space<vmem>>, vector<4x256xf32>
    %c48_515 = arith.constant 48 : index
    %c0_516 = arith.constant 0 : index
    %617 = vector.load %arg5[%c48_515, %c0_516] : memref<49x4xf32, #tpu.memory_space<vmem>>, vector<1x4xf32>
    %cst_517 = arith.constant dense<0.000000e+00> : vector<1x256xf32>
    %618 = tpu.matmul %617, %616, %cst_517 {dimension_numbers = #tpu.dot_dimension_numbers<[1], [0], [0], [1], [0, 0, 1, 1], [], []>} : vector<1x4xf32>, vector<4x256xf32>, vector<1x256xf32> -> vector<1x256xf32>
    %619 = arith.addf %615, %618 : vector<1x256xf32>
    %cst_518 = arith.constant 0.000000e+00 : f32
    %620 = vector.broadcast %cst_518 : f32 to vector<1x256xf32>
    %621 = arith.select %61, %619, %620 : vector<1x256xi1>, vector<1x256xf32>
    %622 = arith.addf %590, %621 : vector<1x256xf32>
    %c0_519 = arith.constant 0 : index
    %623 = memref.load %arg6[%c0_519] : memref<1xf32, #tpu.memory_space<smem>>
    %624 = vector.broadcast %623 : f32 to vector<1x256xf32>
    %625 = arith.addf %622, %624 : vector<1x256xf32>
    %cst_520 = arith.constant 5.000000e-01 : f32
    %626 = vector.broadcast %cst_520 : f32 to vector<1x256xf32>
    %627 = arith.mulf %626, %625 : vector<1x256xf32>
    %628 = math.tanh %627 : vector<1x256xf32>
    %cst_521 = arith.constant 1.000000e+00 : f32
    %629 = vector.broadcast %cst_521 : f32 to vector<1x256xf32>
    %630 = arith.addf %628, %629 : vector<1x256xf32>
    %cst_522 = arith.constant 5.000000e-01 : f32
    %631 = vector.broadcast %cst_522 : f32 to vector<1x256xf32>
    %632 = arith.mulf %631, %630 : vector<1x256xf32>
    %633 = vector.broadcast %385 : vector<16x1xf32> to vector<16x256xf32>
    %634 = vector.broadcast %632 : vector<1x256xf32> to vector<16x256xf32>
    %635 = arith.addf %633, %634 : vector<16x256xf32>
    %cst_523 = arith.constant 1.000000e+00 : f32
    %636 = vector.broadcast %cst_523 : f32 to vector<16x256xf32>
    %637 = arith.addf %635, %636 : vector<16x256xf32>
    %cst_524 = arith.constant 4.000000e+00 : f32
    %638 = vector.broadcast %cst_524 : f32 to vector<16x256xf32>
    %639 = arith.mulf %638, %357 : vector<16x256xf32>
    %640 = arith.subf %355, %357 : vector<16x256xf32>
    %641 = arith.mulf %637, %640 : vector<16x256xf32>
    %642 = arith.addf %639, %641 : vector<16x256xf32>
    %c1_525 = arith.constant 1 : index
    %c0_526 = arith.constant 0 : index
    %c0_527 = arith.constant 0 : index
    %643 = vector.load %arg7[%c1_525, %c0_526, %c0_527] : memref<2x16x256xf32, #tpu.memory_space<vmem>>, vector<1x16x256xf32>
    %644 = vector.shape_cast %643 : vector<1x16x256xf32> to vector<16x256xf32>
    %645 = vector.shape_cast %642 : vector<16x256xf32> to vector<1x16x256xf32>
    tpu.vector_store %arg7[%c1_525, %c0_526, %c0_527], %645 {strides = array<i32>} : memref<2x16x256xf32, #tpu.memory_space<vmem>>, vector<1x16x256xf32>,
    return
  }
  func.func @transform_0(%arg0: i32) -> (i32, i32, i32) {
    %c0_i32 = arith.constant 0 : i32
    %c0_i32_0 = arith.constant 0 : i32
    %c0_i32_1 = arith.constant 0 : i32
    return %arg0, %c0_i32, %c0_i32_0 : i32, i32, i32
  }
  func.func @transform_1(%arg0: i32) -> (i32, i32, i32) {
    %c0_i32 = arith.constant 0 : i32
    %c0_i32_0 = arith.constant 0 : i32
    %c0_i32_1 = arith.constant 0 : i32
    return %arg0, %c0_i32, %c0_i32_0 : i32, i32, i32
  }
  func.func @transform_2(%arg0: i32) -> (i32, i32) {
    %c0_i32 = arith.constant 0 : i32
    %c0_i32_0 = arith.constant 0 : i32
    %c0_i32_1 = arith.constant 0 : i32
    return %c0_i32, %c0_i32_0 : i32, i32
  }
  func.func @transform_3(%arg0: i32) -> i32 {
    %c0_i32 = arith.constant 0 : i32
    %c0_i32_0 = arith.constant 0 : i32
    return %c0_i32 : i32
  }
  func.func @transform_4(%arg0: i32) -> (i32, i32) {
    %c0_i32 = arith.constant 0 : i32
    %c0_i32_0 = arith.constant 0 : i32
    %c0_i32_1 = arith.constant 0 : i32
    return %c0_i32, %c0_i32_0 : i32, i32
  }
  func.func @transform_5(%arg0: i32) -> i32 {
    %c0_i32 = arith.constant 0 : i32
    %c0_i32_0 = arith.constant 0 : i32
    return %c0_i32 : i32
  }
  func.func @transform_6(%arg0: i32) -> (i32, i32, i32) {
    %c0_i32 = arith.constant 0 : i32
    %c0_i32_0 = arith.constant 0 : i32
    %c0_i32_1 = arith.constant 0 : i32
    return %arg0, %c0_i32, %c0_i32_0 : i32, i32, i32
  }
}

</mosaic_0001>

<bundles_post_ra>
// kernel: tpu_custom_call.1
= control target key start
LH: loop header
LB: loop body
LE: loop exit
PB: predicated region body
PF: predicated region fallthrough
CT: control target
= control target key end

     0   :  { %s14415_s0 = inlined_call_operand.hbm [shape: f32[4,16,256], index: 0, kind: input, shape index: {}]   ;;  %s14416_s1 = inlined_call_operand.hbm [shape: f32[4,16,256], index: 1, kind: input, shape index: {}]   ;;  %s14417_s2 = inlined_call_operand.vmem [shape: f32[12,1], index: 2, kind: input, shape index: {}]   ;;  %s14418_s3 = inlined_call_operand.<no memory space> [shape: f32[1], index: 3, kind: input, shape index: {}]   ;;  %s14419_s4 = inlined_call_operand.vmem [shape: f32[49,4], index: 4, kind: input, shape index: {}]   ;;  %s14420_s5 = inlined_call_operand.<no memory space> [shape: f32[1], index: 5, kind: input, shape index: {}]   ;;  %s14421_s6 = inlined_call_operand.hbm [shape: f32[4,16,256], index: 6, kind: output, shape index: {}]  }
   0x1   :  { %14605 = sst [smem:[#allocation28_spill]] %s14415_s0 }
   0x2   :  { %14606 = sst [smem:[#allocation29_spill]] %s14416_s1 }
   0x3   :  { %14607 = sst [smem:[#allocation30_spill]] %s14417_s2 }
   0x4   :  { %14608 = sst [smem:[#allocation31_spill]] %s14419_s4 }
   0x5   :  { %14609 = sst [smem:[#allocation32_spill]] %s14421_s6 }
   0x6   :  { %11 = sst [smem:[#allocation4]] %s14418_s3 }
   0x7   :  { %12 = sst [smem:[#allocation5]] %s14420_s5 }
   0x8   :  { %13 = vsyncpa [#allocation7], 0 }
   0x9   :  { %15 = vsyncpa [#allocation7 + $0x1], 0 }
   0xa   :  { %16 = vsyncpa [#allocation10], 0 }
   0xb   :  { %18 = vsyncpa [#allocation10 + $0x1], 0 }
   0xc   :  { %19 = vsyncpa [#allocation8], 0 }
   0xd   :  { %21 = vsyncpa [#allocation8 + $0x1], 0  ;;  %s11968_s25 = smov 0   ;;  %s11970_s26 = smov 0  }
   0xe   :  { %s11972_s27 = smov 0   ;;  %s11974_s28 = smov 0  }
   0xf LB: > { %14610 = sst [smem:[#allocation15_spill]] %s11852_s25  ;;  %s11989_s3 = sadd.s32 4294967295, %s11864_s28   ;;  %s11864_s28 = sphi %s11974_s28, %s14893_s28   ;;  %s11860_s27 = sphi %s11972_s27, %s14896_s27   ;;  %s11856_s26 = sphi %s11970_s26, %s14895_s26   ;;  %s11852_s25 = sphi %s11968_s25, %s14894_s25  }
  0x10   : > { %14611 = sst [smem:[#allocation16_spill]] %s11856_s26  ;;  %s10808_s5 = sadd.s32 4294967294, %s11864_s28  }
  0x11   : > { %14612 = sst [smem:[#allocation17_spill]] %s11860_s27  ;;  %s11993_s29 = sadd.s32 1, %s11864_s28  }
  0x12   : > { %14613 = sst [smem:[#allocation18_spill]] %s11864_s28  ;;  %s34_s30 = sadd.s32 1, %s11860_s27 }
  0x13   : > { %14614 = sst [smem:[#allocation19_spill]] %s11989_s3  ;;  %s31_s7 = ssub.s32 %s11864_s28, %s11993_s29 }
  0x14   : > { %14615 = sst [smem:[#allocation20_spill]] %s11993_s29  ;;  %p41_p0 = scmp.ne.s32.totalorder %s11860_s27, %s11856_s26 }
  0x15   : > { %p32_p1 = scmp.eq.s32.totalorder %s31_s7, 0  ;;  %p42_p2 = scmp.eq.s32.totalorder %s11864_s28, 0 }
  0x16   : > { %p47_p3 = scmp.ne.s32.totalorder %s11856_s26, %s11852_s25  ;;  %p48_p4 = scmp.eq.s32.totalorder %s11989_s3, 0 }
  0x17   : > { %s12005_s8 = scalar_select %p32_p1, %s11860_s27, %s34_s30  }
  0x18   : > { %p12007_p5 = por %p42_p2, %p41_p0  ;;  %p12011_p6 = por %p48_p4, %p47_p3 }
  0x19   : > { %14616 = sst [smem:[#allocation21_spill]] %s12005_s8  ;;  %p181_p7 = scmp.eq.s32.totalorder %s11989_s3, 1 }
  0x1a   : > { %s14618_s10 = scalar_select %p12011_p6, 1, 0 }
  0x1b   : > { %p187_p8 = scmp.eq.s32.totalorder %s10808_s5, 1  ;;  %p11602_p10 = scmp.lt.s32.totalorder %s11864_s28, 2 }
  0x1c   : > { %p12018_p11 = por %p181_p7, %p41_p0  ;;  %s12027_s13 = sand.u32 1, %s11860_s27  }
  0x1d   : > { %p12022_p12 = por %p187_p8, %p47_p3  ;;  %s11146_s14 = sshll.u32 %s11864_s28, 10 }
  0x1e   : > { %s14619_s11 = scalar_select %p12018_p11, 1, 0 }
  0x1f   : > { %s14621_s12 = scalar_select %p12022_p12, 1, 0 }
  0x20   : > { %14620 = sst [smem:[#allocation22_spill]] %s14619_s11  ;;  %s10811_s15 = sshll.u32 %s12027_s13, 6 }
  0x21   : > { %14622 = sst [smem:[#allocation23_spill]] %s14621_s12  ;;  %s14623_s0 = sld [smem:[#allocation28_spill]] }
  0x22   : > { %s223_s19 = scalar_lea.vmem [#allocation6], %s10811_s15  ;;  %p12042_p13 = pnand %p11602_p10, %p12007_p5 }
  0x23   : > { %s231_s20 = sshll.u32 %s223_s19, 4  ;;  %s220_s22 = scalar_lea.sflag [#allocation7], %s12027_s13  ;;  %s12046_s20 = int_to_ptr.vmem [resolvable:$true] %s231_s20 }
  0x24   : > { %p11736_p1 = pneg %p12042_p13 }
  0x27   : > { %s12036_s18 = scalar_lea.hbm %s14623_s0, %s11146_s14  ;;  %s11739_s30 = scalar_lea.hbm %s14623_s0, 2048 }
  0x28   : > { %s11734_s23 = scalar_lea.hbm %s12036_s18, 1024  ;;  %p11740_p4 = scmp.lt.u32.totalorder %s12036_s18, %s14623_s0 }
  0x29   : > { %p11735_p0 = scmp.ne.s32.totalorder %s12036_s18, %s11734_s23  ;;  %p11741_p5 = scmp.lt.u32.totalorder %s11739_s30, %s11734_s23 }
  0x2a   : > { %p11743_p8 = scmp.lt.u32.totalorder %s11734_s23, %s12036_s18 }
  0x2b   : > { %p11737_p2 = pnand %p11736_p1, %p11735_p0  ;;  %p11742_p7 = por %p11741_p5, %p11740_p4 }
  0x2d   : > { %p11738_p3 = pneg %p11737_p2  ;;  %p11744_p10 = por %p11743_p8, %p11742_p7 }
  0x2f   : > { %p11745_p9 = pnand %p11744_p10, %p11738_p3 }
  0x31   : > { %11748 = shalt.err (!%p11745_p9)
}
  0x32   : > { %s11749_s16 = scalar_lea.vmem %s12046_s20, 1024  ;;  %s11866_s17 = smov [#allocation6]  }
  0x33   : > { %p11750_p0 = scmp.ne.s32.totalorder %s12046_s20, %s11749_s16  ;;  %s11754_s19 = sshll.u32 %s11866_s17, 4  ;;  %s11755_s19 = int_to_ptr.vmem [resolvable:$false] %s11754_s19 }
  0x34   : > { %s11756_s24 = scalar_lea.vmem %s11755_s19, 2048  ;;  %p11757_p11 = scmp.lt.s32.totalorder %s12046_s20, %s11755_s19 }
  0x35   : > { %p11752_p2 = pnand %p11750_p0, %p11736_p1  ;;  %p11758_p4 = scmp.lt.s32.totalorder %s11756_s24, %s11749_s16 }
  0x37   : > { %p11753_p12 = pneg %p11752_p2  ;;  %p11759_p5 = por %p11758_p4, %p11757_p11 }
  0x39   : > { %p11760_p7 = pnand %p11759_p5, %p11753_p12 }
  0x3b   : > { %11763 = shalt.err (!%p11760_p7)
}
  0x3c   : > { %s11867_s23 = smov 256   ;;  %s11868_s5 = smov 16  }
  0x3d   : > { %11594 = dma.hbm_to_vmem [thread:$0]  (!%p12042_p13), %s12036_s18, 1024, %s12046_s20, %s220_s22, %s11867_s23, %s11867_s23, %s11868_s5  }
  0x3e   : > { %p10819_p9 = scmp.ge.s32.totalorder %s11864_s28, 1  ;;  %p261_p11 = scmp.lt.s32.totalorder %s11864_s28, 3 }
  0x3f   : > { %s14626_s1 = sld [smem:[#allocation29_spill]]  ;;  %s245_s17 = scalar_lea.vmem [#allocation9], %s10811_s15 }
  0x40   : > { %p12081_p12 = pnand %p10819_p9, %p261_p11  ;;  %s253_s19 = sshll.u32 %s245_s17, 4  ;;  %s12094_s19 = int_to_ptr.vmem [resolvable:$true] %s253_s19 }
  0x41   : > { %s242_s18 = scalar_lea.sflag [#allocation10], %s12027_s13 }
  0x45   : > { %s12090_s16 = scalar_lea.hbm %s14626_s1, %s11146_s14  ;;  %s11769_s14 = scalar_lea.hbm %s14626_s1, 2048 }
  0x46   : > { %s11764_s20 = scalar_lea.hbm %s12090_s16, 1024  ;;  %p11770_p0 = scmp.lt.u32.totalorder %s12090_s16, %s14626_s1 }
  0x47   : > { %p11765_p3 = scmp.ne.s32.totalorder %s12090_s16, %s11764_s20  ;;  %p11771_p2 = scmp.lt.u32.totalorder %s11769_s14, %s11764_s20 }
  0x48   : > { %p11773_p5 = scmp.lt.u32.totalorder %s11764_s20, %s12090_s16 }
  0x49   : > { %p11767_p8 = pnand %p11765_p3, %p11736_p1  ;;  %p11772_p4 = por %p11771_p2, %p11770_p0 }
  0x4b   : > { %p11768_p10 = pneg %p11767_p8  ;;  %p11774_p7 = por %p11773_p5, %p11772_p4 }
  0x4d   : > { %p11775_p9 = pnand %p11774_p7, %p11768_p10 }
  0x4f   : > { %11778 = shalt.err (!%p11775_p9)
}
  0x50   : > { %s11779_s15 = scalar_lea.vmem %s12094_s19, 1024  ;;  %s11869_s17 = smov [#allocation9]  }
  0x51   : > { %p11780_p11 = scmp.ne.s32.totalorder %s12094_s19, %s11779_s15  ;;  %s11784_s22 = sshll.u32 %s11869_s17, 4  ;;  %s11785_s22 = int_to_ptr.vmem [resolvable:$false] %s11784_s22 }
  0x52   : > { %s11786_s24 = scalar_lea.vmem %s11785_s22, 2048  ;;  %p11787_p6 = scmp.lt.s32.totalorder %s12094_s19, %s11785_s22 }
  0x53   : > { %p11782_p3 = pnand %p11780_p11, %p11736_p1  ;;  %p11788_p0 = scmp.lt.s32.totalorder %s11786_s24, %s11779_s15 }
  0x55   : > { %p11783_p8 = pneg %p11782_p3  ;;  %p11789_p2 = por %p11788_p0, %p11787_p6 }
  0x57   : > { %p11790_p4 = pnand %p11789_p2, %p11783_p8 }
  0x59   : > { %11793 = shalt.err (!%p11790_p4)
}
  0x5a   : > { %11597 = dma.hbm_to_vmem [thread:$0]  (!%p12042_p13), %s12090_s16, 1024, %s12094_s19, %s242_s18, %s11867_s23, %s11867_s23, %s11868_s5  }
  0x5b   : > { %265 = sbr.rel (%p12081_p12) target bundleno = 2579 (0xa13), region = 44 }
  0x62   : > { %s12128_s20 = sand.u32 1, %s11856_s26   ;;  %p14630_p6 = scmp.ne.s32.totalorder %s14618_s10, 0 }
  0x63   : > { %14627 = sst [smem:[#allocation24_spill]] %s12128_s20  ;;  %s12131_s14 = sshll.u32 %s12128_s20, 6 }
  0x64   : > { %14628 = sst [smem:[#allocation25_spill]] %s12131_s14  ;;  %s268_s21 = scalar_lea.sflag [#allocation7], %s12128_s20 }
  0x65   : > { %s12135_s7 = scalar_lea.vmem [#allocation6], %s12131_s14 }
  0x66   : > { %14629 = sst [smem:[#allocation26_spill]] %s12135_s7 }
  0x67   : > { %11839 = dma.done.wait (%p14630_p6), %s268_s21, 1024  }
  0x68   : > { %11841 = vsyncadd (%p14630_p6), %s268_s21, 4294966272  ;;  %s277_s13 = scalar_lea.sflag [#allocation10], %s12128_s20  ;;  %s12143_s23 = scalar_lea.vmem [#allocation9], %s12131_s14 }
  0x69   : > { %14631 = sst [smem:[#allocation27_spill]] %s12143_s23 }
  0x6a   : > { %11843 = dma.done.wait (%p14630_p6), %s277_s13, 1024  }
  0x6b   : > { %11845 = vsyncadd (%p14630_p6), %s277_s13, 4294966272  ;;  %v11870_v0 = vmov 1.0|1.0   ;;  %v12159_v1 = vld [vmem:[%s12143_s23 + $0x8] sm:$0xff]  ;;  %v12162_v2 = vld [vmem:[%s12143_s23] sm:$0xff]  ;;  %vm317_vm0 = vcmask 24576  }
  0x6c   : > { %11341 = vmatprep.subr.bf16.mxu1 %v11870_v0  ;;  %11325 = vmatprep.subr.bf16.mxu0 %v11870_v0  ;;  %v12167_v3 = vld [vmem:[%s12135_s7 + $0x8] sm:$0xff]  ;;  %v12170_v4 = vld [vmem:[%s12135_s7] sm:$0xff]  ;;  %v560_v5 = vmax.f32 %v12162_v2, %v12159_v1  ;;  %v12179_v7 = vld [vmem:[%s12143_s23 + $0x18] sm:$0xff]  ;;  %v14603_v13 = vmov 0.0   ;;  %s14478_s10 = smov 2   ;;  %vm574_vm1 = vcmask 7168  }
  0x6d   : > { %11342 = vmatpush3.bf16.msra.mxu1 %v11870_v0  ;;  %11326 = vmatpush3.bf16.msra.mxu0 %v11870_v0  ;;  %v554_v6 = vmax.f32 %v12170_v4, %v12167_v3  ;;  %v12184_v8 = vld [vmem:[%s12143_s23 + $0x10] sm:$0xff]  ;;  %v12188_v9 = vld [vmem:[%s12135_s7 + $0x18] sm:$0xff]  ;;  %319 = vst.msk [vmem:[#allocation2 + $0x11] sm:$0x1] %vm317_vm0, %v14603_v13  ;;  %318 = vst.msk [vmem:[#allocation2] sm:$0x1] %vm317_vm0, %v14603_v13  ;;  %v11367_v61 = vpack.c.bf16 %v12179_v7, %v12159_v1 }
  0x6e   : > { %11343 = vmatprep.subr.bf16.mxu1 %v11870_v0  ;;  %11327 = vmatprep.subr.bf16.mxu0 %v11870_v0  ;;  %v12191_v10 = vld [vmem:[%s12135_s7 + $0x10] sm:$0xff]  ;;  %v563_v12 = vmax.f32 %v12184_v8, %v12179_v7  ;;  %320 = vst [vmem:[#allocation3] sm:$0xf] %v14603_v13  ;;  %vm577_vm2 = vcmask 15360   ;;  %vm580_vm3 = vcmask 23552   ;;  %vm583_vm4 = vcmask 31744  }
  0x6f   : > { %541 = vmatprep.mubr.f32.mxu1 %v12159_v1  ;;  %464 = vmatprep.mubr.f32.mxu0 %v12167_v3  ;;  %v557_v11 = vmax.f32 %v12191_v10, %v12188_v9  ;;  %s14632_s2 = sld [smem:[#allocation30_spill]]  ;;  %vm14576_vm5 = vcmask 1043456   ;;  %vm11873_vm6 = vmmov 1   ;;  %v11363_v46 = vpack.c.bf16 %v12188_v9, %v12167_v3  ;;  %s14426_s18 = smov 4  }
  0x70   : > { %555 = vmax.xlane.f32.xlu0 %v554_v6  ;;  %561 = vmax.xlane.f32.xlu1 %v560_v5  ;;  %vm12238_vm7 = vmpackc.low %vm14576_vm5, %vm11873_vm6  ;;  %s14424_s9 = smov 8   ;;  %vm610_vm8 = vcmask 64512   ;;  %vm617_vm9 = vcmask 97280   ;;  %v11365_v58 = vpack.c.bf16 %v12191_v10, %v12170_v4  ;;  %vm711_vm10 = vcmask 130048   ;;  %s14442_s15 = smov 115  }
  0x71   : > { %11344 = vmatpush3.bf16.msra.mxu1 %v11870_v0  ;;  %11328 = vmatpush3.bf16.msra.mxu0 %v11870_v0  ;;  %v11369_v63 = vpack.c.bf16 %v12184_v8, %v12162_v2  ;;  %v11876_v5 = vmov 1.0   ;;  %vm321_vm11 = vcmask 412672   ;;  %s14440_s17 = smov 99   ;;  %s14452_s22 = smov 83   ;;  %vm895_vm12 = vcmask 1040384  }
  0x72   : > { %11345 = vmatprep.subr.bf16.mxu1 %v11870_v0  ;;  %11329 = vmatprep.subr.bf16.mxu0 %v11870_v0  ;;  %322 = vst.msk [vmem:[#allocation3 + $0xc] sm:$0xf] %vm321_vm11, %v14603_v13  ;;  %vm898_vm13 = vcmask 1041408   ;;  %vm14577_vm14 = vcmask 1042432   ;;  %s14428_s24 = smov 35   ;;  %s14430_s21 = smov 51  }
  0x73   : > { %s14434_s13 = smov 19   ;;  %s14436_s5 = smov 3   ;;  %vm14553_vm15 = vcmask 285696   ;;  %vm14532_vm0 = vcmask 416768   ;;  %vm14484_vm6 = vcmask 154624   ;;  %vm14496_vm11 = vcmask 941056  }
  0x74   : > { %558 = vmax.xlane.f32.xlu0 %v557_v11  ;;  %564 = vmax.xlane.f32.xlu1 %v563_v12  ;;  %s14446_s30 = smov 33   ;;  %s14448_s16 = smov 49  }
  0x75   : > { %11346 = vmatpush3.bf16.msra.mxu1 %v11870_v0  ;;  %11330 = vmatpush3.bf16.msra.mxu0 %v11870_v0  ;;  %v613_v37 = vld [vmem:[%s14632_s2] sm:$0xff]  ;;  %v614_v38 = vld [vmem:[%s14632_s2 + $0x8] sm:$0xf]  ;;  %s14450_s19 = smov 17   ;;  %s14638_s4 = sld [smem:[#allocation31_spill]] }
  0x76   : > { %11347 = vmatprep.subr.bf16.mxu1 %v11870_v0  ;;  %11331 = vmatprep.subr.bf16.mxu0 %v11870_v0  ;;  %v11357_v40 = vpack.c.bf16 %v614_v38, %v613_v37  ;;  %s14647_s1 = smov 125   ;;  %s14648_s8 = smov 16  }
  0x77   : > { %s14506_s0 = smov 112   ;;  %s14649_s27 = smov 109  }
  0x78   : > { %s14515_s26 = smov 96   ;;  %s14651_s29 = smov 93  }
  0x79   : > { %11348 = vmatpush3.bf16.msra.mxu1 %v11870_v0  ;;  %11332 = vmatpush3.bf16.msra.mxu0 %v11870_v0  ;;  %v1280_v6 = vld [vmem:[#allocation3 + $0xc] sm:$0xf]  ;;  %s14520_s28 = smov 77   ;;  %s14652_s12 = smov 96  }
  0x7a   : > { %11349 = vmatprep.subr.bf16.mxu1 %v11870_v0  ;;  %11333 = vmatprep.subr.bf16.mxu0 %v11870_v0  ;;  %v1375_v11 = vld [vmem:[#allocation3 + $0xc] sm:$0xf]  ;;  %s14653_s6 = smov 30   ;;  %s14533_s25 = smov 14  }
  0x7b   : > { %v1470_v12 = vld [vmem:[#allocation3 + $0xc] sm:$0xf]  ;;  %s14656_s11 = smov 4   ;;  %s14663_s20 = smov 98  }
  0x7c   : > { %s14664_s3 = smov 97   ;;  %s14665_s14 = smov 82  }
  0x7d   : > { %11350 = vmatpush3.bf16.msra.mxu1 %v11870_v0  ;;  %11334 = vmatpush3.bf16.msra.mxu0 %v11870_v0 }
  0x7e   : > { %11351 = vmatprep.subr.bf16.mxu1 %v11870_v0  ;;  %11335 = vmatprep.subr.bf16.mxu0 %v11870_v0 }
  0x81   : > { %11352 = vmatpush3.bf16.msra.mxu1 %v11870_v0  ;;  %11336 = vmatpush3.bf16.msra.mxu0 %v11870_v0 }
  0x82   : > { %11353 = vmatprep.subr.bf16.mxu1 %v11870_v0  ;;  %11337 = vmatprep.subr.bf16.mxu0 %v11870_v0 }
  0x85   : > { %11354 = vmatpush3.bf16.msra.mxu1 %v11870_v0  ;;  %11338 = vmatpush3.bf16.msra.mxu0 %v11870_v0 }
  0x86   : > { %11355 = vmatprep.subr.bf16.mxu1 %v11870_v0  ;;  %11339 = vmatprep.subr.bf16.mxu0 %v11870_v0 }
  0x89   : > { %11356 = vmatpush3.bf16.msra.mxu1 %v11870_v0  ;;  %11340 = vmatpush3.bf16.msra.mxu0 %v11870_v0 }
  0x8a   : > { %11359 = vmatprep.subr.msk.bf16.mxu1 %vm12238_vm7, %v11357_v40 }
  0x8c   : > { %542 = vmatmul.mubr.f32.vlgmr.msra.gmra.mrb[0].mxu1 %v12162_v2  ;;  %465 = vmatmul.mubr.f32.vlgmr.msra.gmra.mrb[0].mxu0 %v12170_v4 }
  0x8d   : > { %546 = vmatprep.mubr.f32.mxu1 %v12179_v7  ;;  %469 = vmatprep.mubr.f32.mxu0 %v12188_v9 }
  0x8e   : > { %11362 = vmatpush3.bf16.msk.msra.mxu1 %vm12238_vm7, %v11357_v40 }
  0x8f   : > { %11364 = vmatprep.subr.bf16.mxu1 %v11363_v46 }
  0x90   : > { %547 = vmatmul.mubr.f32.gmra.mrb[2].mxu1 %v12184_v8  ;;  %470 = vmatmul.mubr.f32.gmra.mrb[2].mxu0 %v12191_v10 }
  0x91   : > { %1655 = vmatprep.mubr.f32.mxu0 %v14603_v13 }
  0xfd   : > { %v556_v28 = vpop.xlane.xlu0 %555  ;;  %v562_v29 = vpop.xlane.xlu1 %561 }
 0x101   : > { %v559_v30 = vpop.xlane.xlu0 %558  ;;  %v565_v32 = vpop.xlane.xlu1 %564 }
 0x15f   : > { %v11221_v14 = vpop.f32.mrb[0].mxu1  ;;  %v11183_v15 = vpop.f32.mrb[0].mxu0 }
 0x160   : > { %v11222_v16 = vpop.f32.mrb[1].mxu1  ;;  %v11184_v17 = vpop.f32.mrb[1].mxu0 }
 0x161   : > { %v11223_v18 = vadd.f32 %v11222_v16, %v11221_v14  ;;  %v11185_v19 = vadd.f32 %v11184_v17, %v11183_v15  ;;  %v861_v14 = vmax.f32 %v12170_v4, %v12191_v10  ;;  %v868_v15 = vmax.f32 %v12167_v3, %v12188_v9 }
 0x162   : > { %v875_v16 = vmax.f32 %v12162_v2, %v12184_v8  ;;  %v882_v17 = vmax.f32 %v12159_v1, %v12179_v7 }
 0x163   : > { %v552_v20 = vmul.f32 0.00390625, %v11223_v18  ;;  %v11224_v21 = vpop.f32.mrb[2].mxu1  ;;  %v11186_v22 = vpop.f32.mrb[2].mxu0  ;;  %v475_v31 = vmul.f32 0.00390625, %v11185_v19  ;;  %v862_v18 = vrot.slane %v861_v14, 4  ;;  %v869_v19 = vrot.slane %v868_v15, 4 }
 0x164   : > { %v11225_v23 = vpop.f32.mrb[3].mxu1  ;;  %v11187_v24 = vpop.f32.mrb[3].mxu0 }
 0x165   : > { %v11226_v25 = vadd.f32 %v11225_v23, %v11224_v21  ;;  %568 = vrot.lane.b32.xlu0 %v552_v20, %s14478_s10  ;;  %v11188_v26 = vadd.f32 %v11187_v24, %v11186_v22  ;;  %v575_v33 = vsel %vm574_vm1, %v475_v31, %v556_v28  ;;  %v876_v20 = vrot.slane %v875_v16, 4 }
 0x166   : > { %v883_v21 = vrot.slane %v882_v17, 4  ;;  %v863_v22 = vmax.f32 %v861_v14, %v862_v18  ;;  %v870_v23 = vmax.f32 %v868_v15, %v869_v19  ;;  %v3906_v18 = vld [vmem:[#allocation3 + $0xc] sm:$0xf] }
 0x167   : > { %v553_v27 = vmul.f32 0.00390625, %v11226_v25  ;;  %v476_v34 = vmul.f32 0.00390625, %v11188_v26  ;;  %v877_v24 = vmax.f32 %v875_v16, %v876_v20  ;;  %v3811_v16 = vld [vmem:[#allocation3 + $0xc] sm:$0xf] }
 0x168   : > { %v884_v25 = vmax.f32 %v882_v17, %v883_v21  ;;  %v864_v26 = vrot.slane %v863_v22, 2 }
 0x169   : > { %570 = vrot.lane.b32.xlu1 %v553_v27, %s14478_s10  ;;  %v576_v42 = vsel %vm574_vm1, %v476_v34, %v559_v30  ;;  %v871_v27 = vrot.slane %v870_v23, 2  ;;  %v878_v4 = vrot.slane %v877_v24, 2 }
 0x16a   : > { %v885_v10 = vrot.slane %v884_v25, 2  ;;  %v865_v3 = vmax.f32 %v863_v22, %v864_v26 }
 0x16b   : > { %v872_v2 = vmax.f32 %v870_v23, %v871_v27  ;;  %v879_v8 = vmax.f32 %v877_v24, %v878_v4  ;;  %v4001_v23 = vld [vmem:[#allocation3 + $0xc] sm:$0xf] }
 0x16c   : > { %v886_v1 = vmax.f32 %v884_v25, %v885_v10  ;;  %v1939_v24 = vld [vmem:[#allocation3 + $0xc] sm:$0xf] }
 0x16d   : > { %v873_v31 = vrot.slane %v872_v2, 1  ;;  %v4096_v27 = vld [vmem:[#allocation3 + $0xc] sm:$0xf] }
 0x16f   : > { %v874_v38 = vmax.f32 %v872_v2, %v873_v31 }
 0x1d7   : > { %v569_v35 = vpop.permute.xlu0 %568 }
 0x1d8   : > { %v578_v36 = vsel %vm577_vm2, %v575_v33, %v569_v35  ;;  %v887_v33 = vrot.slane %v886_v1, 1 }
 0x1d9   : > { %v581_v39 = vsel %vm580_vm3, %v578_v36, %v562_v29  ;;  %v866_v29 = vrot.slane %v865_v3, 1 }
 0x1da   : > { %584 = vst.msk [vmem:[#allocation2 + $0x1] sm:$0xff] %vm583_vm4, %v581_v39 }
 0x1db   : > { %v571_v43 = vpop.permute.xlu1 %570  ;;  %v867_v35 = vmax.f32 %v865_v3, %v866_v29  ;;  %v2034_v3 = vld [vmem:[#allocation3 + $0xc] sm:$0xf] }
 0x1dc   : > { %v579_v44 = vsel %vm577_vm2, %v576_v42, %v571_v43 }
 0x1dd   : > { %v582_v45 = vsel %vm580_vm3, %v579_v44, %v565_v32  ;;  %v880_v32 = vrot.slane %v879_v8, 1 }
 0x1de   : > { %585 = vst.msk [vmem:[#allocation2 + $0x9] sm:$0xff] %vm583_vm4, %v582_v45  ;;  %v888_v45 = vmax.f32 %v886_v1, %v887_v33 }
 0x1df   : > { %v881_v42 = vmax.f32 %v879_v8, %v880_v32 }
 0x1e1   : > { %v588_v47 = vld [vmem:[#allocation2 + $0x1] sm:$0xff] }
 0x1e2   : > { %594 = vrot.lane.b32.xlu1 %v588_v47, %s14426_s18  ;;  %v586_v52 = vld [vmem:[#allocation2] sm:$0xff] }
 0x1e5   : > { %v590_v48 = vld [vmem:[#allocation2 + $0x2] sm:$0xff]  ;;  %v591_v50 = vld [vmem:[#allocation2 + $0xa] sm:$0xff] }
 0x1e6   : > { %v589_v49 = vld [vmem:[#allocation2 + $0x9] sm:$0xff]  ;;  %602 = vrot.lane.b32.xlu0 %v590_v48, %s14424_s9 }
 0x1e7   : > { %596 = vrot.lane.b32.xlu1 %v589_v49, %s14426_s18  ;;  %v587_v57 = vld [vmem:[#allocation2 + $0x8] sm:$0xff]  ;;  %s14456_s18 = smov 113  }
 0x1ea   : > { %1384 = vrot.lane.b32.xlu0 %v1375_v11, %s14440_s17 }
 0x1eb   : > { %604 = vrot.lane.b32.xlu1 %v591_v50, %s14424_s9  ;;  %s14432_s9 = smov 1  }
 0x1ef   : > { %1289 = vrot.lane.b32.xlu1 %v1280_v6, %s14442_s15  ;;  %v2788_v6 = vld [vmem:[#allocation3 + $0xc] sm:$0xf] }
 0x1f3   : > { %1479 = vrot.lane.b32.xlu1 %v1470_v12, %s14452_s22 }
 0x254   : > { %v595_v51 = vpop.permute.xlu1 %594 }
 0x255   : > { %v608_v53 = vsel %vm583_vm4, %v586_v52, %v595_v51 }
 0x258   : > { %v603_v54 = vpop.permute.xlu0 %602 }
 0x259   : > { %v597_v55 = vpop.permute.xlu1 %596  ;;  %v611_v56 = vsel %vm610_vm8, %v608_v53, %v603_v54 }
 0x25a   : > { %11315 = vmatprep.mubr.msk.f32.mxu1 %vm617_vm9, %v611_v56  ;;  %v609_v59 = vsel %vm583_vm4, %v587_v57, %v597_v55 }
 0x25c   : > { %v12402_v21 = vpop.permute.xlu0 %1384 }
 0x25d   : > { %v605_v60 = vpop.permute.xlu1 %604 }
 0x25e   : > { %v612_v62 = vsel %vm610_vm8, %v609_v59, %v605_v60 }
 0x25f   : > { %11316 = vmatmul.mubr.msk.f32.vlgmr.msra.gmra.mrb[4].mxu1 %vm617_vm9, %v612_v62  ;;  %v2693_v62 = vld [vmem:[#allocation3 + $0xc] sm:$0xf] }
 0x260   : > { %11366 = vmatpush1.bf16.msra.mxu1 %v11365_v58  ;;  %779 = vmatprep.mubr.f32.mxu1 %v14603_v13 }
 0x261   : > { %11368 = vmatprep.subr.bf16.mxu1 %v11367_v61  ;;  %v12392_v20 = vpop.permute.xlu1 %1289 }
 0x263   : > { %10826 = vmatmul.mubr.msk.f32.vlgmr.msra.gmra.mrb[6].mxu1 %vm711_vm10, %v11876_v5 }
 0x264   : > { %11370 = vmatpush1.bf16.msra.mxu1 %v11369_v63  ;;  %852 = vmatprep.mubr.f32.mxu1 %v14603_v13  ;;  %v2598_v63 = vld [vmem:[#allocation3 + $0xc] sm:$0xf] }
 0x265   : > { %v12404_v22 = vpop.permute.xlu1 %1479 }
 0x267   : > { %10827 = vmatmul.mubr.msk.f32.vlgmr.msra.gmra.mrb[8].mxu1 %vm711_vm10, %v11876_v5 }
 0x268   : > { %996 = vmatprep.mubr.f32.mxu1 %v14603_v13 }
 0x332   : > { %v12287_v28 = vpop.f32.mrb[4].mxu1 }
 0x333   : > { %v12289_v9 = vpop.f32.mrb[5].mxu1 }
 0x336   : > { %v781_v7 = vpop.f32.mrb[6].mxu1 }
 0x337   : > { %v783_v30 = vpop.f32.mrb[7].mxu1  ;;  %v786_v34 = vmul.f32 0.0625, %v781_v7 }
 0x338   : > { %v787_v37 = vmul.f32 0.0625, %v783_v30 }
 0x339   : > { %v896_v46 = vsel %vm895_vm12, %v786_v34, %v867_v35 }
 0x33a   : > { %v854_v36 = vpop.f32.mrb[8].mxu1  ;;  %v897_v48 = vsel %vm895_vm12, %v787_v37, %v874_v38 }
 0x33b   : > { %v859_v39 = vmul.f32 0.0625, %v854_v36  ;;  %v856_v40 = vpop.f32.mrb[9].mxu1  ;;  %v2129_v36 = vld [vmem:[#allocation3 + $0xc] sm:$0xf] }
 0x33c   : > { %v860_v43 = vmul.f32 0.0625, %v856_v40 }
 0x33d   : > { %v891_v44 = vrot.slane %v859_v39, 6 }
 0x33e   : > { %v892_v47 = vrot.slane %v860_v43, 6 }
 0x33f   : > { %v899_v49 = vsel %vm898_vm13, %v896_v46, %v891_v44 }
 0x340   : > { %v902_v50 = vsel %vm14577_vm14, %v899_v49, %v881_v42  ;;  %v900_v51 = vsel %vm898_vm13, %v897_v48, %v892_v47  ;;  %v912_v42 = vld [vmem:[%s14638_s4 + $0x7] sm:$0x1]  ;;  %v911_v49 = vld [vmem:[%s14638_s4] sm:$0x1] }
 0x341   : > { %v903_v52 = vsel %vm14577_vm14, %v900_v51, %v888_v45 }
 0x342   : > { %v12297_v53 = vcombine.low %v902_v50, %v903_v52  ;;  %v12354_v12 = vcombine.low %v903_v52, %v903_v52 }
 0x344   : > { %908 = vst [vmem:[#allocation3 + $0x4] sm:$0xff] %v12297_v53 }
 0x34b   : > { %v910_v54 = vld [vmem:[#allocation3 + $0x8] sm:$0xf]  ;;  %v12300_v55 = vld [vmem:[#allocation3] sm:$0xff] }
 0x34c   : > { %920 = vrot.lane.b32.xlu1 %v910_v54, %s14428_s24  ;;  %916 = vrot.lane.b32.xlu0 %v12300_v55, %s14428_s24  ;;  %v1091_v56 = vld [vmem:[#allocation3 + $0x8] sm:$0xf]  ;;  %v12326_v59 = vcombine.high %v12300_v55, %v12300_v55 }
 0x34d   : > { %v1186_v57 = vld [vmem:[#allocation3 + $0x8] sm:$0xf] }
 0x34e   : > { %v2228_v58 = vld [vmem:[#allocation3 + $0x8] sm:$0xf] }
 0x34f   : > { %v2504_v60 = vld [vmem:[#allocation3 + $0x8] sm:$0xf] }
 0x350   : > { %1003 = vrot.lane.b32.xlu1 %v12300_v55, %s14430_s21  ;;  %1007 = vrot.lane.b32.xlu0 %v910_v54, %s14430_s21  ;;  %v2409_v61 = vld [vmem:[#allocation3 + $0x8] sm:$0xf] }
 0x351   : > { %v3535_v11 = vld [vmem:[#allocation3 + $0x8] sm:$0xf] }
 0x352   : > { %v1569_v14 = vld [vmem:[#allocation3 + $0x8] sm:$0xf] }
 0x353   : > { %v3716_v15 = vld [vmem:[#allocation3 + $0x8] sm:$0xf] }
 0x354   : > { %1100 = vrot.lane.b32.xlu1 %v1091_v56, %s14434_s13  ;;  %1096 = vrot.lane.b32.xlu0 %v12300_v55, %s14434_s13  ;;  %v1750_v17 = vld [vmem:[#allocation3 + $0x8] sm:$0xf] }
 0x355   : > { %v1845_v19 = vld [vmem:[#allocation3 + $0x8] sm:$0xf] }
 0x356   : > { %v4855_v33 = vld [vmem:[#allocation3 + $0x8] sm:$0xf] }
 0x358   : > { %1191 = vrot.lane.b32.xlu1 %v12300_v55, %s14436_s5  ;;  %1195 = vrot.lane.b32.xlu0 %v1186_v57, %s14436_s5  ;;  %v2887_v57 = vld [vmem:[#allocation3 + $0x8] sm:$0xf] }
 0x35c   : > { %1380 = vrot.lane.b32.xlu1 %v12297_v53, %s14440_s17  ;;  %1285 = vrot.lane.b32.xlu0 %v12297_v53, %s14442_s15 }
 0x360   : > { %2234 = vrot.lane.b32.xlu1 %v12300_v55, %s14446_s30  ;;  %1475 = vrot.lane.b32.xlu0 %v12297_v53, %s14452_s22 }
 0x364   : > { %2325 = vrot.lane.b32.xlu1 %v2228_v58, %s14448_s16  ;;  %2238 = vrot.lane.b32.xlu0 %v2228_v58, %s14446_s30 }
 0x368   : > { %2414 = vrot.lane.b32.xlu1 %v12300_v55, %s14450_s19  ;;  %918 = vrot.lane.b32.xlu0 %v12326_v59, %s14428_s24  ;;  %s14460_s24 = smov 97  }
 0x36c   : > { %1005 = vrot.lane.b32.xlu1 %v12326_v59, %s14430_s21  ;;  %2321 = vrot.lane.b32.xlu0 %v12300_v55, %s14448_s16  ;;  %s14438_s21 = smov 81  }
 0x370   : > { %2513 = vrot.lane.b32.xlu1 %v2504_v60, %s14432_s9  ;;  %2418 = vrot.lane.b32.xlu0 %v2409_v61, %s14450_s19  ;;  %v1092_v60 = vld [vmem:[%s14638_s4 + $0xe] sm:$0x1] }
 0x374   : > { %2603 = vrot.lane.b32.xlu1 %v12297_v53, %s14456_s18  ;;  %2509 = vrot.lane.b32.xlu0 %v12300_v55, %s14432_s9  ;;  %s14464_s9 = smov 31  }
 0x378   : > { %2702 = vrot.lane.b32.xlu1 %v2693_v62, %s14460_s24  ;;  %1098 = vrot.lane.b32.xlu0 %v12326_v59, %s14434_s13  ;;  %s14462_s13 = smov 34  }
 0x37c   : > { %1193 = vrot.lane.b32.xlu1 %v12326_v59, %s14436_s5  ;;  %2607 = vrot.lane.b32.xlu0 %v2598_v63, %s14456_s18  ;;  %s14444_s5 = smov 47  }
 0x380   : > { %2793 = vrot.lane.b32.xlu1 %v12297_v53, %s14438_s21  ;;  %2698 = vrot.lane.b32.xlu0 %v12297_v53, %s14460_s24 }
 0x384   : > { %3545 = vrot.lane.b32.xlu1 %v3535_v11, %s14464_s9  ;;  %2797 = vrot.lane.b32.xlu0 %v2788_v6, %s14438_s21  ;;  %s14466_s21 = smov 50   ;;  %v5036_v6 = vld [vmem:[#allocation3 + $0x8] sm:$0xf] }
 0x388   : > { %1575 = vrot.lane.b32.xlu1 %v12300_v55, %s14462_s13  ;;  %1287 = vrot.lane.b32.xlu0 %v12354_v12, %s14442_s15  ;;  %s14468_s15 = smov 18  }
 0x38c   : > { %1382 = vrot.lane.b32.xlu1 %v12354_v12, %s14440_s17  ;;  %3541 = vrot.lane.b32.xlu0 %v12300_v55, %s14464_s9  ;;  %s14474_s17 = smov 15  }
 0x390   : > { %3632 = vrot.lane.b32.xlu1 %v3535_v11, %s14444_s5  ;;  %1579 = vrot.lane.b32.xlu0 %v1569_v14, %s14462_s13 }
 0x394   : > { %1662 = vrot.lane.b32.xlu1 %v12300_v55, %s14466_s21  ;;  %3628 = vrot.lane.b32.xlu0 %v12300_v55, %s14444_s5  ;;  %s14454_s5 = smov 127  }
 0x398   : > { %2236 = vrot.lane.b32.xlu1 %v12326_v59, %s14446_s30  ;;  %1477 = vrot.lane.b32.xlu0 %v12354_v12, %s14452_s22  ;;  %s14458_s30 = smov 111   ;;  %s14485_s22 = smov 95  }
 0x39c   : > { %3725 = vrot.lane.b32.xlu1 %v3716_v15, %s14474_s17  ;;  %1666 = vrot.lane.b32.xlu0 %v1569_v14, %s14466_s21 }
 0x3a0   : > { %1755 = vrot.lane.b32.xlu1 %v12300_v55, %s14468_s15  ;;  %3721 = vrot.lane.b32.xlu0 %v12300_v55, %s14474_s17 }
 0x3a4   : > { %3820 = vrot.lane.b32.xlu1 %v3811_v16, %s14454_s5  ;;  %2323 = vrot.lane.b32.xlu0 %v12326_v59, %s14448_s16  ;;  %s14476_s16 = smov 114   ;;  %v1187_v16 = vld [vmem:[%s14638_s4 + $0x15] sm:$0x1] }
 0x3a8   : > { %2416 = vrot.lane.b32.xlu1 %v12326_v59, %s14450_s19  ;;  %1759 = vrot.lane.b32.xlu0 %v1750_v17, %s14468_s15  ;;  %s14635_s19 = smov 1  }
 0x3ac   : > { %1850 = vrot.lane.b32.xlu1 %v12300_v55, %s14478_s10  ;;  %3816 = vrot.lane.b32.xlu0 %v12297_v53, %s14454_s5  ;;  %s14487_s5 = smov 98  }
 0x3b0   : > { %3915 = vrot.lane.b32.xlu1 %v3906_v18, %s14458_s30  ;;  %1854 = vrot.lane.b32.xlu0 %v1845_v19, %s14478_s10 }
 0x3b4   : > { %1944 = vrot.lane.b32.xlu1 %v12297_v53, %s14476_s16  ;;  %2511 = vrot.lane.b32.xlu0 %v12326_v59, %s14635_s19 }
 0x3b8   : > { %2605 = vrot.lane.b32.xlu1 %v12354_v12, %s14456_s18  ;;  %3911 = vrot.lane.b32.xlu0 %v12297_v53, %s14458_s30  ;;  %s14470_s18 = smov 79   ;;  %s14636_s30 = smov 81  }
 0x3bc   : > { %4010 = vrot.lane.b32.xlu1 %v4001_v23, %s14485_s22  ;;  %1948 = vrot.lane.b32.xlu0 %v1939_v24, %s14476_s16 }
 0x3be   : > { %v921_v25 = vpop.permute.xlu1 %920  ;;  %v917_v26 = vpop.permute.xlu0 %916 }
 0x3c0   : > { %2039 = vrot.lane.b32.xlu1 %v12297_v53, %s14487_s5  ;;  %4006 = vrot.lane.b32.xlu0 %v12297_v53, %s14485_s22 }
 0x3c2   : > { %v1004_v4 = vpop.permute.xlu1 %1003  ;;  %v1008_v10 = vpop.permute.xlu0 %1007 }
 0x3c4   : > { %4105 = vrot.lane.b32.xlu1 %v4096_v27, %s14470_s18  ;;  %2700 = vrot.lane.b32.xlu0 %v12354_v12, %s14460_s24  ;;  %s14472_s24 = smov 29  }
 0x3c6   : > { %v12415_v2 = vpop.permute.xlu1 %1100  ;;  %v1097_v8 = vpop.permute.xlu0 %1096 }
 0x3c8   : > { %2795 = vrot.lane.b32.xlu1 %v12354_v12, %s14636_s30  ;;  %2043 = vrot.lane.b32.xlu0 %v2034_v3, %s14487_s5 }
 0x3ca   : > { %v12420_v1 = vpop.permute.xlu1 %1191  ;;  %v12422_v7 = vpop.permute.xlu0 %1195 }
 0x3cc   : > { %1577 = vrot.lane.b32.xlu1 %v12326_v59, %s14462_s13  ;;  %4101 = vrot.lane.b32.xlu0 %v12297_v53, %s14470_s18  ;;  %s14637_s13 = smov 47   ;;  %s14493_s18 = smov 48  }
 0x3ce   : > { %v12428_v29 = vpop.permute.xlu1 %1380  ;;  %v12430_v30 = vpop.permute.xlu0 %1285 }
 0x3d0   : > { %4861 = vrot.lane.b32.xlu1 %v12300_v55, %s14472_s24  ;;  %3543 = vrot.lane.b32.xlu0 %v12326_v59, %s14464_s9  ;;  %s14482_s9 = smov 32  }
 0x3d2   : > { %v12436_v31 = vpop.permute.xlu1 %2234  ;;  %v12438_v32 = vpop.permute.xlu0 %1475 }
 0x3d4   : > { %1664 = vrot.lane.b32.xlu1 %v12326_v59, %s14466_s21  ;;  %4865 = vrot.lane.b32.xlu0 %v4855_v33, %s14472_s24  ;;  %s14489_s21 = smov 82   ;;  %s14491_s24 = smov 45  }
 0x3d6   : > { %v12443_v34 = vpop.permute.xlu1 %2325  ;;  %v12445_v35 = vpop.permute.xlu0 %2238 }
 0x3d8   : > { %1757 = vrot.lane.b32.xlu1 %v12326_v59, %s14468_s15  ;;  %3630 = vrot.lane.b32.xlu0 %v12326_v59, %s14637_s13  ;;  %s14643_s15 = smov 32  }
 0x3da   : > { %v12451_v37 = vpop.permute.xlu1 %2414  ;;  %v919_v38 = vpop.permute.xlu0 %918 }
 0x3db   : > { %v923_v39 = vsel %vm14553_vm15, %v917_v26, %v919_v38  ;;  %v924_v40 = vsel %vm14553_vm15, %v919_v38, %v921_v25  ;;  %v1281_v26 = vld [vmem:[%s14638_s4 + $0x1c] sm:$0x1]  ;;  %vm14555_vm15 = vcmask 236544  }
 0x3dc   : > { %2893 = vrot.lane.b32.xlu1 %v12300_v55, %s14482_s9  ;;  %2138 = vrot.lane.b32.xlu0 %v2129_v36, %s14489_s21 }
 0x3dd   : > { %10828 = vmatprep.subr.msk.mxu1 %vm14576_vm5, %v924_v40 }
 0x3de   : > { %10829 = vmatpush1.msk.msra.mxu1 %vm14576_vm5, %v923_v39  ;;  %v1006_v43 = vpop.permute.xlu1 %1005  ;;  %v12463_v44 = vpop.permute.xlu0 %2321  ;;  %v1471_v39 = vld [vmem:[%s14638_s4 + $0x2a] sm:$0x1] }
 0x3df   : > { %v1010_v45 = vsel %vm14532_vm0, %v1004_v4, %v1006_v43  ;;  %10830 = vmatmul.mubr.msk.f32.vlgmr.msra.gmra.mrb[10].mxu1 %vm583_vm4, %v912_v42  ;;  %v1011_v46 = vsel %vm14532_vm0, %v1006_v43, %v1008_v10  ;;  %v2230_v43 = vld [vmem:[%s14638_s4 + $0x9] sm:$0x1]  ;;  %vm14535_vm0 = vcmask 384000  }
 0x3e0   : > { %4952 = vrot.lane.b32.xlu1 %v4855_v33, %s14491_s24  ;;  %3723 = vrot.lane.b32.xlu0 %v12326_v59, %s14474_s17  ;;  %s14639_s17 = smov 127  }
 0x3e1   : > { %10831 = vmatprep.subr.msk.mxu1 %vm14576_vm5, %v1011_v46  ;;  %1083 = vmatprep.mubr.f32.mxu1 %v14603_v13 }
 0x3e2   : > { %10832 = vmatpush1.msk.msra.mxu1 %vm14576_vm5, %v1010_v45  ;;  %v12474_v47 = vpop.permute.xlu1 %2513  ;;  %v12476_v48 = vpop.permute.xlu0 %2418  ;;  %v3246_v45 = vld [vmem:[#allocation3 + $0xc] sm:$0xf] }
 0x3e4   : > { %1852 = vrot.lane.b32.xlu1 %v12326_v59, %s14478_s10  ;;  %2134 = vrot.lane.b32.xlu0 %v12297_v53, %s14489_s21  ;;  %s14480_s10 = smov 13  }
 0x3e6   : > { %v12485_v50 = vpop.permute.xlu1 %2603  ;;  %v12487_v51 = vpop.permute.xlu0 %2509 }
 0x3e7   : > { %10833 = vmatmul.mubr.msk.f32.vlgmr.msra.gmra.mrb[10].mxu1 %vm583_vm4, %v911_v49 }
 0x3e8   : > { %1946 = vrot.lane.b32.xlu1 %v12354_v12, %s14476_s16  ;;  %3818 = vrot.lane.b32.xlu0 %v12354_v12, %s14639_s17  ;;  %s14640_s16 = smov 111  }
 0x3e9   : > { %1176 = vmatprep.mubr.f32.mxu1 %v14603_v13 }
 0x3ea   : > { %v12495_v52 = vpop.permute.xlu1 %2702  ;;  %v1099_v54 = vpop.permute.xlu0 %1098 }
 0x3eb   : > { %v1103_v56 = vsel %vm14484_vm6, %v1097_v8, %v1099_v54  ;;  %v1104_v58 = vsel %vm14484_vm6, %v1099_v54, %v12415_v2  ;;  %vm14495_vm6 = vcmask 809984   ;;  %v5131_v8 = vld [vmem:[#allocation3 + $0xc] sm:$0xf] }
 0x3ec   : > { %2980 = vrot.lane.b32.xlu1 %v12300_v55, %s14493_s18  ;;  %2897 = vrot.lane.b32.xlu0 %v2887_v57, %s14482_s9  ;;  %s14499_s9 = smov 16   ;;  %v5226_v54 = vld [vmem:[#allocation3 + $0xc] sm:$0xf] }
 0x3ed   : > { %10834 = vmatprep.subr.msk.mxu1 %vm14576_vm5, %v1104_v58  ;;  %v2229_v58 = vld [vmem:[%s14638_s4 + $0x2] sm:$0x1] }
 0x3ee   : > { %10835 = vmatpush1.msk.msra.mxu1 %vm14576_vm5, %v1103_v56  ;;  %v1194_v61 = vpop.permute.xlu1 %1193  ;;  %v12508_v62 = vpop.permute.xlu0 %2607 }
 0x3ef   : > { %v1197_v63 = vsel %vm580_vm3, %v12420_v1, %v1194_v61  ;;  %10836 = vmatmul.mubr.msk.f32.vlgmr.msra.gmra.mrb[10].mxu1 %vm583_vm4, %v1092_v60  ;;  %v1198_v11 = vsel %vm580_vm3, %v1194_v61, %v12422_v7 }
 0x3f0   : > { %5045 = vrot.lane.b32.xlu1 %v5036_v6, %s14480_s10  ;;  %3913 = vrot.lane.b32.xlu0 %v12354_v12, %s14640_s16  ;;  %s14641_s10 = smov 29  }
 0x3f1   : > { %10837 = vmatprep.subr.msk.mxu1 %vm14576_vm5, %v1198_v11  ;;  %1270 = vmatprep.mubr.f32.mxu1 %v14603_v13 }
 0x3f2   : > { %10838 = vmatpush1.msk.msra.mxu1 %vm14576_vm5, %v1197_v63  ;;  %v12521_v14 = vpop.permute.xlu1 %2793  ;;  %v12523_v15 = vpop.permute.xlu0 %2698 }
 0x3f4   : > { %2041 = vrot.lane.b32.xlu1 %v12354_v12, %s14487_s5  ;;  %4948 = vrot.lane.b32.xlu0 %v12300_v55, %s14491_s24  ;;  %s14644_s5 = smov 13   ;;  %s14645_s24 = smov 48  }
 0x3f6   : > { %v12532_v17 = vpop.permute.xlu1 %3545  ;;  %v12534_v18 = vpop.permute.xlu0 %2797 }
 0x3f7   : > { %10839 = vmatmul.mubr.msk.f32.vlgmr.msra.gmra.mrb[10].mxu1 %vm583_vm4, %v1187_v16 }
 0x3f8   : > { %3073 = vrot.lane.b32.xlu1 %v12300_v55, %s14499_s9  ;;  %4008 = vrot.lane.b32.xlu0 %v12354_v12, %s14485_s22  ;;  %s14642_s22 = smov 79  }
 0x3f9   : > { %1365 = vmatprep.mubr.f32.mxu1 %v14603_v13 }
 0x3fa   : > { %v12542_v19 = vpop.permute.xlu1 %1575  ;;  %v1288_v23 = vpop.permute.xlu0 %1287 }
 0x3fb   : > { %v1292_v24 = vsel %vm14496_vm11, %v12430_v30, %v1288_v23  ;;  %v1293_v25 = vsel %vm14496_vm11, %v1288_v23, %v12392_v20  ;;  %vm14501_vm11 = vcmask 269312   ;;  %v5321_v23 = vld [vmem:[#allocation3 + $0xc] sm:$0xf] }
 0x3fc   : > { %4863 = vrot.lane.b32.xlu1 %v12326_v59, %s14641_s10  ;;  %2984 = vrot.lane.b32.xlu0 %v2887_v57, %s14493_s18  ;;  %s14497_s18 = smov 125   ;;  %s14677_s10 = smov 17  }
 0x3fd   : > { %10840 = vmatprep.subr.msk.mxu1 %vm14576_vm5, %v1293_v25 }
 0x3fe   : > { %10841 = vmatpush1.msk.msra.mxu1 %vm14576_vm5, %v1292_v24  ;;  %v1383_v27 = vpop.permute.xlu1 %1382  ;;  %v12556_v4 = vpop.permute.xlu0 %3541 }
 0x3ff   : > { %v1387_v20 = vsel %vm14495_vm6, %v12428_v29, %v1383_v27  ;;  %10842 = vmatmul.mubr.msk.f32.vlgmr.msra.gmra.mrb[10].mxu1 %vm583_vm4, %v1281_v26  ;;  %v1388_v10 = vsel %vm14495_vm6, %v1383_v27, %v12402_v21  ;;  %v1376_v21 = vld [vmem:[%s14638_s4 + $0x23] sm:$0x1]  ;;  %vm14502_vm6 = vcmask 678912  }
 0x400   : > { %2136 = vrot.lane.b32.xlu1 %v12354_v12, %s14489_s21  ;;  %4103 = vrot.lane.b32.xlu0 %v12354_v12, %s14642_s22  ;;  %v3068_v29 = vld [vmem:[#allocation3 + $0x8] sm:$0xf]  ;;  %s14646_s21 = smov 45  }
 0x401   : > { %10843 = vmatprep.subr.msk.mxu1 %vm14576_vm5, %v1388_v10  ;;  %1460 = vmatprep.mubr.f32.mxu1 %v14603_v13 }
 0x402   : > { %10844 = vmatpush1.msk.msra.mxu1 %vm14576_vm5, %v1387_v20  ;;  %v12570_v3 = vpop.permute.xlu1 %3632  ;;  %v12572_v2 = vpop.permute.xlu0 %1579  ;;  %v2505_v20 = vld [vmem:[%s14638_s4 + $0x17] sm:$0x1] }
 0x404   : > { %2895 = vrot.lane.b32.xlu1 %v12326_v59, %s14643_s15  ;;  %5041 = vrot.lane.b32.xlu0 %v12300_v55, %s14644_s5 }
 0x406   : > { %v12581_v1 = vpop.permute.xlu1 %1662  ;;  %v12583_v7 = vpop.permute.xlu0 %3628 }
 0x407   : > { %10845 = vmatmul.mubr.msk.f32.vlgmr.msra.gmra.mrb[10].mxu1 %vm583_vm4, %v1376_v21 }
 0x408   : > { %5140 = vrot.lane.b32.xlu1 %v5131_v8, %s14497_s18  ;;  %3077 = vrot.lane.b32.xlu0 %v3068_v29, %s14499_s9  ;;  %s14503_s9 = smov 109   ;;  %s14544_s18 = smov 78  }
 0x409   : > { %1555 = vmatprep.mubr.f32.mxu1 %v14603_v13 }
 0x40a   : > { %v2237_v30 = vpop.permute.xlu1 %2236  ;;  %v1478_v33 = vpop.permute.xlu0 %1477 }
 0x40b   : > { %v1482_v36 = vsel %vm14502_vm6, %v12438_v32, %v1478_v33  ;;  %v1483_v38 = vsel %vm14502_vm6, %v1478_v33, %v12404_v22  ;;  %v2242_v32 = vsel %vm14501_vm11, %v2237_v30, %v12445_v35  ;;  %v2241_v42 = vsel %vm14501_vm11, %v12436_v31, %v2237_v30  ;;  %v3436_v30 = vld [vmem:[#allocation3 + $0xc] sm:$0xf] }
 0x40c   : > { %2982 = vrot.lane.b32.xlu1 %v12326_v59, %s14645_s24  ;;  %4950 = vrot.lane.b32.xlu0 %v12326_v59, %s14646_s21  ;;  %vm14519_vm11 = vcmask 400384   ;;  %vm14513_vm6 = vcmask 138240   ;;  %s14676_s21 = smov 18  }
 0x40d   : > { %10846 = vmatprep.subr.msk.mxu1 %vm14576_vm5, %v1483_v38 }
 0x40e   : > { %10847 = vmatpush1.msk.msra.mxu1 %vm14576_vm5, %v1482_v36  ;;  %v12602_v40 = vpop.permute.xlu1 %3725  ;;  %v12606_v22 = vpop.permute.xlu0 %1666 }
 0x40f   : > { %10848 = vmatmul.mubr.msk.f32.vlgmr.msra.gmra.mrb[10].mxu1 %vm583_vm4, %v1471_v39  ;;  %10870 = vmatprep.subr.msk.mxu1 %vm14576_vm5, %v2242_v32 }
 0x410   : > { %10871 = vmatpush1.msk.msra.mxu1 %vm14576_vm5, %v2241_v42  ;;  %5231 = vrot.lane.b32.xlu1 %v12297_v53, %s14503_s9  ;;  %s14523_s9 = smov 30  }
 0x411   : > { %5136 = vrot.lane.b32.xlu0 %v12297_v53, %s14647_s1  ;;  %2314 = vmatprep.mubr.f32.mxu1 %v14603_v13 }
 0x412   : > { %v12621_v31 = vpop.permute.xlu1 %1755  ;;  %v12623_v35 = vpop.permute.xlu0 %3721 }
 0x413   : > { %10872 = vmatmul.mubr.msk.f32.vlgmr.msra.gmra.mrb[12].mxu1 %vm583_vm4, %v2230_v43  ;;  %v2694_v43 = vld [vmem:[%s14638_s4 + $0x25] sm:$0x1] }
 0x414   : > { %3075 = vrot.lane.b32.xlu1 %v12326_v59, %s14648_s8  ;;  %2401 = vmatprep.mubr.f32.mxu1 %v14603_v13 }
 0x415   : > { %5043 = vrot.lane.b32.xlu0 %v12326_v59, %s14644_s5  ;;  %s14674_s5 = smov 50  }
 0x416   : > { %v12631_v46 = vpop.permute.xlu1 %3820  ;;  %v2324_v49 = vpop.permute.xlu0 %2323 }
 0x417   : > { %v2328_v56 = vsel %vm14519_vm11, %v12463_v44, %v2324_v49  ;;  %v2329_v57 = vsel %vm14519_vm11, %v2324_v49, %v12443_v34  ;;  %vm14528_vm11 = vcmask 662528  }
 0x418   : > { %3255 = vrot.lane.b32.xlu1 %v3246_v45, %s14506_s0  ;;  %10873 = vmatprep.subr.msk.mxu1 %vm14576_vm5, %v2329_v57  ;;  %s14508_s0 = smov 93   ;;  %v1571_v57 = vld [vmem:[%s14638_s4 + $0x8] sm:$0x1] }
 0x419   : > { %5235 = vrot.lane.b32.xlu0 %v5226_v54, %s14649_s27  ;;  %10874 = vmatpush1.msk.msra.mxu1 %vm14576_vm5, %v2328_v56 }
 0x41a   : > { %v2417_v60 = vpop.permute.xlu1 %2416  ;;  %v12644_v61 = vpop.permute.xlu0 %1759 }
 0x41b   : > { %v2421_v34 = vsel %vm14513_vm6, %v12451_v37, %v2417_v60  ;;  %10875 = vmatmul.mubr.msk.f32.vlgmr.msra.gmra.mrb[12].mxu1 %vm583_vm4, %v2229_v58  ;;  %v2422_v44 = vsel %vm14513_vm6, %v2417_v60, %v12476_v48  ;;  %v2410_v37 = vld [vmem:[%s14638_s4 + $0x10] sm:$0x1]  ;;  %v3341_v48 = vld [vmem:[#allocation3 + $0xc] sm:$0xf]  ;;  %vm14517_vm6 = vcmask 924672  }
 0x41c   : > { %5326 = vrot.lane.b32.xlu1 %v12297_v53, %s14508_s0  ;;  %10876 = vmatprep.subr.msk.mxu1 %vm14576_vm5, %v2422_v44  ;;  %s14650_s0 = smov 112  }
 0x41d   : > { %5138 = vrot.lane.b32.xlu0 %v12354_v12, %s14647_s1  ;;  %10877 = vmatpush1.msk.msra.mxu1 %vm14576_vm5, %v2421_v34  ;;  %v3537_v34 = vld [vmem:[%s14638_s4 + $0xb] sm:$0x1]  ;;  %s14673_s1 = smov 33  }
 0x41e   : > { %v12657_v63 = vpop.permute.xlu1 %1850  ;;  %v12659_v6 = vpop.permute.xlu0 %3816  ;;  %2494 = vmatprep.mubr.f32.mxu1 %v14603_v13 }
 0x420   : > { %5233 = vrot.lane.b32.xlu1 %v12354_v12, %s14649_s27  ;;  %s14672_s27 = smov 34  }
 0x421   : > { %3251 = vrot.lane.b32.xlu0 %v12297_v53, %s14650_s0 }
 0x422   : > { %v12669_v11 = vpop.permute.xlu1 %3915  ;;  %v12671_v16 = vpop.permute.xlu0 %1854 }
 0x423   : > { %10878 = vmatmul.mubr.msk.f32.vlgmr.msra.gmra.mrb[12].mxu1 %vm583_vm4, %v2410_v37 }
 0x424   : > { %3350 = vrot.lane.b32.xlu1 %v3341_v48, %s14515_s26  ;;  %2588 = vmatprep.mubr.f32.mxu1 %v14603_v13  ;;  %v1570_v48 = vld [vmem:[%s14638_s4 + $0x1] sm:$0x1] }
 0x425   : > { %5330 = vrot.lane.b32.xlu0 %v5321_v23, %s14651_s29 }
 0x426   : > { %v12677_v24 = vpop.permute.xlu1 %1944  ;;  %v2512_v25 = vpop.permute.xlu0 %2511 }
 0x427   : > { %v2515_v26 = vsel %vm574_vm1, %v12487_v51, %v2512_v25  ;;  %v2516_v27 = vsel %vm574_vm1, %v2512_v25, %v12474_v47 }
 0x428   : > { %5328 = vrot.lane.b32.xlu1 %v12354_v12, %s14651_s29  ;;  %10879 = vmatprep.subr.msk.mxu1 %vm14576_vm5, %v2516_v27  ;;  %v12815_v27 = vld [vmem:[#allocation3 + $0x4] sm:$0xff]  ;;  %s14671_s29 = smov 3  }
 0x429   : > { %3346 = vrot.lane.b32.xlu0 %v12297_v53, %s14515_s26  ;;  %10880 = vmatpush1.msk.msra.mxu1 %vm14576_vm5, %v2515_v26  ;;  %s14525_s26 = smov 80  }
 0x42a   : > { %v2606_v10 = vpop.permute.xlu1 %2605  ;;  %v12692_v51 = vpop.permute.xlu0 %3911 }
 0x42b   : > { %v2610_v47 = vsel %vm14517_vm6, %v12485_v50, %v2606_v10  ;;  %10881 = vmatmul.mubr.msk.f32.vlgmr.msra.gmra.mrb[12].mxu1 %vm583_vm4, %v2505_v20  ;;  %v2611_v21 = vsel %vm14517_vm6, %v2606_v10, %v12508_v62  ;;  %v5416_v50 = vld [vmem:[#allocation3 + $0xc] sm:$0xf]  ;;  %v2599_v62 = vld [vmem:[%s14638_s4 + $0x1e] sm:$0x1]  ;;  %vm14522_vm6 = vcmask 793600  }
 0x42c   : > { %5421 = vrot.lane.b32.xlu1 %v12297_v53, %s14520_s28  ;;  %10882 = vmatprep.subr.msk.mxu1 %vm14576_vm5, %v2611_v21  ;;  %v4376_v20 = vld [vmem:[#allocation3 + $0x8] sm:$0xf]  ;;  %v1751_v10 = vld [vmem:[%s14638_s4 + $0xf] sm:$0x1] }
 0x42d   : > { %3253 = vrot.lane.b32.xlu0 %v12354_v12, %s14650_s0  ;;  %10883 = vmatpush1.msk.msra.mxu1 %vm14576_vm5, %v2610_v47 }
 0x42e   : > { %v12705_v8 = vpop.permute.xlu1 %4010  ;;  %v12707_v29 = vpop.permute.xlu0 %1948  ;;  %2683 = vmatprep.mubr.f32.mxu1 %v14603_v13 }
 0x430   : > { %5423 = vrot.lane.b32.xlu1 %v12354_v12, %s14520_s28 }
 0x431   : > { %5425 = vrot.lane.b32.xlu0 %v5416_v50, %s14520_s28  ;;  %s14536_s28 = smov 126  }
 0x432   : > { %v12716_v33 = vpop.permute.xlu1 %2039  ;;  %v12718_v36 = vpop.permute.xlu0 %4006 }
 0x433   : > { %10884 = vmatmul.mubr.msk.f32.vlgmr.msra.gmra.mrb[12].mxu1 %vm583_vm4, %v2599_v62 }
 0x434   : > { %3445 = vrot.lane.b32.xlu1 %v3436_v30, %s14525_s26  ;;  %2778 = vmatprep.mubr.f32.mxu1 %v14603_v13  ;;  %v3717_v30 = vld [vmem:[%s14638_s4 + $0x12] sm:$0x1] }
 0x435   : > { %3348 = vrot.lane.b32.xlu0 %v12354_v12, %s14652_s12 }
 0x436   : > { %v12725_v38 = vpop.permute.xlu1 %4105  ;;  %v2701_v39 = vpop.permute.xlu0 %2700 }
 0x437   : > { %v2705_v32 = vsel %vm14522_vm6, %v12523_v15, %v2701_v39  ;;  %v2706_v42 = vsel %vm14522_vm6, %v2701_v39, %v12495_v52  ;;  %vm14530_vm6 = vcmask 277504  }
 0x438   : > { %4203 = vrot.lane.b32.xlu1 %v12326_v59, %s14523_s9  ;;  %10885 = vmatprep.subr.msk.mxu1 %vm14576_vm5, %v2706_v42 }
 0x439   : > { %3441 = vrot.lane.b32.xlu0 %v12297_v53, %s14525_s26  ;;  %10886 = vmatpush1.msk.msra.mxu1 %vm14576_vm5, %v2705_v32 }
 0x43a   : > { %v2796_v15 = vpop.permute.xlu1 %2795  ;;  %v12740_v45 = vpop.permute.xlu0 %2043 }
 0x43b   : > { %v2800_v52 = vsel %vm14528_vm11, %v12521_v14, %v2796_v15  ;;  %10887 = vmatmul.mubr.msk.f32.vlgmr.msra.gmra.mrb[12].mxu1 %vm583_vm4, %v2694_v43  ;;  %v2801_v49 = vsel %vm14528_vm11, %v2796_v15, %v12534_v18  ;;  %v4195_v18 = vld [vmem:[#allocation3 + $0x8] sm:$0xf]  ;;  %vm14531_vm11 = vcmask 252928   ;;  %v1846_v15 = vld [vmem:[%s14638_s4 + $0x16] sm:$0x1] }
 0x43c   : > { %4201 = vrot.lane.b32.xlu1 %v12300_v55, %s14523_s9  ;;  %10888 = vmatprep.subr.msk.mxu1 %vm14576_vm5, %v2801_v49  ;;  %s14542_s9 = smov 46  }
 0x43d   : > { %3443 = vrot.lane.b32.xlu0 %v12354_v12, %s14525_s26  ;;  %10889 = vmatpush1.msk.msra.mxu1 %vm14576_vm5, %v2800_v52  ;;  %v2789_v12 = vld [vmem:[%s14638_s4 + $0x2c] sm:$0x1]  ;;  %s14659_s26 = smov 99  }
 0x43e   : > { %v1578_v53 = vpop.permute.xlu1 %1577  ;;  %v12753_v54 = vpop.permute.xlu0 %4101  ;;  %2873 = vmatprep.mubr.f32.mxu1 %v14603_v13 }
 0x43f   : > { %v1582_v14 = vsel %vm14530_vm6, %v12542_v19, %v1578_v53  ;;  %v1583_v56 = vsel %vm14530_vm6, %v1578_v53, %v12572_v2  ;;  %vm14552_vm6 = vcmask 408576  }
 0x440   : > { %4292 = vrot.lane.b32.xlu1 %v4195_v18, %s14542_s9  ;;  %10849 = vmatprep.subr.msk.mxu0 %vm14576_vm5, %v1583_v56 }
 0x441   : > { %4205 = vrot.lane.b32.xlu0 %v4195_v18, %s14653_s6  ;;  %10850 = vmatpush1.msk.msra.mxu0 %vm14576_vm5, %v1582_v14 }
 0x442   : > { %v12770_v19 = vpop.permute.xlu1 %4861  ;;  %v3544_v2 = vpop.permute.xlu0 %3543  ;;  %10851 = vmatmul.mubr.msk.f32.vlgmr.msra.gmra.mrb[4].mxu0 %vm583_vm4, %v1571_v57  ;;  %v4756_v57 = vld [vmem:[#allocation3 + $0xc] sm:$0xf] }
 0x443   : > { %10890 = vmatmul.mubr.msk.f32.vlgmr.msra.gmra.mrb[12].mxu1 %vm583_vm4, %v2789_v12  ;;  %v3548_v58 = vsel %vm14531_vm11, %v12556_v4, %v3544_v2  ;;  %v3549_v60 = vsel %vm14531_vm11, %v3544_v2, %v12532_v17  ;;  %1742 = vmatprep.mubr.f32.mxu0 %v14603_v13  ;;  %vm14539_vm11 = vcmask 146432  }
 0x444   : > { %4383 = vrot.lane.b32.xlu1 %v12326_v59, %s14533_s25  ;;  %10912 = vmatprep.subr.msk.mxu1 %vm14576_vm5, %v3549_v60 }
 0x445   : > { %4290 = vrot.lane.b32.xlu0 %v12326_v59, %s14542_s9  ;;  %10913 = vmatpush1.msk.msra.mxu1 %vm14576_vm5, %v3548_v58  ;;  %v4471_v59 = vld [vmem:[#allocation3 + $0xc] sm:$0xf]  ;;  %v3907_v58 = vld [vmem:[%s14638_s4 + $0x20] sm:$0x1] }
 0x446   : > { %3621 = vmatprep.mubr.f32.mxu1 %v14603_v13  ;;  %v1665_v17 = vpop.permute.xlu1 %1664  ;;  %v12789_v4 = vpop.permute.xlu0 %4865 }
 0x447   : > { %v1669_v44 = vsel %vm14552_vm6, %v12581_v1, %v1665_v17  ;;  %10914 = vmatmul.mubr.msk.f32.vlgmr.msra.gmra.mrb[14].mxu1 %vm583_vm4, %v3537_v34  ;;  %v1670_v37 = vsel %vm14552_vm6, %v1665_v17, %v12606_v22  ;;  %v2035_v17 = vld [vmem:[%s14638_s4 + $0x24] sm:$0x1]  ;;  %vm14556_vm6 = vcmask 646144  }
 0x448   : > { %4381 = vrot.lane.b32.xlu1 %v12300_v55, %s14533_s25  ;;  %10852 = vmatprep.subr.msk.mxu0 %vm14576_vm5, %v1670_v37 }
 0x449   : > { %4288 = vrot.lane.b32.xlu0 %v12300_v55, %s14542_s9  ;;  %10853 = vmatpush1.msk.msra.mxu0 %vm14576_vm5, %v1669_v44  ;;  %s14657_s9 = smov 8  }
 0x44a   : > { %v1758_v1 = vpop.permute.xlu1 %1757  ;;  %v3631_v23 = vpop.permute.xlu0 %3630  ;;  %10854 = vmatmul.mubr.msk.f32.vlgmr.msra.gmra.mrb[4].mxu0 %vm583_vm4, %v1570_v48  ;;  %3708 = vmatprep.mubr.f32.mxu1 %v14603_v13  ;;  %v4002_v48 = vld [vmem:[%s14638_s4 + $0x27] sm:$0x1] }
 0x44b   : > { %v1762_v22 = vsel %vm14539_vm11, %v12621_v31, %v1758_v1  ;;  %v3635_v25 = vsel %vm14535_vm0, %v12583_v7, %v3631_v23  ;;  %v1763_v26 = vsel %vm14539_vm11, %v1758_v1, %v12644_v61  ;;  %v3636_v55 = vsel %vm14535_vm0, %v3631_v23, %v12570_v3  ;;  %1835 = vmatprep.mubr.f32.mxu0 %v14603_v13  ;;  %v3536_v7 = vld [vmem:[%s14638_s4 + $0x4] sm:$0x1] }
 0x44c   : > { %4480 = vrot.lane.b32.xlu1 %v4471_v59, %s14536_s28  ;;  %10855 = vmatprep.subr.msk.mxu0 %vm14576_vm5, %v1763_v26  ;;  %v12833_v61 = vcombine.high %v12815_v27, %v12815_v27  ;;  %vm14538_vm0 = vcmask 121856   ;;  %vm14546_vm11 = vcmask 1039360  }
 0x44d   : > { %4385 = vrot.lane.b32.xlu0 %v4376_v20, %s14533_s25  ;;  %10915 = vmatprep.subr.msk.mxu1 %vm14576_vm5, %v3636_v55  ;;  %s14540_s25 = smov 110   ;;  %v2130_v55 = vld [vmem:[%s14638_s4 + $0x2b] sm:$0x1]  ;;  %v4097_v20 = vld [vmem:[%s14638_s4 + $0x2e] sm:$0x1] }
 0x44e   : > { %10856 = vmatpush1.msk.msra.mxu0 %vm14576_vm5, %v1762_v22  ;;  %10916 = vmatpush1.msk.msra.mxu1 %vm14576_vm5, %v3635_v25  ;;  %v12827_v3 = vpop.permute.xlu1 %2893  ;;  %v12829_v31 = vpop.permute.xlu0 %2138 }
 0x44f   : > { %10917 = vmatmul.mubr.msk.f32.vlgmr.msra.gmra.mrb[14].mxu1 %vm583_vm4, %v3536_v7 }
 0x450   : > { %4573 = vrot.lane.b32.xlu1 %v12833_v61, %s14540_s25  ;;  %3801 = vmatprep.mubr.f32.mxu1 %v14603_v13 }
 0x451   : > { %4478 = vrot.lane.b32.xlu0 %v12833_v61, %s14536_s28 }
 0x452   : > { %v12844_v47 = vpop.permute.xlu1 %4952  ;;  %v3724_v21 = vpop.permute.xlu0 %3723  ;;  %10857 = vmatmul.mubr.msk.f32.vlgmr.msra.gmra.mrb[4].mxu0 %vm583_vm4, %v1751_v10 }
 0x453   : > { %v3728_v50 = vsel %vm14538_vm0, %v12623_v35, %v3724_v21  ;;  %v3729_v62 = vsel %vm14538_vm0, %v3724_v21, %v12602_v40  ;;  %1929 = vmatprep.mubr.f32.mxu0 %v14603_v13  ;;  %v4661_v35 = vld [vmem:[#allocation3 + $0xc] sm:$0xf]  ;;  %vm14547_vm0 = vcmask 932864  }
 0x454   : > { %4571 = vrot.lane.b32.xlu1 %v12815_v27, %s14540_s25  ;;  %10918 = vmatprep.subr.msk.mxu1 %vm14576_vm5, %v3729_v62  ;;  %v4566_v40 = vld [vmem:[#allocation3 + $0xc] sm:$0xf] }
 0x455   : > { %4476 = vrot.lane.b32.xlu0 %v12815_v27, %s14536_s28  ;;  %10919 = vmatpush1.msk.msra.mxu1 %vm14576_vm5, %v3728_v50  ;;  %s14548_s28 = smov 94  }
 0x456   : > { %v1853_v39 = vpop.permute.xlu1 %1852  ;;  %v12861_v32 = vpop.permute.xlu0 %2134 }
 0x457   : > { %v1856_v42 = vsel %vm577_vm2, %v12657_v63, %v1853_v39  ;;  %10920 = vmatmul.mubr.msk.f32.vlgmr.msra.gmra.mrb[14].mxu1 %vm583_vm4, %v3717_v30  ;;  %v1857_v43 = vsel %vm577_vm2, %v1853_v39, %v12671_v16 }
 0x458   : > { %4670 = vrot.lane.b32.xlu1 %v4661_v35, %s14548_s28  ;;  %10858 = vmatprep.subr.msk.mxu0 %vm14576_vm5, %v1857_v43  ;;  %v4856_v43 = vld [vmem:[%s14638_s4 + $0x6] sm:$0x1] }
 0x459   : > { %4575 = vrot.lane.b32.xlu0 %v4566_v40, %s14540_s25  ;;  %10859 = vmatpush1.msk.msra.mxu0 %vm14576_vm5, %v1856_v42  ;;  %s14654_s25 = smov 78   ;;  %v2888_v42 = vld [vmem:[%s14638_s4 + $0x3] sm:$0x1] }
 0x45a   : > { %v1947_v63 = vpop.permute.xlu1 %1946  ;;  %v3819_v52 = vpop.permute.xlu0 %3818  ;;  %10860 = vmatmul.mubr.msk.f32.vlgmr.msra.gmra.mrb[4].mxu0 %vm583_vm4, %v1846_v15  ;;  %3896 = vmatprep.mubr.f32.mxu1 %v14603_v13 }
 0x45b   : > { %v1951_v16 = vsel %vm14547_vm0, %v12677_v24, %v1947_v63  ;;  %v3823_v49 = vsel %vm14546_vm11, %v12659_v6, %v3819_v52  ;;  %v1952_v53 = vsel %vm14547_vm0, %v1947_v63, %v12707_v29  ;;  %v3824_v14 = vsel %vm14546_vm11, %v3819_v52, %v12631_v46  ;;  %2024 = vmatprep.mubr.f32.mxu0 %v14603_v13  ;;  %v3812_v24 = vld [vmem:[%s14638_s4 + $0x19] sm:$0x1]  ;;  %v1940_v29 = vld [vmem:[%s14638_s4 + $0x1d] sm:$0x1] }
 0x45c   : > { %4763 = vrot.lane.b32.xlu1 %v12833_v61, %s14544_s18  ;;  %10861 = vmatprep.subr.msk.mxu0 %vm14576_vm5, %v1952_v53  ;;  %vm14550_vm11 = vcmask 908288   ;;  %vm14551_vm0 = vcmask 801792   ;;  %s14658_s18 = smov 115  }
 0x45d   : > { %4668 = vrot.lane.b32.xlu0 %v12833_v61, %s14548_s28  ;;  %10921 = vmatprep.subr.msk.mxu1 %vm14576_vm5, %v3824_v14 }
 0x45e   : > { %10862 = vmatpush1.msk.msra.mxu0 %vm14576_vm5, %v1951_v16  ;;  %10922 = vmatpush1.msk.msra.mxu1 %vm14576_vm5, %v3823_v49  ;;  %v12897_v46 = vpop.permute.xlu1 %2980  ;;  %v12899_v6 = vpop.permute.xlu0 %2897 }
 0x45f   : > { %10923 = vmatmul.mubr.msk.f32.vlgmr.msra.gmra.mrb[14].mxu1 %vm583_vm4, %v3812_v24  ;;  %v5037_v24 = vld [vmem:[%s14638_s4 + $0x14] sm:$0x1] }
 0x460   : > { %4761 = vrot.lane.b32.xlu1 %v12815_v27, %s14654_s25  ;;  %3991 = vmatprep.mubr.f32.mxu1 %v14603_v13 }
 0x461   : > { %4666 = vrot.lane.b32.xlu0 %v12815_v27, %s14548_s28  ;;  %s14655_s28 = smov 2  }
 0x462   : > { %v12910_v18 = vpop.permute.xlu1 %5045  ;;  %v3914_v56 = vpop.permute.xlu0 %3913  ;;  %10863 = vmatmul.mubr.msk.f32.vlgmr.msra.gmra.mrb[4].mxu0 %vm583_vm4, %v1940_v29 }
 0x463   : > { %v3918_v12 = vsel %vm14550_vm11, %v12692_v51, %v3914_v56  ;;  %v3919_v2 = vsel %vm14550_vm11, %v3914_v56, %v12669_v11  ;;  %2119 = vmatprep.mubr.f32.mxu0 %v14603_v13  ;;  %vm14554_vm11 = vcmask 777216  }
 0x464   : > { %10924 = vmatprep.subr.msk.mxu1 %vm14576_vm5, %v3919_v2 }
 0x465   : > { %4765 = vrot.lane.b32.xlu0 %v4756_v57, %s14654_s25  ;;  %10925 = vmatpush1.msk.msra.mxu1 %vm14576_vm5, %v3918_v12  ;;  %s14670_s25 = smov 19  }
 0x466   : > { %v2042_v60 = vpop.permute.xlu1 %2041  ;;  %v12924_v34 = vpop.permute.xlu0 %4948 }
 0x467   : > { %v2046_v51 = vsel %vm14551_vm0, %v12716_v33, %v2042_v60  ;;  %10926 = vmatmul.mubr.msk.f32.vlgmr.msra.gmra.mrb[14].mxu1 %vm583_vm4, %v3907_v58  ;;  %v2047_v11 = vsel %vm14551_vm0, %v2042_v60, %v12740_v45  ;;  %vm14575_vm0 = vcmask 670720  }
 0x468   : > { %10864 = vmatprep.subr.msk.mxu0 %vm14576_vm5, %v2047_v11  ;;  %4086 = vmatprep.mubr.f32.mxu1 %v14603_v13 }
 0x469   : > { %10865 = vmatpush1.msk.msra.mxu0 %vm14576_vm5, %v2046_v51 }
 0x46a   : > { %v12937_v44 = vpop.permute.xlu1 %3073  ;;  %v4009_v37 = vpop.permute.xlu0 %4008  ;;  %10866 = vmatmul.mubr.msk.f32.vlgmr.msra.gmra.mrb[4].mxu0 %vm583_vm4, %v2035_v17  ;;  %v5227_v17 = vld [vmem:[%s14638_s4 + $0x22] sm:$0x1] }
 0x46b   : > { %v4013_v33 = vsel %vm14554_vm11, %v12718_v36, %v4009_v37  ;;  %v4014_v45 = vsel %vm14554_vm11, %v4009_v37, %v12705_v8  ;;  %2214 = vmatprep.mubr.f32.mxu0 %v14603_v13  ;;  %vm14562_vm11 = vcmask 261120  }
 0x46c   : > { %10927 = vmatprep.subr.msk.mxu1 %vm14576_vm5, %v4014_v45 }
 0x46d   : > { %10928 = vmatpush1.msk.msra.mxu1 %vm14576_vm5, %v4013_v33 }
 0x46e   : > { %v4864_v59 = vpop.permute.xlu1 %4863  ;;  %v2985_v1 = vpop.permute.xlu0 %2984 }
 0x46f   : > { %10929 = vmatmul.mubr.msk.f32.vlgmr.msra.gmra.mrb[14].mxu1 %vm583_vm4, %v4002_v48 }
 0x470   : > { %4181 = vmatprep.mubr.f32.mxu1 %v14603_v13 }
 0x472   : > { %v2137_v8 = vpop.permute.xlu1 %2136  ;;  %v4104_v36 = vpop.permute.xlu0 %4103 }
 0x473   : > { %v2141_v23 = vsel %vm14575_vm0, %v12861_v32, %v2137_v8  ;;  %v4108_v22 = vsel %vm14556_vm6, %v12753_v54, %v4104_v36  ;;  %v2142_v25 = vsel %vm14575_vm0, %v2137_v8, %v12829_v31  ;;  %v4109_v26 = vsel %vm14556_vm6, %v4104_v36, %v12725_v38  ;;  %v3247_v36 = vld [vmem:[%s14638_s4 + $0x1f] sm:$0x1] }
 0x474   : > { %10867 = vmatprep.subr.msk.mxu0 %vm14576_vm5, %v2142_v25  ;;  %10930 = vmatprep.subr.msk.mxu1 %vm14576_vm5, %v4109_v26  ;;  %v4869_v38 = vsel %vm14555_vm15, %v4864_v59, %v12789_v4  ;;  %v4868_v31 = vsel %vm14555_vm15, %v12770_v19, %v4864_v59  ;;  %v2889_v4 = vld [vmem:[%s14638_s4 + $0xa] sm:$0x1]  ;;  %v4857_v19 = vld [vmem:[%s14638_s4 + $0xd] sm:$0x1]  ;;  %vm14559_vm15 = vcmask 392192   ;;  %vm14557_vm6 = vcmask 367616  }
 0x475   : > { %10868 = vmatpush1.msk.msra.mxu0 %vm14576_vm5, %v2141_v23  ;;  %10931 = vmatpush1.msk.msra.mxu1 %vm14576_vm5, %v4108_v22  ;;  %v5322_v23 = vld [vmem:[%s14638_s4 + $0x29] sm:$0x1] }
 0x476   : > { %v2896_v54 = vpop.permute.xlu1 %2895  ;;  %10869 = vmatmul.mubr.msk.f32.vlgmr.msra.gmra.mrb[4].mxu0 %vm583_vm4, %v2130_v55  ;;  %10954 = vmatprep.subr.msk.mxu1 %vm14576_vm5, %v4869_v38  ;;  %v5042_v7 = vpop.permute.xlu0 %5041 }
 0x477   : > { %v2900_v10 = vsel %vm14562_vm11, %v12827_v3, %v2896_v54  ;;  %10932 = vmatmul.mubr.msk.f32.vlgmr.msra.gmra.mrb[14].mxu1 %vm583_vm4, %v4097_v20  ;;  %v2901_v21 = vsel %vm14562_vm11, %v2896_v54, %v12899_v6  ;;  %2973 = vmatprep.mubr.f32.mxu0 %v14603_v13  ;;  %vm14564_vm11 = vcmask 629760  }
 0x478   : > { %10955 = vmatpush1.msk.msra.mxu1 %vm14576_vm5, %v4868_v31  ;;  %10891 = vmatprep.subr.msk.mxu0 %vm14576_vm5, %v2901_v21  ;;  %v3342_v31 = vld [vmem:[%s14638_s4 + $0x26] sm:$0x1] }
 0x479   : > { %10892 = vmatpush1.msk.msra.mxu0 %vm14576_vm5, %v2900_v10  ;;  %4941 = vmatprep.mubr.f32.mxu1 %v14603_v13  ;;  %v5417_v10 = vld [vmem:[%s14638_s4 + $0x30] sm:$0x1] }
 0x47a   : > { %v5141_v3 = vpop.permute.xlu1 %5140  ;;  %v3078_v50 = vpop.permute.xlu0 %3077  ;;  %10893 = vmatmul.mubr.msk.f32.vlgmr.msra.gmra.mrb[6].mxu0 %vm583_vm4, %v2889_v4  ;;  %v13098_v4 = vld [vmem:[%s12143_s23 + $0x28] sm:$0xff] }
 0x47b   : > { %10956 = vmatmul.mubr.msk.f32.vlgmr.msra.gmra.mrb[16].mxu1 %vm583_vm4, %v4857_v19  ;;  %3060 = vmatprep.mubr.f32.mxu0 %v14603_v13 }
 0x47c   : > { %5028 = vmatprep.mubr.f32.mxu1 %v14603_v13 }
 0x47e   : > { %v2983_v62 = vpop.permute.xlu1 %2982  ;;  %v4951_v30 = vpop.permute.xlu0 %4950 }
 0x47f   : > { %v2987_v35 = vsel %vm14559_vm15, %v12897_v46, %v2983_v62  ;;  %v4955_v39 = vsel %vm14557_vm6, %v12924_v34, %v4951_v30  ;;  %v2988_v32 = vsel %vm14559_vm15, %v2983_v62, %v2985_v1  ;;  %v4956_v40 = vsel %vm14557_vm6, %v4951_v30, %v12844_v47  ;;  %v3069_v46 = vld [vmem:[%s14638_s4 + $0x11] sm:$0x1] }
 0x480   : > { %10894 = vmatprep.subr.msk.mxu0 %vm14576_vm5, %v2988_v32  ;;  %10957 = vmatprep.subr.msk.mxu1 %vm14576_vm5, %v4956_v40  ;;  %vm14558_vm6 = vcmask 105472   ;;  %vm14561_vm15 = vcmask 891904  }
 0x481   : > { %10895 = vmatpush1.msk.msra.mxu0 %vm14576_vm5, %v2987_v35  ;;  %10958 = vmatpush1.msk.msra.mxu1 %vm14576_vm5, %v4955_v39  ;;  %v3437_v35 = vld [vmem:[%s14638_s4 + $0x2d] sm:$0x1] }
 0x482   : > { %v5232_v15 = vpop.permute.xlu1 %5231  ;;  %10896 = vmatmul.mubr.msk.f32.vlgmr.msra.gmra.mrb[6].mxu0 %vm583_vm4, %v2888_v42  ;;  %v4197_v42 = vld [vmem:[%s14638_s4 + $0xc] sm:$0x1] }
 0x483   : > { %10959 = vmatmul.mubr.msk.f32.vlgmr.msra.gmra.mrb[16].mxu1 %vm583_vm4, %v4856_v43  ;;  %v5137_v47 = vpop.permute.xlu0 %5136  ;;  %3152 = vmatprep.mubr.f32.mxu0 %v14603_v13 }
 0x484   : > { %5121 = vmatprep.mubr.f32.mxu1 %v14603_v13 }
 0x486   : > { %v3076_v63 = vpop.permute.xlu1 %3075 }
 0x487   : > { %v3079_v52 = vsel %vm711_vm10, %v12937_v44, %v3076_v63  ;;  %v5044_v16 = vpop.permute.xlu0 %5043  ;;  %v3080_v49 = vsel %vm711_vm10, %v3076_v63, %v3078_v50 }
 0x488   : > { %v5048_v53 = vsel %vm14558_vm6, %v5042_v7, %v5044_v16  ;;  %10897 = vmatprep.subr.msk.mxu0 %vm14576_vm5, %v3080_v49  ;;  %v5049_v14 = vsel %vm14558_vm6, %v5044_v16, %v12910_v18  ;;  %vm14560_vm6 = vcmask 1022976  }
 0x489   : > { %10960 = vmatprep.subr.msk.mxu1 %vm14576_vm5, %v5049_v14  ;;  %10898 = vmatpush1.msk.msra.mxu0 %vm14576_vm5, %v3079_v52 }
 0x48a   : > { %10961 = vmatpush1.msk.msra.mxu1 %vm14576_vm5, %v5048_v53  ;;  %v3256_v6 = vpop.permute.xlu1 %3255  ;;  %10900 = vmatprep.subr.msk.mxu0 %vm14576_vm5, %v12833_v61  ;;  %v5132_v61 = vld [vmem:[%s14638_s4 + $0x1b] sm:$0x1]  ;;  %v4196_v53 = vld [vmem:[%s14638_s4 + $0x5] sm:$0x1] }
 0x48b   : > { %10962 = vmatmul.mubr.msk.f32.vlgmr.msra.gmra.mrb[16].mxu1 %vm583_vm4, %v5037_v24  ;;  %v5236_v29 = vpop.permute.xlu0 %5235  ;;  %10899 = vmatmul.mubr.msk.f32.vlgmr.msra.gmra.mrb[6].mxu0 %vm583_vm4, %v3069_v46 }
 0x48c   : > { %10901 = vmatpush1.msk.msra.mxu0 %vm14576_vm5, %v12815_v27  ;;  %5216 = vmatprep.mubr.f32.mxu1 %v14603_v13  ;;  %v3162_v27 = vld [vmem:[%s14638_s4 + $0x18] sm:$0x1] }
 0x48d   : > { %3236 = vmatprep.mubr.f32.mxu0 %v14603_v13 }
 0x48e   : > { %v5327_v18 = vpop.permute.xlu1 %5326 }
 0x48f   : > { %v5139_v56 = vpop.permute.xlu0 %5138 }
 0x490   : > { %v5143_v57 = vsel %vm14560_vm6, %v5137_v47, %v5139_v56  ;;  %v5144_v12 = vsel %vm14560_vm6, %v5139_v56, %v5141_v3  ;;  %vm14563_vm6 = vcmask 760832  }
 0x491   : > { %10963 = vmatprep.subr.msk.mxu1 %vm14576_vm5, %v5144_v12 }
 0x492   : > { %10964 = vmatpush1.msk.msra.mxu1 %vm14576_vm5, %v5143_v57  ;;  %v5234_v2 = vpop.permute.xlu1 %5233  ;;  %v4377_v57 = vld [vmem:[%s14638_s4 + $0x13] sm:$0x1] }
 0x493   : > { %v5238_v58 = vsel %vm14561_vm15, %v5232_v15, %v5234_v2  ;;  %10965 = vmatmul.mubr.msk.f32.vlgmr.msra.gmra.mrb[16].mxu1 %vm583_vm4, %v5132_v61  ;;  %v3252_v60 = vpop.permute.xlu0 %3251  ;;  %v5239_v34 = vsel %vm14561_vm15, %v5234_v2, %v5236_v29  ;;  %10902 = vmatmul.mubr.msk.f32.vlgmr.msra.gmra.mrb[6].mxu0 %vm583_vm4, %v3162_v27  ;;  %vm14574_vm15 = vcmask 916480   ;;  %v13158_v27 = vld [vmem:[%s12143_s23 + $0x20] sm:$0xff] }
 0x494   : > { %10966 = vmatprep.subr.msk.mxu1 %vm14576_vm5, %v5239_v34  ;;  %5311 = vmatprep.mubr.f32.mxu1 %v14603_v13  ;;  %v13167_v34 = vld [vmem:[%s12135_s7 + $0x28] sm:$0xff] }
 0x495   : > { %10967 = vmatpush1.msk.msra.mxu1 %vm14576_vm5, %v5238_v58  ;;  %3331 = vmatprep.mubr.f32.mxu0 %v14603_v13  ;;  %v13163_v58 = vld [vmem:[%s12143_s23 + $0x38] sm:$0xff] }
 0x496   : > { %v3351_v51 = vpop.permute.xlu1 %3350 }
 0x497   : > { %v5331_v11 = vpop.permute.xlu0 %5330 }
 0x49a   : > { %v5329_v44 = vpop.permute.xlu1 %5328 }
 0x49b   : > { %v5333_v37 = vsel %vm14563_vm6, %v5327_v18, %v5329_v44  ;;  %10968 = vmatmul.mubr.msk.f32.vlgmr.msra.gmra.mrb[16].mxu1 %vm583_vm4, %v5227_v17  ;;  %v3347_v33 = vpop.permute.xlu0 %3346  ;;  %v5334_v45 = vsel %vm14563_vm6, %v5329_v44, %v5331_v11  ;;  %vm14565_vm6 = vcmask 785408   ;;  %v13175_v17 = vld [vmem:[%s12143_s23 + $0x30] sm:$0xff]  ;;  %s14669_s23 = smov 51  }
 0x49c   : > { %10969 = vmatprep.subr.msk.mxu1 %vm14576_vm5, %v5334_v45  ;;  %5406 = vmatprep.mubr.f32.mxu1 %v14603_v13  ;;  %v4472_v44 = vld [vmem:[%s14638_s4 + $0x1a] sm:$0x1] }
 0x49d   : > { %10970 = vmatpush1.msk.msra.mxu1 %vm14576_vm5, %v5333_v37 }
 0x49e   : > { %v5422_v48 = vpop.permute.xlu1 %5421 }
 0x49f   : > { %v3254_v59 = vpop.permute.xlu0 %3253 }
 0x4a0   : > { %v3258_v1 = vsel %vm14574_vm15, %v3252_v60, %v3254_v59  ;;  %v3259_v8 = vsel %vm14574_vm15, %v3254_v59, %v3256_v6 }
 0x4a1   : > { %10903 = vmatprep.subr.msk.mxu0 %vm14576_vm5, %v3259_v8  ;;  %v4567_v8 = vld [vmem:[%s14638_s4 + $0x21] sm:$0x1] }
 0x4a2   : > { %10904 = vmatpush1.msk.msra.mxu0 %vm14576_vm5, %v3258_v1  ;;  %v5424_v22 = vpop.permute.xlu1 %5423 }
 0x4a3   : > { %v5428_v25 = vsel %vm14564_vm11, %v5422_v48, %v5424_v22  ;;  %10905 = vmatmul.mubr.msk.f32.vlgmr.msra.gmra.mrb[6].mxu0 %vm583_vm4, %v3247_v36  ;;  %10971 = vmatmul.mubr.msk.f32.vlgmr.msra.gmra.mrb[16].mxu1 %vm583_vm4, %v5322_v23  ;;  %v5426_v26 = vpop.permute.xlu0 %5425 }
 0x4a4   : > { %v5429_v55 = vsel %vm14564_vm11, %v5424_v22, %v5426_v26  ;;  %3426 = vmatprep.mubr.f32.mxu0 %v14603_v13  ;;  %5501 = vmatprep.mubr.f32.mxu1 %v14603_v13  ;;  %vm14566_vm11 = vcmask 654336  }
 0x4a5   : > { %10972 = vmatprep.subr.msk.mxu1 %vm14576_vm5, %v5429_v55  ;;  %v4662_v55 = vld [vmem:[%s14638_s4 + $0x28] sm:$0x1] }
 0x4a6   : > { %10973 = vmatpush1.msk.msra.mxu1 %vm14576_vm5, %v5428_v25  ;;  %v3446_v20 = vpop.permute.xlu1 %3445 }
 0x4a7   : > { %v3349_v38 = vpop.permute.xlu0 %3348  ;;  %11387 = vmatprep.subr.bf16.mxu1 %v11870_v0 }
 0x4a8   : > { %v3353_v54 = vsel %vm14565_vm6, %v3347_v33, %v3349_v38  ;;  %v3354_v7 = vsel %vm14565_vm6, %v3349_v38, %v3351_v51  ;;  %vm14567_vm6 = vcmask 244736   ;;  %v13170_v51 = vld [vmem:[%s12135_s7 + $0x20] sm:$0xff] }
 0x4a9   : > { %10906 = vmatprep.subr.msk.mxu0 %vm14576_vm5, %v3354_v7  ;;  %v5736_v37 = vmax.f32 %v13170_v51, %v13167_v34  ;;  %v4757_v7 = vld [vmem:[%s14638_s4 + $0x2f] sm:$0x1]  ;;  %s14675_s4 = smov 49  }
 0x4aa   : > { %10907 = vmatpush1.msk.msra.mxu0 %vm14576_vm5, %v3353_v54  ;;  %v4204_v21 = vpop.permute.xlu1 %4203 }
 0x4ab   : > { %10908 = vmatmul.mubr.msk.f32.vlgmr.msra.gmra.mrb[6].mxu0 %vm583_vm4, %v3342_v31  ;;  %10974 = vmatmul.mubr.msk.f32.vlgmr.msra.gmra.mrb[16].mxu1 %vm583_vm4, %v5417_v10  ;;  %v3442_v19 = vpop.permute.xlu0 %3441  ;;  %v5742_v31 = vmax.f32 %v13158_v27, %v13098_v4  ;;  %v5745_v10 = vmax.f32 %v13175_v17, %v13163_v58 }
 0x4ac   : > { %11388 = vmatpush3.bf16.msra.mxu1 %v11870_v0  ;;  %3521 = vmatprep.mubr.f32.mxu0 %v14603_v13 }
 0x4ad   : > { %11389 = vmatprep.subr.bf16.mxu1 %v11870_v0  ;;  %5723 = vmatprep.mubr.f32.mxu1 %v13098_v4 }
 0x4ae   : > { %v4202_v3 = vpop.permute.xlu1 %4201  ;;  %5737 = vmax.xlane.f32.xlu0 %v5736_v37 }
 0x4af   : > { %v3444_v50 = vpop.permute.xlu0 %3443  ;;  %v4208_v43 = vsel %vm14567_vm6, %v4202_v3, %v4204_v21 }
 0x4b0   : > { %11390 = vmatpush3.bf16.msra.mxu1 %v11870_v0  ;;  %v3448_v62 = vsel %vm14566_vm11, %v3442_v19, %v3444_v50  ;;  %v3449_v30 = vsel %vm14566_vm11, %v3444_v50, %v3446_v20  ;;  %vm14568_vm11 = vcmask 375808   ;;  %v13238_v19 = vld [vmem:[%s12135_s7 + $0x30] sm:$0xff] }
 0x4b1   : > { %10909 = vmatprep.subr.msk.mxu0 %vm14576_vm5, %v3449_v30  ;;  %11391 = vmatprep.subr.bf16.mxu1 %v11870_v0  ;;  %v14602_v30 = vlaneseq }
 0x4b2   : > { %10910 = vmatpush1.msk.msra.mxu0 %vm14576_vm5, %v3448_v62  ;;  %v4293_v39 = vpop.permute.xlu1 %4292  ;;  %5743 = vmax.xlane.f32.xlu0 %v5742_v31 }
 0x4b3   : > { %10911 = vmatmul.mubr.msk.f32.vlgmr.msra.gmra.mrb[6].mxu0 %vm583_vm4, %v3437_v35  ;;  %v4206_v32 = vpop.permute.xlu0 %4205 }
 0x4b4   : > { %11392 = vmatpush3.bf16.msra.mxu1 %v11870_v0  ;;  %v4209_v40 = vsel %vm14567_vm6, %v4204_v21, %v4206_v32  ;;  %4281 = vmatprep.mubr.f32.mxu0 %v14603_v13  ;;  %vm14569_vm6 = vcmask 113664   ;;  %v13233_v21 = vld [vmem:[%s12135_s7 + $0x38] sm:$0xff]  ;;  %s14668_s7 = smov 35  }
 0x4b5   : > { %10933 = vmatprep.subr.msk.mxu0 %vm14576_vm5, %v4209_v40  ;;  %11393 = vmatprep.subr.bf16.mxu1 %v11870_v0  ;;  %v5739_v3 = vmax.f32 %v13238_v19, %v13233_v21 }
 0x4b6   : > { %10934 = vmatpush1.msk.msra.mxu0 %vm14576_vm5, %v4208_v43  ;;  %v4384_v15 = vpop.permute.xlu1 %4383  ;;  %5746 = vmax.xlane.f32.xlu0 %v5745_v10 }
 0x4b7   : > { %10935 = vmatmul.mubr.msk.f32.vlgmr.msra.gmra.mrb[8].mxu0 %vm583_vm4, %v4197_v42  ;;  %v4291_v47 = vpop.permute.xlu0 %4290  ;;  %5740 = vmax.xlane.f32.xlu1 %v5739_v3 }
 0x4b8   : > { %11394 = vmatpush3.bf16.msra.mxu1 %v11870_v0  ;;  %v4296_v63 = vsel %vm14568_vm11, %v4291_v47, %v4293_v39  ;;  %4368 = vmatprep.mubr.f32.mxu0 %v14603_v13 }
 0x4b9   : > { %10936 = vmatprep.subr.msk.mxu0 %vm14576_vm5, %v4296_v63  ;;  %11395 = vmatprep.subr.bf16.mxu1 %v11870_v0 }
 0x4ba   : > { %v4382_v52 = vpop.permute.xlu1 %4381 }
 0x4bb   : > { %v4289_v16 = vpop.permute.xlu0 %4288  ;;  %v4388_v6 = vsel %vm14569_vm6, %v4382_v52, %v4384_v15 }
 0x4bc   : > { %11396 = vmatpush3.bf16.msra.mxu1 %v11870_v0  ;;  %v4295_v49 = vsel %vm14568_vm11, %v4289_v16, %v4291_v47  ;;  %vm14570_vm11 = vcmask 1031168  }
 0x4bd   : > { %10937 = vmatpush1.msk.msra.mxu0 %vm14576_vm5, %v4295_v49  ;;  %11397 = vmatprep.subr.bf16.mxu1 %v11870_v0 }
 0x4be   : > { %v4481_v14 = vpop.permute.xlu1 %4480 }
 0x4bf   : > { %10938 = vmatmul.mubr.msk.f32.vlgmr.msra.gmra.mrb[8].mxu0 %vm583_vm4, %v4196_v53  ;;  %v4386_v24 = vpop.permute.xlu0 %4385 }
 0x4c0   : > { %11398 = vmatpush3.bf16.msra.mxu1 %v11870_v0  ;;  %v4389_v46 = vsel %vm14569_vm6, %v4384_v15, %v4386_v24  ;;  %4461 = vmatprep.mubr.f32.mxu0 %v14603_v13  ;;  %vm14571_vm6 = vcmask 900096  }
 0x4c1   : > { %10939 = vmatprep.subr.msk.mxu0 %vm14576_vm5, %v4389_v46  ;;  %11399 = vmatprep.subr.bf16.mxu1 %v11870_v0 }
 0x4c2   : > { %10940 = vmatpush1.msk.msra.mxu0 %vm14576_vm5, %v4388_v6  ;;  %v4574_v29 = vpop.permute.xlu1 %4573 }
 0x4c3   : > { %v4479_v18 = vpop.permute.xlu0 %4478 }
 0x4c4   : > { %11400 = vmatpush3.bf16.msra.mxu1 %v11870_v0  ;;  %v4484_v56 = vsel %vm14570_vm11, %v4479_v18, %v4481_v14 }
 0x4c5   : > { %10942 = vmatprep.subr.msk.mxu0 %vm14576_vm5, %v4484_v56  ;;  %11401 = vmatprep.subr.bf16.mxu1 %v11870_v0 }
 0x4c6   : > { %v4572_v2 = vpop.permute.xlu1 %4571 }
 0x4c7   : > { %10941 = vmatmul.mubr.msk.f32.vlgmr.msra.gmra.mrb[8].mxu0 %vm583_vm4, %v4377_v57  ;;  %v4477_v12 = vpop.permute.xlu0 %4476  ;;  %v4578_v33 = vsel %vm14571_vm6, %v4572_v2, %v4574_v29 }
 0x4c8   : > { %11402 = vmatpush3.bf16.msra.mxu1 %v11870_v0  ;;  %v4483_v61 = vsel %vm14570_vm11, %v4477_v12, %v4479_v18  ;;  %4556 = vmatprep.mubr.f32.mxu0 %v14603_v13  ;;  %vm14573_vm11 = vcmask 769024  }
 0x4c9   : > { %10943 = vmatpush1.msk.msra.mxu0 %vm14576_vm5, %v4483_v61 }
 0x4ca   : > { %v4671_v45 = vpop.permute.xlu1 %4670 }
 0x4cb   : > { %5724 = vmatmul.mubr.f32.vlgmr.msra.gmra.mrb[18].mxu1 %v13158_v27  ;;  %v4576_v60 = vpop.permute.xlu0 %4575 }
 0x4cc   : > { %v4579_v11 = vsel %vm14571_vm6, %v4574_v29, %v4576_v60  ;;  %5728 = vmatprep.mubr.f32.mxu1 %v13163_v58  ;;  %vm14572_vm6 = vcmask 637952  }
 0x4cd   : > { %10945 = vmatprep.subr.msk.mxu0 %vm14576_vm5, %v4579_v11 }
 0x4ce   : > { %v4764_v36 = vpop.permute.xlu1 %4763 }
 0x4cf   : > { %5729 = vmatmul.mubr.f32.gmra.mrb[20].mxu1 %v13175_v17  ;;  %10944 = vmatmul.mubr.msk.f32.vlgmr.msra.gmra.mrb[8].mxu0 %vm583_vm4, %v4472_v44  ;;  %v4669_v48 = vpop.permute.xlu0 %4668 }
 0x4d0   : > { %10946 = vmatpush1.msk.msra.mxu0 %vm14576_vm5, %v4578_v33  ;;  %v4674_v59 = vsel %vm14573_vm11, %v4669_v48, %v4671_v45  ;;  %4651 = vmatprep.mubr.f32.mxu0 %v14603_v13 }
 0x4d1   : > { %10948 = vmatprep.subr.msk.mxu0 %vm14576_vm5, %v4674_v59  ;;  %6816 = vmatprep.mubr.f32.mxu1 %v14603_v13 }
 0x4d2   : > { %v4762_v26 = vpop.permute.xlu1 %4761 }
 0x4d3   : > { %v4667_v1 = vpop.permute.xlu0 %4666  ;;  %v4768_v20 = vsel %vm14572_vm6, %v4762_v26, %v4764_v36 }
 0x4d4   : > { %v4673_v23 = vsel %vm14573_vm11, %v4667_v1, %v4669_v48 }
 0x4d7   : > { %10947 = vmatmul.mubr.msk.f32.vlgmr.msra.gmra.mrb[8].mxu0 %vm583_vm4, %v4567_v8  ;;  %v4766_v22 = vpop.permute.xlu0 %4765 }
 0x4d8   : > { %10949 = vmatpush1.msk.msra.mxu0 %vm14576_vm5, %v4673_v23  ;;  %v4769_v25 = vsel %vm14572_vm6, %v4764_v36, %v4766_v22  ;;  %4746 = vmatprep.mubr.f32.mxu0 %v14603_v13 }
 0x4d9   : > { %10951 = vmatprep.subr.msk.mxu0 %vm14576_vm5, %v4769_v25 }
 0x4df   : > { %10950 = vmatmul.mubr.msk.f32.vlgmr.msra.gmra.mrb[8].mxu0 %vm583_vm4, %v4662_v55 }
 0x4e0   : > { %10952 = vmatpush1.msk.msra.mxu0 %vm14576_vm5, %v4768_v20  ;;  %4841 = vmatprep.mubr.f32.mxu0 %v14603_v13 }
 0x4e1   : > { %11371 = vmatprep.subr.bf16.mxu0 %v11870_v0 }
 0x4e2   : > { %v1557_v38 = vpop.f32.mrb[10].mxu1 }
 0x4e3   : > { %v1559_v54 = vpop.f32.mrb[11].mxu1 }
 0x4e7   : > { %10953 = vmatmul.mubr.msk.f32.vlgmr.msra.gmra.mrb[8].mxu0 %vm583_vm4, %v4757_v7 }
 0x4e8   : > { %11372 = vmatpush3.bf16.msra.mxu0 %v11870_v0  ;;  %5646 = vmatprep.mubr.f32.mxu0 %v13167_v34 }
 0x4e9   : > { %11373 = vmatprep.subr.bf16.mxu0 %v11870_v0 }
 0x4ec   : > { %11374 = vmatpush3.bf16.msra.mxu0 %v11870_v0 }
 0x4ed   : > { %11375 = vmatprep.subr.bf16.mxu0 %v11870_v0 }
 0x4f0   : > { %11376 = vmatpush3.bf16.msra.mxu0 %v11870_v0 }
 0x4f1   : > { %11377 = vmatprep.subr.bf16.mxu0 %v11870_v0 }
 0x4f4   : > { %11378 = vmatpush3.bf16.msra.mxu0 %v11870_v0 }
 0x4f5   : > { %11379 = vmatprep.subr.bf16.mxu0 %v11870_v0 }
 0x4f8   : > { %11380 = vmatpush3.bf16.msra.mxu0 %v11870_v0 }
 0x4f9   : > { %11381 = vmatprep.subr.bf16.mxu0 %v11870_v0 }
 0x4fc   : > { %11382 = vmatpush3.bf16.msra.mxu0 %v11870_v0 }
 0x4fd   : > { %11383 = vmatprep.subr.bf16.mxu0 %v11870_v0 }
 0x500   : > { %11384 = vmatpush3.bf16.msra.mxu0 %v11870_v0 }
 0x501   : > { %11385 = vmatprep.subr.bf16.mxu0 %v11870_v0 }
 0x504   : > { %11386 = vmatpush3.bf16.msra.mxu0 %v11870_v0  ;;  %v324_v0 = vand.u32 127, %v14602_v30 }
 0x506   : > { %v325_v35 = vadd.s32 128, %v324_v0  ;;  %v13244_v39 = vand.u32 15, %v324_v0 }
 0x507   : > { %5647 = vmatmul.mubr.f32.vlgmr.msra.gmra.mrb[10].mxu0 %v13170_v51 }
 0x508   : > { %5651 = vmatprep.mubr.f32.mxu0 %v13233_v21  ;;  %v13246_v32 = vand.u32 15, %v325_v35  ;;  %vm350_vm6 = vcmp.ge.s32.totalorder %v13244_v39, 3  ;;  %vm14578_vm11 = vcmp.ge.s32.totalorder %v13244_v39, 2  ;;  %vm14583_vm5 = vcmp.ge.s32.totalorder %v13244_v39, 1 }
 0x509   : > { %v1564_v42 = vsel %vm350_vm6, %v1557_v38, 0.0 }
 0x50a   : > { %vm14579_vm15 = vcmp.ge.s32.totalorder %v13246_v32, 3  ;;  %vm357_vm0 = vcmp.ge.s32.totalorder %v13246_v32, 2  ;;  %vm14581_vm14 = vcmp.ge.s32.totalorder %v13246_v32, 1 }
 0x50b   : > { %5652 = vmatmul.mubr.f32.gmra.mrb[12].mxu0 %v13238_v19  ;;  %v1565_v63 = vsel %vm14579_vm15, %v1559_v54, 0.0  ;;  %vm14582_vm15 = vcmp.le.s32.totalorder %v13246_v32, 14 }
 0x516   : > { %v2875_v50 = vpop.f32.mrb[12].mxu1 }
 0x517   : > { %v2877_v62 = vpop.f32.mrb[13].mxu1  ;;  %v2882_v53 = vsel %vm14583_vm5, %v2875_v50, 0.0  ;;  %vm14601_vm5 = vcmp.le.s32.totalorder %v13246_v32, 12 }
 0x518   : > { %v2883_v24 = vsel %vm14581_vm14, %v2877_v62, 0.0  ;;  %vm383_vm14 = vcmp.le.s32.totalorder %v13246_v32, 13 }
 0x549   : > { %v2216_v40 = vpop.f32.mrb[4].mxu0 }
 0x54a   : > { %v2223_v43 = vsel %vm14578_vm11, %v2216_v40, 0.0  ;;  %v4183_v15 = vpop.f32.mrb[14].mxu1  ;;  %v2218_v47 = vpop.f32.mrb[5].mxu0  ;;  %vm14580_vm11 = vcmp.le.s32.totalorder %v13244_v39, 14 }
 0x54b   : > { %v2225_v52 = vadd.f32 %v2223_v43, %v1564_v42  ;;  %v2224_v16 = vsel %vm357_vm0, %v2218_v47, 0.0  ;;  %v4185_v49 = vpop.f32.mrb[15].mxu1  ;;  %v4190_v61 = vsel %vm14580_vm11, %v4183_v15, 0.0  ;;  %vm382_vm11 = vcmp.le.s32.totalorder %v13244_v39, 13  ;;  %v5738_v40 = vpop.xlane.xlu0 %5737 }
 0x54c   : > { %v2226_v14 = vadd.f32 %v2224_v16, %v1565_v63  ;;  %v4191_v60 = vsel %vm14582_vm15, %v4185_v49, 0.0  ;;  %vm388_vm15 = vcmp.le.s32.totalorder %v13244_v39, 12  ;;  %v5741_v47 = vpop.xlane.xlu1 %5740 }
 0x54d   : > { %v2884_v46 = vadd.f32 %v2882_v53, %v2225_v52 }
 0x54e   : > { %v2885_v6 = vadd.f32 %v2883_v24, %v2226_v14  ;;  %v5790_v14 = vld [vmem:[%s14632_s2] sm:$0xff]  ;;  %v5791_v24 = vld [vmem:[%s14632_s2 + $0x8] sm:$0xf]  ;;  %s14662_s2 = smov 113  }
 0x54f   : > { %v5744_v42 = vpop.xlane.xlu0 %5743 }
 0x553   : > { %v5747_v43 = vpop.xlane.xlu0 %5746 }
 0x57e   : > { %v5503_v29 = vpop.f32.mrb[16].mxu1 }
 0x57f   : > { %v5505_v18 = vpop.f32.mrb[17].mxu1  ;;  %v5510_v20 = vsel %vm388_vm15, %v5503_v29, 0.0 }
 0x580   : > { %v5511_v54 = vsel %vm14601_vm5, %v5505_v18, 0.0 }
 0x586   : > { %v3523_v56 = vpop.f32.mrb[6].mxu0 }
 0x587   : > { %v3532_v57 = vadd.f32 %v3523_v56, %v2884_v46  ;;  %v3525_v12 = vpop.f32.mrb[7].mxu0  ;;  %v11403_v46 = vpack.c.bf16 %v5791_v24, %v5790_v14 }
 0x588   : > { %v3533_v2 = vadd.f32 %v3525_v12, %v2885_v6 }
 0x589   : > { %v4192_v11 = vadd.f32 %v4190_v61, %v3532_v57  ;;  %11405 = vmatprep.subr.msk.bf16.mxu0 %vm12238_vm7, %v11403_v46  ;;  %v11409_v57 = vpack.c.bf16 %v13233_v21, %v13167_v34 }
 0x58a   : > { %v4193_v44 = vadd.f32 %v4191_v60, %v3533_v2  ;;  %11408 = vmatpush3.bf16.msk.msra.mxu0 %vm12238_vm7, %v11403_v46  ;;  %vm14666_vm7 = vcmask 1042432  }
 0x58b   : > { %11410 = vmatprep.subr.bf16.mxu0 %v11409_v57 }
 0x59e   : > { %v11301_v37 = vpop.f32.mrb[18].mxu1 }
 0x59f   : > { %v11302_v33 = vpop.f32.mrb[19].mxu1 }
 0x5a0   : > { %v11303_v45 = vadd.f32 %v11302_v33, %v11301_v37 }
 0x5a2   : > { %v5734_v48 = vmul.f32 0.00390625, %v11303_v45  ;;  %v11304_v59 = vpop.f32.mrb[20].mxu1 }
 0x5a3   : > { %v11305_v1 = vpop.f32.mrb[21].mxu1 }
 0x5a4   : > { %v11306_v8 = vadd.f32 %v11305_v1, %v11304_v59  ;;  %5750 = vrot.lane.b32.xlu0 %v5734_v48, %s14655_s28  ;;  %v11411_v59 = vpack.c.bf16 %v13238_v19, %v13170_v51 }
 0x5a6   : > { %v5735_v36 = vmul.f32 0.00390625, %v11306_v8 }
 0x5a8   : > { %5752 = vrot.lane.b32.xlu1 %v5735_v36, %s14655_s28  ;;  %v11413_v36 = vpack.c.bf16 %v13163_v58, %v13098_v4 }
 0x5ba   : > { %v4843_v23 = vpop.f32.mrb[8].mxu0 }
 0x5bb   : > { %v4850_v22 = vsel %vm382_vm11, %v4843_v23, 0.0  ;;  %v4845_v25 = vpop.f32.mrb[9].mxu0 }
 0x5bc   : > { %v4852_v26 = vadd.f32 %v4850_v22, %v4192_v11  ;;  %v4851_v55 = vsel %vm383_vm14, %v4845_v25, 0.0  ;;  %v11415_v22 = vpack.c.bf16 %v13175_v17, %v13158_v27  ;;  %v6445_v25 = vld [vmem:[#allocation3 + $0xc] sm:$0xf] }
 0x5bd   : > { %v4853_v38 = vadd.f32 %v4851_v55, %v4193_v44  ;;  %v6633_v55 = vld [vmem:[#allocation3 + $0xc] sm:$0xf] }
 0x5be   : > { %v13286_v7 = vadd.f32 %v5510_v20, %v4852_v26  ;;  %v6539_v26 = vld [vmem:[#allocation3 + $0xc] sm:$0xf] }
 0x5bf   : > { %v13288_v31 = vadd.f32 %v5511_v54, %v4853_v38  ;;  %v7098_v20 = vld [vmem:[#allocation3 + $0xc] sm:$0xf] }
 0x5c0   : > { %v7751_v38 = vld [vmem:[#allocation3 + $0xc] sm:$0xf] }
 0x5c1   : > { %v7192_v54 = vld [vmem:[#allocation3 + $0xc] sm:$0xf] }
 0x5da   : > { %v11263_v10 = vpop.f32.mrb[10].mxu0 }
 0x5db   : > { %v11264_v3 = vpop.f32.mrb[11].mxu0 }
 0x5dc   : > { %v11265_v50 = vadd.f32 %v11264_v3, %v11263_v10  ;;  %v7845_v10 = vld [vmem:[#allocation3 + $0xc] sm:$0xf] }
 0x5dd   : > { %v7939_v3 = vld [vmem:[#allocation3 + $0xc] sm:$0xf] }
 0x5de   : > { %v11266_v62 = vpop.f32.mrb[12].mxu0  ;;  %v5657_v15 = vmul.f32 0.00390625, %v11265_v50  ;;  %v6032_v50 = vmax.f32 %v13170_v51, %v13238_v19 }
 0x5df   : > { %v11267_v0 = vpop.f32.mrb[13].mxu0 }
 0x5e0   : > { %v11268_v35 = vadd.f32 %v11267_v0, %v11266_v62  ;;  %v5756_v63 = vsel %vm574_vm1, %v5657_v15, %v5738_v40  ;;  %v6039_v62 = vmax.f32 %v13167_v34, %v13233_v21  ;;  %v6046_v0 = vmax.f32 %v13158_v27, %v13175_v17 }
 0x5e1   : > { %v6033_v40 = vrot.slane %v6032_v50, 4 }
 0x5e2   : > { %v5658_v52 = vmul.f32 0.00390625, %v11268_v35  ;;  %v6053_v35 = vmax.f32 %v13098_v4, %v13163_v58 }
 0x5e4   : > { %v5757_v6 = vsel %vm574_vm1, %v5658_v52, %v5741_v47  ;;  %v6054_v15 = vrot.slane %v6053_v35, 4  ;;  %v6034_v47 = vmax.f32 %v6032_v50, %v6033_v40 }
 0x616   : > { %v5751_v16 = vpop.permute.xlu0 %5750 }
 0x617   : > { %v5758_v49 = vsel %vm577_vm2, %v5756_v63, %v5751_v16  ;;  %v6055_v16 = vmax.f32 %v6053_v35, %v6054_v15 }
 0x618   : > { %v5760_v53 = vsel %vm580_vm3, %v5758_v49, %v5744_v42  ;;  %v6040_v42 = vrot.slane %v6039_v62, 4  ;;  %v6035_v49 = vrot.slane %v6034_v47, 2 }
 0x619   : > { %5762 = vst.msk [vmem:[#allocation2 + $0x1] sm:$0xff] %vm583_vm4, %v5760_v53  ;;  %v6056_v19 = vrot.slane %v6055_v16, 2 }
 0x61a   : > { %v5753_v29 = vpop.permute.xlu1 %5752  ;;  %v6041_v63 = vmax.f32 %v6039_v62, %v6040_v42  ;;  %v6036_v34 = vmax.f32 %v6034_v47, %v6035_v49  ;;  %v8394_v49 = vld [vmem:[#allocation3 + $0xc] sm:$0xf] }
 0x61b   : > { %v5759_v18 = vsel %vm577_vm2, %v5757_v6, %v5753_v29  ;;  %v6057_v4 = vmax.f32 %v6055_v16, %v6056_v19 }
 0x61c   : > { %v5761_v56 = vsel %vm580_vm3, %v5759_v18, %v5747_v43  ;;  %v6047_v43 = vrot.slane %v6046_v0, 4  ;;  %v6042_v53 = vrot.slane %v6041_v63, 2  ;;  %v6037_v24 = vrot.slane %v6036_v34, 1 }
 0x61d   : > { %5763 = vst.msk [vmem:[#allocation2 + $0x9] sm:$0xff] %vm583_vm4, %v5761_v56  ;;  %v6058_v18 = vrot.slane %v6057_v4, 1 }
 0x61e   : > { %v6048_v52 = vmax.f32 %v6046_v0, %v6047_v43  ;;  %v6043_v27 = vmax.f32 %v6041_v63, %v6042_v53  ;;  %v6038_v57 = vmax.f32 %v6036_v34, %v6037_v24  ;;  %v8953_v53 = vld [vmem:[#allocation3 + $0xc] sm:$0xf] }
 0x61f   : > { %v9047_v24 = vld [vmem:[#allocation3 + $0xc] sm:$0xf] }
 0x620   : > { %v5766_v12 = vld [vmem:[#allocation2 + $0x1] sm:$0xff]  ;;  %v6049_v51 = vrot.slane %v6048_v52, 2  ;;  %v6044_v6 = vrot.slane %v6043_v27, 1 }
 0x621   : > { %5772 = vrot.lane.b32.xlu1 %v5766_v12, %s14656_s11  ;;  %v5764_v11 = vld [vmem:[#allocation2] sm:$0xff] }
 0x622   : > { %v6050_v17 = vmax.f32 %v6048_v52, %v6049_v51 }
 0x624   : > { %v5768_v61 = vld [vmem:[#allocation2 + $0x2] sm:$0xff]  ;;  %v5769_v60 = vld [vmem:[#allocation2 + $0xa] sm:$0xff]  ;;  %v6051_v29 = vrot.slane %v6050_v17, 1 }
 0x625   : > { %v5767_v2 = vld [vmem:[#allocation2 + $0x9] sm:$0xff]  ;;  %5780 = vrot.lane.b32.xlu0 %v5768_v61, %s14657_s9 }
 0x626   : > { %5774 = vrot.lane.b32.xlu1 %v5767_v2, %s14656_s11  ;;  %v5765_v48 = vld [vmem:[#allocation2 + $0x8] sm:$0xff]  ;;  %s14660_s11 = smov 83   ;;  %v6045_v2 = vmax.f32 %v6043_v27, %v6044_v6 }
 0x629   : > { %6548 = vrot.lane.b32.xlu0 %v6539_v26, %s14659_s26 }
 0x62a   : > { %5782 = vrot.lane.b32.xlu1 %v5769_v60, %s14657_s9  ;;  %s14661_s9 = smov 114  }
 0x62d   : > { %7107 = vrot.lane.b32.xlu0 %v7098_v20, %s14661_s9 }
 0x62e   : > { %6454 = vrot.lane.b32.xlu1 %v6445_v25, %s14658_s18 }
 0x631   : > { %7201 = vrot.lane.b32.xlu0 %v7192_v54, %s14663_s20 }
 0x632   : > { %6642 = vrot.lane.b32.xlu1 %v6633_v55, %s14660_s11 }
 0x636   : > { %7760 = vrot.lane.b32.xlu1 %v7751_v38, %s14662_s2 }
 0x63a   : > { %7854 = vrot.lane.b32.xlu1 %v7845_v10, %s14664_s3 }
 0x63e   : > { %7948 = vrot.lane.b32.xlu1 %v7939_v3, %s14636_s30 }
 0x693   : > { %v5773_v41 = vpop.permute.xlu1 %5772 }
 0x694   : > { %v5786_v44 = vsel %vm583_vm4, %v5764_v11, %v5773_v41  ;;  %v6052_v11 = vmax.f32 %v6050_v17, %v6051_v29 }
 0x697   : > { %v5781_v37 = vpop.permute.xlu0 %5780 }
 0x698   : > { %v5775_v33 = vpop.permute.xlu1 %5774  ;;  %v5788_v45 = vsel %vm610_vm8, %v5786_v44, %v5781_v37 }
 0x699   : > { %11322 = vmatprep.mubr.msk.f32.mxu0 %vm617_vm9, %v5788_v45  ;;  %v5787_v1 = vsel %vm583_vm4, %v5765_v48, %v5775_v33  ;;  %v6059_v33 = vmax.f32 %v6057_v4, %v6058_v18 }
 0x69b   : > { %v13450_v42 = vpop.permute.xlu0 %6548 }
 0x69c   : > { %v5783_v8 = vpop.permute.xlu1 %5782 }
 0x69d   : > { %v5789_v23 = vsel %vm610_vm8, %v5787_v1, %v5783_v8  ;;  %vm14667_vm8 = vmmov %vm14666_vm7 }
 0x69e   : > { %11323 = vmatmul.mubr.msk.f32.vlgmr.msra.gmra.mrb[14].mxu0 %vm617_vm9, %v5789_v23  ;;  %vm14685_vm9 = vcmask 285696  }
 0x69f   : > { %11412 = vmatpush1.bf16.msra.mxu0 %v11411_v59  ;;  %5950 = vmatprep.mubr.f32.mxu0 %v14603_v13  ;;  %v13464_v52 = vpop.permute.xlu0 %7107 }
 0x6a0   : > { %11414 = vmatprep.subr.bf16.mxu0 %v11413_v36  ;;  %v13444_v40 = vpop.permute.xlu1 %6454 }
 0x6a2   : > { %10986 = vmatmul.mubr.msk.f32.vlgmr.msra.gmra.mrb[16].mxu0 %vm711_vm10, %v11876_v5 }
 0x6a3   : > { %11416 = vmatpush1.bf16.msra.mxu0 %v11415_v22  ;;  %6023 = vmatprep.mubr.f32.mxu0 %v14603_v13  ;;  %v13472_v51 = vpop.permute.xlu0 %7201 }
 0x6a4   : > { %v13452_v43 = vpop.permute.xlu1 %6642 }
 0x6a6   : > { %10987 = vmatmul.mubr.msk.f32.vlgmr.msra.gmra.mrb[18].mxu0 %vm711_vm10, %v11876_v5  ;;  %v7286_v5 = vld [vmem:[#allocation3 + $0xc] sm:$0xf] }
 0x6a7   : > { %6163 = vmatprep.mubr.f32.mxu0 %v14603_v13  ;;  %7295 = vrot.lane.b32.xlu0 %v7286_v5, %s14665_s14 }
 0x6a8   : > { %v13466_v16 = vpop.permute.xlu1 %7760 }
 0x6ac   : > { %v13474_v19 = vpop.permute.xlu1 %7854 }
 0x6b0   : > { %v13484_v27 = vpop.permute.xlu1 %7948 }
 0x719   : > { %v13482_v34 = vpop.permute.xlu0 %7295 }
 0x771   : > { %v13350_v14 = vpop.f32.mrb[14].mxu0 }
 0x772   : > { %v13352_v21 = vpop.f32.mrb[15].mxu0 }
 0x775   : > { %v5952_v58 = vpop.f32.mrb[16].mxu0 }
 0x776   : > { %v5954_v46 = vpop.f32.mrb[17].mxu0  ;;  %v5957_v56 = vmul.f32 0.0625, %v5952_v58  ;;  %v8488_v58 = vld [vmem:[#allocation3 + $0xc] sm:$0xf] }
 0x777   : > { %v5958_v61 = vmul.f32 0.0625, %v5954_v46 }
 0x778   : > { %v6066_v45 = vsel %vm895_vm12, %v5957_v56, %v6038_v57 }
 0x779   : > { %v6025_v12 = vpop.f32.mrb[18].mxu0  ;;  %v6067_v59 = vsel %vm895_vm12, %v5958_v61, %v6045_v2  ;;  %v8582_v2 = vld [vmem:[#allocation3 + $0xc] sm:$0xf]  ;;  %vm14686_vm12 = vmmov %vm14685_vm9 }
 0x77a   : > { %v6030_v60 = vmul.f32 0.0625, %v6025_v12  ;;  %v6027_v41 = vpop.f32.mrb[19].mxu0 }
 0x77b   : > { %v6031_v44 = vmul.f32 0.0625, %v6027_v41 }
 0x77c   : > { %v6062_v37 = vrot.slane %v6030_v60, 6  ;;  %v9141_v60 = vld [vmem:[#allocation3 + $0xc] sm:$0xf] }
 0x77d   : > { %v6063_v48 = vrot.slane %v6031_v44, 6 }
 0x77e   : > { %v6068_v1 = vsel %vm898_vm13, %v6066_v45, %v6062_v37 }
 0x77f   : > { %v6070_v8 = vsel %vm14666_vm7, %v6068_v1, %v6052_v11  ;;  %v6069_v36 = vsel %vm898_vm13, %v6067_v59, %v6063_v48  ;;  %vm14689_vm13 = vcmask 1043456  }
 0x780   : > { %v13360_v23 = vsel %vm14667_vm8, %v6069_v36, %v6059_v33  ;;  %v11924_v33 = vmov 0   ;;  %vm14690_vm7 = vmmov %vm14689_vm13  ;;  %vm14691_vm8 = vcmask 416768  }
 0x781   : > { %v13363_v22 = vcombine.low %v6070_v8, %v13360_v23  ;;  %v13458_v63 = vcombine.low %v13360_v23, %v13360_v23  ;;  %11695 = vset.pattern.permute.xlu1 %v11924_v33  ;;  %11694 = vset.pattern.permute.xlu0 %v11924_v33  ;;  %v9235_v8 = vld [vmem:[#allocation3 + $0xc] sm:$0xf]  ;;  %vm14694_vm5 = vmmov %vm14690_vm7 }
 0x783   : > { %6076 = vst [vmem:[#allocation3 + $0x4] sm:$0xff] %v13363_v22 }
 0x78a   : > { %v6078_v25 = vld [vmem:[#allocation3 + $0x8] sm:$0xf]  ;;  %v13366_v26 = vld [vmem:[#allocation3] sm:$0xff] }
 0x78b   : > { %6088 = vrot.lane.b32.xlu1 %v6078_v25, %s14668_s7  ;;  %6084 = vrot.lane.b32.xlu0 %v13366_v26, %s14668_s7  ;;  %v6257_v55 = vld [vmem:[#allocation3 + $0x8] sm:$0xf]  ;;  %v13422_v62 = vcombine.high %v13366_v26, %v13366_v26 }
 0x78c   : > { %v6351_v20 = vld [vmem:[#allocation3 + $0x8] sm:$0xf] }
 0x78d   : > { %v7384_v38 = vld [vmem:[#allocation3 + $0x8] sm:$0xf] }
 0x78e   : > { %v6731_v54 = vld [vmem:[#allocation3 + $0x8] sm:$0xf] }
 0x78f   : > { %6170 = vrot.lane.b32.xlu1 %v13366_v26, %s14669_s23  ;;  %6174 = vrot.lane.b32.xlu0 %v6078_v25, %s14669_s23  ;;  %v7563_v10 = vld [vmem:[#allocation3 + $0x8] sm:$0xf] }
 0x790   : > { %v6910_v5 = vld [vmem:[#allocation3 + $0x8] sm:$0xf] }
 0x791   : > { %v7657_v3 = vld [vmem:[#allocation3 + $0x8] sm:$0xf] }
 0x792   : > { %v7004_v50 = vld [vmem:[#allocation3 + $0x8] sm:$0xf] }
 0x793   : > { %6266 = vrot.lane.b32.xlu1 %v6257_v55, %s14670_s25  ;;  %6262 = vrot.lane.b32.xlu0 %v13366_v26, %s14670_s25  ;;  %v8680_v0 = vld [vmem:[#allocation3 + $0x8] sm:$0xf] }
 0x794   : > { %v8037_v35 = vld [vmem:[#allocation3 + $0x8] sm:$0xf] }
 0x795   : > { %v8859_v15 = vld [vmem:[#allocation3 + $0x8] sm:$0xf] }
 0x796   : > { %v8216_v47 = vld [vmem:[#allocation3 + $0x8] sm:$0xf] }
 0x797   : > { %6356 = vrot.lane.b32.xlu1 %v13366_v26, %s14671_s29  ;;  %6360 = vrot.lane.b32.xlu0 %v6351_v20, %s14671_s29  ;;  %v9333_v25 = vld [vmem:[#allocation3 + $0x8] sm:$0xf] }
 0x79b   : > { %6544 = vrot.lane.b32.xlu1 %v13363_v22, %s14659_s26  ;;  %6450 = vrot.lane.b32.xlu0 %v13363_v22, %s14658_s18 }
 0x79f   : > { %6737 = vrot.lane.b32.xlu1 %v13366_v26, %s14672_s27  ;;  %6638 = vrot.lane.b32.xlu0 %v13363_v22, %s14660_s11 }
 0x7a3   : > { %7394 = vrot.lane.b32.xlu1 %v7384_v38, %s14673_s1  ;;  %6741 = vrot.lane.b32.xlu0 %v6731_v54, %s14672_s27 }
 0x7a7   : > { %6823 = vrot.lane.b32.xlu1 %v13366_v26, %s14674_s5  ;;  %7390 = vrot.lane.b32.xlu0 %v13366_v26, %s14673_s1 }
 0x7ab   : > { %7480 = vrot.lane.b32.xlu1 %v7384_v38, %s14675_s4  ;;  %6827 = vrot.lane.b32.xlu0 %v6731_v54, %s14674_s5 }
 0x7af   : > { %6915 = vrot.lane.b32.xlu1 %v13366_v26, %s14676_s21  ;;  %7476 = vrot.lane.b32.xlu0 %v13366_v26, %s14675_s4 }
 0x7b3   : > { %7572 = vrot.lane.b32.xlu1 %v7563_v10, %s14677_s10  ;;  %6919 = vrot.lane.b32.xlu0 %v6910_v5, %s14676_s21 }
 0x7b7   : > { %7009 = vrot.lane.b32.xlu1 %v13366_v26, %s14655_s28  ;;  %7568 = vrot.lane.b32.xlu0 %v13366_v26, %s14677_s10 }
 0x7bb   : > { %7666 = vrot.lane.b32.xlu1 %v7657_v3, %s14635_s19  ;;  %7013 = vrot.lane.b32.xlu0 %v7004_v50, %s14655_s28 }
 0x7bf   : > { %7103 = vrot.lane.b32.xlu1 %v13363_v22, %s14661_s9  ;;  %7662 = vrot.lane.b32.xlu0 %v13366_v26, %s14635_s19 }
 0x7c3   : > { %7197 = vrot.lane.b32.xlu1 %v13363_v22, %s14663_s20  ;;  %7756 = vrot.lane.b32.xlu0 %v13363_v22, %s14662_s2 }
 0x7c7   : > { %7291 = vrot.lane.b32.xlu1 %v13363_v22, %s14665_s14  ;;  %7850 = vrot.lane.b32.xlu0 %v13363_v22, %s14664_s3  ;;  %s14678_s14 = smov 31  }
 0x7cb   : > { %6172 = vrot.lane.b32.xlu1 %v13422_v62, %s14669_s23  ;;  %6086 = vrot.lane.b32.xlu0 %v13422_v62, %s14668_s7  ;;  %s14688_s23 = sld [smem:[#allocation31_spill]]  ;;  %s14884_s7 = sld [smem:[#allocation24_spill]] }
 0x7cf   : > { %8043 = vrot.lane.b32.xlu1 %v13366_v26, %s14643_s15  ;;  %7944 = vrot.lane.b32.xlu0 %v13363_v22, %s14636_s30 }
 0x7d3   : > { %8690 = vrot.lane.b32.xlu1 %v8680_v0, %s14678_s14  ;;  %8047 = vrot.lane.b32.xlu0 %v8037_v35, %s14643_s15 }
 0x7d7   : > { %8129 = vrot.lane.b32.xlu1 %v13366_v26, %s14645_s24  ;;  %8686 = vrot.lane.b32.xlu0 %v13366_v26, %s14678_s14 }
 0x7db   : > { %6358 = vrot.lane.b32.xlu1 %v13422_v62, %s14671_s29  ;;  %6264 = vrot.lane.b32.xlu0 %v13422_v62, %s14670_s25  ;;  %s14679_s29 = smov 15  }
 0x7df   : > { %8776 = vrot.lane.b32.xlu1 %v8680_v0, %s14637_s13  ;;  %8133 = vrot.lane.b32.xlu0 %v8037_v35, %s14645_s24 }
 0x7e3   : > { %8221 = vrot.lane.b32.xlu1 %v13366_v26, %s14648_s8  ;;  %8772 = vrot.lane.b32.xlu0 %v13366_v26, %s14637_s13 }
 0x7e7   : > { %8868 = vrot.lane.b32.xlu1 %v8859_v15, %s14679_s29  ;;  %8225 = vrot.lane.b32.xlu0 %v8216_v47, %s14648_s8  ;;  %v9986_v15 = vld [vmem:[#allocation3 + $0x8] sm:$0xf] }
 0x7eb   : > { %6546 = vrot.lane.b32.xlu1 %v13458_v63, %s14659_s26  ;;  %6452 = vrot.lane.b32.xlu0 %v13458_v63, %s14658_s18  ;;  %s14713_s18 = smov 110  }
 0x7ef   : > { %8958 = vrot.lane.b32.xlu1 %v13363_v22, %s14639_s17  ;;  %8864 = vrot.lane.b32.xlu0 %v13366_v26, %s14679_s29 }
 0x7f3   : > { %8403 = vrot.lane.b32.xlu1 %v8394_v49, %s14650_s0  ;;  %8962 = vrot.lane.b32.xlu0 %v8953_v53, %s14639_s17 }
 0x7f7   : > { %6739 = vrot.lane.b32.xlu1 %v13422_v62, %s14672_s27  ;;  %8399 = vrot.lane.b32.xlu0 %v13363_v22, %s14650_s0  ;;  %s14682_s27 = smov 82  }
 0x7fb   : > { %9052 = vrot.lane.b32.xlu1 %v13363_v22, %s14640_s16  ;;  %6640 = vrot.lane.b32.xlu0 %v13458_v63, %s14660_s11 }
 0x7fd   : > { %v13490_v17 = vpop.permute.xlu1 %6088  ;;  %v13492_v4 = vpop.permute.xlu0 %6084 }
 0x7ff   : > { %6825 = vrot.lane.b32.xlu1 %v13422_v62, %s14674_s5  ;;  %7392 = vrot.lane.b32.xlu0 %v13422_v62, %s14673_s1  ;;  %s14680_s1 = smov 95   ;;  %s14885_s5 = sld [smem:[#allocation22_spill]] }
 0x801   : > { %v13498_v46 = vpop.permute.xlu1 %6170  ;;  %v13500_v6 = vpop.permute.xlu0 %6174 }
 0x803   : > { %8497 = vrot.lane.b32.xlu1 %v8488_v58, %s14652_s12  ;;  %9056 = vrot.lane.b32.xlu0 %v9047_v24, %s14640_s16 }
 0x805   : > { %v13504_v29 = vpop.permute.xlu1 %6266  ;;  %v13506_v18 = vpop.permute.xlu0 %6262  ;;  %p14887_p1 = scmp.ne.s32.totalorder %s14885_s5, 0 }
 0x807   : > { %6917 = vrot.lane.b32.xlu1 %v13422_v62, %s14676_s21  ;;  %7478 = vrot.lane.b32.xlu0 %v13422_v62, %s14675_s4  ;;  %s14681_s4 = smov 80   ;;  %s14710_s21 = smov 125  }
 0x809   : > { %v13512_v56 = vpop.permute.xlu1 %6356  ;;  %v13514_v57 = vpop.permute.xlu0 %6360 }
 0x80b   : > { %9146 = vrot.lane.b32.xlu1 %v13363_v22, %s14680_s1  ;;  %8493 = vrot.lane.b32.xlu0 %v13363_v22, %s14652_s12 }
 0x80d   : > { %v13520_v12 = vpop.permute.xlu1 %6544  ;;  %v13522_v61 = vpop.permute.xlu0 %6450 }
 0x80f   : > { %7011 = vrot.lane.b32.xlu1 %v13422_v62, %s14655_s28  ;;  %7570 = vrot.lane.b32.xlu0 %v13422_v62, %s14677_s10  ;;  %s14702_s10 = smov 126  }
 0x811   : > { %v13528_v41 = vpop.permute.xlu1 %6737  ;;  %v13530_v11 = vpop.permute.xlu0 %6638 }
 0x813   : > { %8591 = vrot.lane.b32.xlu1 %v8582_v2, %s14681_s4  ;;  %9150 = vrot.lane.b32.xlu0 %v9141_v60, %s14680_s1  ;;  %v6080_v60 = vld [vmem:[%s14688_s23 + $0x7] sm:$0x1] }
 0x815   : > { %v13534_v44 = vpop.permute.xlu1 %7394  ;;  %v13536_v37 = vpop.permute.xlu0 %6741 }
 0x817   : > { %7105 = vrot.lane.b32.xlu1 %v13458_v63, %s14661_s9  ;;  %7664 = vrot.lane.b32.xlu0 %v13422_v62, %s14635_s19  ;;  %s13778_s9 = sld [smem:[#allocation4]]  ;;  %s14886_s19 = sld [smem:[#allocation32_spill]] }
 0x819   : > { %v13542_v45 = vpop.permute.xlu1 %6823  ;;  %v13544_v48 = vpop.permute.xlu0 %7390 }
 0x81b   : > { %9240 = vrot.lane.b32.xlu1 %v13363_v22, %s14642_s22  ;;  %8587 = vrot.lane.b32.xlu0 %v13363_v22, %s14681_s4 }
 0x81d   : > { %v13550_v59 = vpop.permute.xlu1 %7480  ;;  %v13552_v1 = vpop.permute.xlu0 %6827 }
 0x81f   : > { %7199 = vrot.lane.b32.xlu1 %v13458_v63, %s14663_s20  ;;  %7758 = vrot.lane.b32.xlu0 %v13458_v63, %s14662_s2  ;;  %s14683_s2 = smov 29   ;;  %s14687_s20 = smov 45  }
 0x821   : > { %v13558_v36 = vpop.permute.xlu1 %6915  ;;  %v13560_v23 = vpop.permute.xlu0 %7476 }
 0x823   : > { %9343 = vrot.lane.b32.xlu1 %v9333_v25, %s14653_s6  ;;  %9244 = vrot.lane.b32.xlu0 %v9235_v8, %s14642_s22 }
 0x825   : > { %v13564_v55 = vpop.permute.xlu1 %7572  ;;  %v13566_v20 = vpop.permute.xlu0 %6919 }
 0x827   : > { %7293 = vrot.lane.b32.xlu1 %v13458_v63, %s14682_s27  ;;  %7852 = vrot.lane.b32.xlu0 %v13458_v63, %s14664_s3  ;;  %s14684_s3 = smov 46  }
 0x829   : > { %v13572_v38 = vpop.permute.xlu1 %7009  ;;  %v13574_v54 = vpop.permute.xlu0 %7568 }
 0x82b   : > { %8045 = vrot.lane.b32.xlu1 %v13422_v62, %s14643_s15  ;;  %9339 = vrot.lane.b32.xlu0 %v13366_v26, %s14653_s6  ;;  %s14745_s15 = smov 78  }
 0x82d   : > { %v13580_v10 = vpop.permute.xlu1 %7666  ;;  %v13582_v5 = vpop.permute.xlu0 %7013 }
 0x82f   : > { %9992 = vrot.lane.b32.xlu1 %v13366_v26, %s14683_s2  ;;  %7946 = vrot.lane.b32.xlu0 %v13458_v63, %s14636_s30  ;;  %s14738_s30 = smov 93  }
 0x831   : > { %v13588_v3 = vpop.permute.xlu1 %7103  ;;  %v13590_v50 = vpop.permute.xlu0 %7662 }
 0x833   : > { %8131 = vrot.lane.b32.xlu1 %v13422_v62, %s14645_s24  ;;  %8688 = vrot.lane.b32.xlu0 %v13422_v62, %s14678_s14  ;;  %s11925_s24 = smov [#allocation11]  }
 0x835   : > { %v13596_v0 = vpop.permute.xlu1 %7197  ;;  %v13598_v35 = vpop.permute.xlu0 %7756 }
 0x837   : > { %9429 = vrot.lane.b32.xlu1 %v9333_v25, %s14684_s3  ;;  %9996 = vrot.lane.b32.xlu0 %v9986_v15, %s14683_s2 }
 0x839   : > { %v13602_v47 = vpop.permute.xlu1 %7291  ;;  %v13604_v49 = vpop.permute.xlu0 %7850 }
 0x83b   : > { %8223 = vrot.lane.b32.xlu1 %v13422_v62, %s14648_s8  ;;  %8774 = vrot.lane.b32.xlu0 %v13422_v62, %s14637_s13  ;;  %s14695_s13 = smov 14  }
 0x83d   : > { %v6173_v53 = vpop.permute.xlu1 %6172  ;;  %v6087_v58 = vpop.permute.xlu0 %6086 }
 0x83e   : > { %v6090_v24 = vsel %vm14685_vm9, %v13492_v4, %v6087_v58  ;;  %v6091_v2 = vsel %vm14686_vm12, %v6087_v58, %v13490_v17  ;;  %v6177_v4 = vsel %vm14691_vm8, %v6173_v53, %v13500_v6  ;;  %vm14692_vm9 = vmmov %vm14691_vm8  ;;  %v9512_v58 = vld [vmem:[#allocation3 + $0x8] sm:$0xf] }
 0x83f   : > { %10078 = vrot.lane.b32.xlu1 %v13366_v26, %s14687_s20  ;;  %9425 = vrot.lane.b32.xlu0 %v13366_v26, %s14684_s3  ;;  %v6176_v8 = vsel %vm14692_vm9, %v13498_v46, %v6173_v53  ;;  %vm14693_vm12 = vmmov %vm14690_vm7  ;;  %v6079_v46 = vld [vmem:[%s14688_s23] sm:$0x1] }
 0x840   : > { %10988 = vmatprep.subr.msk.mxu0 %vm14689_vm13, %v6091_v2  ;;  %vm14699_vm8 = vmmov %vm14690_vm7 }
 0x841   : > { %10989 = vmatpush1.msk.msra.mxu0 %vm14690_vm7, %v6090_v24  ;;  %v13623_v33 = vpop.permute.xlu1 %8043  ;;  %v13627_v17 = vpop.permute.xlu0 %7944  ;;  %vm14700_vm9 = vmmov %vm14690_vm7 }
 0x842   : > { %10990 = vmatmul.mubr.msk.f32.vlgmr.msra.gmra.mrb[20].mxu0 %vm583_vm4, %v6080_v60  ;;  %10991 = vmatprep.subr.msk.mxu0 %vm14693_vm12, %v6177_v4  ;;  %vm14701_vm12 = vmmov %vm14690_vm7 }
 0x843   : > { %10992 = vmatpush1.msk.msra.mxu0 %vm14694_vm5, %v6176_v8  ;;  %8960 = vrot.lane.b32.xlu1 %v13458_v63, %s14639_s17  ;;  %vm14696_vm5 = vcmask 154624   ;;  %s14698_s17 = smov 13   ;;  %v6258_v8 = vld [vmem:[%s14688_s23 + $0xe] sm:$0x1] }
 0x844   : > { %8866 = vrot.lane.b32.xlu0 %v13422_v62, %s14679_s29  ;;  %6249 = vmatprep.mubr.f32.mxu0 %v14603_v13  ;;  %vm14697_vm13 = vmmov %vm14696_vm5  ;;  %s14724_s29 = smov 109  }
 0x845   : > { %v13639_v6 = vpop.permute.xlu1 %8690  ;;  %v13641_v25 = vpop.permute.xlu0 %8047 }
 0x847   : > { %9521 = vrot.lane.b32.xlu1 %v9512_v58, %s14695_s13 }
 0x848   : > { %10082 = vrot.lane.b32.xlu0 %v9986_v15, %s14687_s20 }
 0x849   : > { %v13648_v53 = vpop.permute.xlu1 %8129  ;;  %v13650_v24 = vpop.permute.xlu0 %8686 }
 0x84a   : > { %10993 = vmatmul.mubr.msk.f32.vlgmr.msra.gmra.mrb[20].mxu0 %vm583_vm4, %v6079_v46  ;;  %v9606_v46 = vld [vmem:[#allocation3 + $0xc] sm:$0xf] }
 0x84b   : > { %9054 = vrot.lane.b32.xlu1 %v13458_v63, %s14640_s16  ;;  %6341 = vmatprep.mubr.f32.mxu0 %v14603_v13 }
 0x84c   : > { %9517 = vrot.lane.b32.xlu0 %v13366_v26, %s14695_s13 }
 0x84d   : > { %v6359_v2 = vpop.permute.xlu1 %6358  ;;  %v6265_v60 = vpop.permute.xlu0 %6264 }
 0x84e   : > { %v6268_v4 = vsel %vm14696_vm5, %v13506_v18, %v6265_v60  ;;  %v6269_v15 = vsel %vm14697_vm13, %v6265_v60, %v13504_v29  ;;  %v6363_v58 = vsel %vm580_vm3, %v6359_v2, %v13514_v57  ;;  %v10165_v57 = vld [vmem:[#allocation3 + $0x8] sm:$0xf]  ;;  %vm14705_vm13 = vmmov %vm14690_vm7 }
 0x84f   : > { %10170 = vrot.lane.b32.xlu1 %v13366_v26, %s14698_s17  ;;  %10994 = vmatprep.subr.msk.mxu0 %vm14690_vm7, %v6269_v15  ;;  %v6362_v26 = vsel %vm580_vm3, %v13512_v56, %v6359_v2  ;;  %v6352_v56 = vld [vmem:[%s14688_s23 + $0x15] sm:$0x1]  ;;  %vm14703_vm3 = vcmask 941056   ;;  %vm14706_vm7 = vcmask 809984  }
 0x850   : > { %8401 = vrot.lane.b32.xlu0 %v13458_v63, %s14650_s0  ;;  %10995 = vmatpush1.msk.msra.mxu0 %vm14699_vm8, %v6268_v4  ;;  %vm14704_vm5 = vmmov %vm14703_vm3  ;;  %s14750_s0 = smov 77  }
 0x851   : > { %v13673_v18 = vpop.permute.xlu1 %8776  ;;  %10997 = vmatprep.subr.msk.mxu0 %vm14700_vm9, %v6363_v58  ;;  %v13676_v29 = vpop.permute.xlu0 %8133  ;;  %vm14707_vm9 = vmmov %vm14699_vm8 }
 0x852   : > { %10996 = vmatmul.mubr.msk.f32.vlgmr.msra.gmra.mrb[20].mxu0 %vm583_vm4, %v6258_v8 }
 0x853   : > { %10998 = vmatpush1.msk.msra.mxu0 %vm14701_vm12, %v6362_v26  ;;  %9148 = vrot.lane.b32.xlu1 %v13458_v63, %s14680_s1  ;;  %vm14708_vm12 = vmmov %vm14706_vm7  ;;  %s14871_s1 = sld [smem:[#allocation26_spill]] }
 0x854   : > { %10174 = vrot.lane.b32.xlu0 %v10165_v57, %s14698_s17  ;;  %6435 = vmatprep.mubr.f32.mxu0 %v14603_v13 }
 0x855   : > { %v13686_v60 = vpop.permute.xlu1 %8221  ;;  %v13688_v4 = vpop.permute.xlu0 %8772 }
 0x857   : > { %9615 = vrot.lane.b32.xlu1 %v9606_v46, %s14702_s10  ;;  %v6446_v46 = vld [vmem:[%s14688_s23 + $0x1c] sm:$0x1] }
 0x858   : > { %8495 = vrot.lane.b32.xlu0 %v13458_v63, %s14652_s12  ;;  %s11798_s12 = sshll.u32 %s11925_s24, 4  ;;  %s11799_s12 = int_to_ptr.vmem [resolvable:$false] %s11798_s12 }
 0x859   : > { %v13696_v2 = vpop.permute.xlu1 %8868  ;;  %v13698_v15 = vpop.permute.xlu0 %8225 }
 0x85a   : > { %10999 = vmatmul.mubr.msk.f32.vlgmr.msra.gmra.mrb[20].mxu0 %vm583_vm4, %v6352_v56 }
 0x85b   : > { %9242 = vrot.lane.b32.xlu1 %v13458_v63, %s14642_s22  ;;  %6529 = vmatprep.mubr.f32.mxu0 %v14603_v13  ;;  %s11800_s22 = scalar_lea.vmem %s11799_s12, 2048 }
 0x85c   : > { %9611 = vrot.lane.b32.xlu0 %v13363_v22, %s14702_s10 }
 0x85d   : > { %v6547_v8 = vpop.permute.xlu1 %6546  ;;  %v6453_v58 = vpop.permute.xlu0 %6452 }
 0x85e   : > { %v6456_v26 = vsel %vm14703_vm3, %v13522_v61, %v6453_v58  ;;  %v6457_v57 = vsel %vm14704_vm5, %v6453_v58, %v13444_v40  ;;  %v6551_v56 = vsel %vm14706_vm7, %v6547_v8, %v13450_v42  ;;  %v6550_v58 = vsel %vm14708_vm12, %v13520_v12, %v6547_v8  ;;  %vm14709_vm3 = vmmov %vm14699_vm8  ;;  %v6540_v12 = vld [vmem:[%s14688_s23 + $0x23] sm:$0x1]  ;;  %v9700_v8 = vld [vmem:[#allocation3 + $0xc] sm:$0xf] }
 0x85f   : > { %9994 = vrot.lane.b32.xlu1 %v13422_v62, %s14683_s2  ;;  %11000 = vmatprep.subr.msk.mxu0 %vm14705_vm13, %v6457_v57  ;;  %v10259_v57 = vld [vmem:[#allocation3 + $0xc] sm:$0xf]  ;;  %vm14711_vm5 = vcmask 277504   ;;  %vm14714_vm7 = vmmov %vm14709_vm3 }
 0x860   : > { %8589 = vrot.lane.b32.xlu0 %v13458_v63, %s14681_s4  ;;  %11001 = vmatpush1.msk.msra.mxu0 %vm14699_vm8, %v6456_v26  ;;  %vm14712_vm13 = vmmov %vm14711_vm5 }
 0x861   : > { %v13721_v61 = vpop.permute.xlu1 %8958  ;;  %11003 = vmatprep.subr.msk.mxu0 %vm14707_vm9, %v6551_v56  ;;  %v13724_v40 = vpop.permute.xlu0 %8864  ;;  %vm14715_vm8 = vmmov %vm14709_vm3  ;;  %vm14717_vm9 = vcmask 678912  }
 0x862   : > { %11002 = vmatmul.mubr.msk.f32.vlgmr.msra.gmra.mrb[20].mxu0 %vm583_vm4, %v6446_v46  ;;  %vm14718_vm12 = vmmov %vm14717_vm9 }
 0x863   : > { %11004 = vmatpush1.msk.msra.mxu0 %vm14709_vm3, %v6550_v58  ;;  %10264 = vrot.lane.b32.xlu1 %v13363_v22, %s14710_s21 }
 0x864   : > { %9341 = vrot.lane.b32.xlu0 %v13422_v62, %s14653_s6  ;;  %6623 = vmatprep.mubr.f32.mxu0 %v14603_v13  ;;  %v6733_v13 = vld [vmem:[%s14688_s23 + $0x8] sm:$0x1] }
 0x865   : > { %v13735_v42 = vpop.permute.xlu1 %8403  ;;  %v13737_v26 = vpop.permute.xlu0 %8962 }
 0x867   : > { %10080 = vrot.lane.b32.xlu1 %v13422_v62, %s14687_s20  ;;  %s14732_s20 = smov 94  }
 0x868   : > { %10268 = vrot.lane.b32.xlu0 %v10259_v57, %s14710_s21  ;;  %v14716_v57 = vmov 0.0  }
 0x869   : > { %v6740_v46 = vpop.permute.xlu1 %6739  ;;  %v13745_v56 = vpop.permute.xlu0 %8399 }
 0x86a   : > { %v6743_v58 = vsel %vm14711_vm5, %v13528_v41, %v6740_v46  ;;  %v6744_v30 = vsel %vm14712_vm13, %v6740_v46, %v13536_v37  ;;  %11005 = vmatmul.mubr.msk.f32.vlgmr.msra.gmra.mrb[20].mxu0 %vm583_vm4, %v6540_v12  ;;  %vm14719_vm5 = vmmov %vm14709_vm3  ;;  %vm14720_vm13 = vcmask 408576  }
 0x86b   : > { %9709 = vrot.lane.b32.xlu1 %v9700_v8, %s14713_s18  ;;  %11009 = vmatprep.subr.msk.mxu1 %vm14714_vm7, %v6744_v30  ;;  %vm14721_vm7 = vmmov %vm14720_vm13 }
 0x86c   : > { %9427 = vrot.lane.b32.xlu0 %v13422_v62, %s14684_s3  ;;  %11010 = vmatpush1.msk.msra.mxu1 %vm14715_vm8, %v6743_v58  ;;  %vm14722_vm8 = vcmask 269312   ;;  %s13801_s3 = sld [smem:[#allocation4]] }
 0x86d   : > { %11011 = vmatmul.mubr.msk.f32.vlgmr.msra.gmra.mrb[22].mxu1 %vm583_vm4, %v6733_v13  ;;  %v13761_v41 = vpop.permute.xlu1 %9052  ;;  %v6641_v37 = vpop.permute.xlu0 %6640  ;;  %6717 = vmatprep.mubr.f32.mxu0 %v14716_v57  ;;  %v6634_v13 = vld [vmem:[%s14688_s23 + $0x2a] sm:$0x1] }
 0x86e   : > { %v6644_v12 = vsel %vm14717_vm9, %v13530_v11, %v6641_v37  ;;  %v6645_v8 = vsel %vm14718_vm12, %v6641_v37, %v13452_v43  ;;  %6902 = vmatprep.mubr.f32.mxu1 %v14716_v57  ;;  %vm14723_vm9 = vmmov %vm14722_vm8 }
 0x86f   : > { %10172 = vrot.lane.b32.xlu1 %v13422_v62, %s14698_s17  ;;  %11006 = vmatprep.subr.msk.mxu0 %vm14709_vm3, %v6645_v8  ;;  %vm14725_vm12 = vmmov %vm14709_vm3  ;;  %v616_v8 = vstv %s13778_s9  ;;  %s5514_s17 = sld [smem:[#allocation5]] }
 0x870   : > { %9705 = vrot.lane.b32.xlu0 %v13363_v22, %s14713_s18  ;;  %11007 = vmatpush1.msk.msra.mxu0 %vm14719_vm5, %v6644_v12  ;;  %vm14726_vm5 = vmmov %vm14709_vm3  ;;  %v10353_v12 = vld [vmem:[#allocation3 + $0xc] sm:$0xf] }
 0x871   : > { %v6826_v30 = vpop.permute.xlu1 %6825  ;;  %v7393_v43 = vpop.permute.xlu0 %7392 }
 0x872   : > { %v6829_v11 = vsel %vm14720_vm13, %v13542_v45, %v6826_v30  ;;  %v6830_v46 = vsel %vm14721_vm7, %v6826_v30, %v13552_v1  ;;  %11008 = vmatmul.mubr.msk.f32.vlgmr.msra.gmra.mrb[20].mxu0 %vm583_vm4, %v6634_v13  ;;  %v7396_v58 = vsel %vm14722_vm8, %v13544_v48, %v7393_v43  ;;  %v7397_v37 = vsel %vm14723_vm9, %v7393_v43, %v13534_v44  ;;  %v6732_v45 = vld [vmem:[%s14688_s23 + $0x1] sm:$0x1]  ;;  %v7386_v48 = vld [vmem:[%s14688_s23 + $0x9] sm:$0x1]  ;;  %vm14727_vm13 = vmmov %vm14709_vm3 }
 0x873   : > { %10358 = vrot.lane.b32.xlu1 %v13363_v22, %s14724_s29  ;;  %11012 = vmatprep.subr.msk.mxu1 %vm14725_vm12, %v6830_v46  ;;  %vm14728_vm7 = vcmask 146432   ;;  %vm14730_vm9 = vcmask 400384  }
 0x874   : > { %9519 = vrot.lane.b32.xlu0 %v13422_v62, %s14695_s13  ;;  %11030 = vmatprep.subr.msk.mxu0 %vm14709_vm3, %v7397_v37  ;;  %v9794_v62 = vld [vmem:[#allocation3 + $0xc] sm:$0xf]  ;;  %vm14729_vm8 = vmmov %vm14728_vm7  ;;  %v6911_v37 = vld [vmem:[%s14688_s23 + $0xf] sm:$0x1] }
 0x875   : > { %11013 = vmatpush1.msk.msra.mxu1 %vm14726_vm5, %v6829_v11  ;;  %11031 = vmatpush1.msk.msra.mxu0 %vm14727_vm13, %v7396_v58  ;;  %v13805_v44 = vpop.permute.xlu1 %8497  ;;  %v13807_v1 = vpop.permute.xlu0 %9056  ;;  %vm14731_vm12 = vmmov %vm14730_vm9 }
 0x876   : > { %7469 = vmatprep.mubr.f32.mxu0 %v14716_v57  ;;  %11014 = vmatmul.mubr.msk.f32.vlgmr.msra.gmra.mrb[22].mxu1 %vm583_vm4, %v6732_v45  ;;  %v700_v45 = vadd.f32 %v12287_v28, %v616_v8  ;;  %vm14733_vm5 = vmmov %vm14709_vm3  ;;  %v695_v28 = vadd.f32 %v12289_v9, %v616_v8 }
 0x877   : > { %11032 = vmatmul.mubr.msk.f32.vlgmr.msra.gmra.mrb[22].mxu0 %vm583_vm4, %v7386_v48  ;;  %10266 = vrot.lane.b32.xlu1 %v13458_v63, %s14710_s21  ;;  %vm14734_vm13 = vmmov %vm14709_vm3 }
 0x878   : > { %10362 = vrot.lane.b32.xlu0 %v10353_v12, %s14724_s29  ;;  %6994 = vmatprep.mubr.f32.mxu1 %v14716_v57  ;;  %v704_v48 = vmul.f32 0.5, %v700_v45 }
 0x879   : > { %v6918_v13 = vpop.permute.xlu1 %6917  ;;  %v7479_v30 = vpop.permute.xlu0 %7478  ;;  %7555 = vmatprep.mubr.f32.mxu0 %v14716_v57 }
 0x87a   : > { %v6921_v43 = vsel %vm14728_vm7, %v13558_v36, %v6918_v13  ;;  %v6922_v11 = vsel %vm14729_vm8, %v6918_v13, %v13566_v20  ;;  %v7482_v46 = vsel %vm14730_vm9, %v13560_v23, %v7479_v30  ;;  %v7483_v58 = vsel %vm14731_vm12, %v7479_v30, %v13550_v59  ;;  %v7385_v36 = vld [vmem:[%s14688_s23 + $0x2] sm:$0x1]  ;;  %vm14735_vm7 = vmmov %vm14709_vm3 }
 0x87b   : > { %9803 = vrot.lane.b32.xlu1 %v9794_v62, %s14732_s20  ;;  %11015 = vmatprep.subr.msk.mxu1 %vm14709_vm3, %v6922_v11  ;;  %v5793_v59 = vstv %s13801_s3  ;;  %vm14736_vm8 = vcmask 138240   ;;  %vm14739_vm12 = vmmov %vm14709_vm3  ;;  %v7005_v11 = vld [vmem:[%s14688_s23 + $0x16] sm:$0x1]  ;;  %11700 = vtanh.f32 %v704_v48  ;;  %s10638_s3 = sld [smem:[#allocation5]] }
 0x87c   : > { %9613 = vrot.lane.b32.xlu0 %v13458_v63, %s14702_s10  ;;  %11033 = vmatprep.subr.msk.mxu0 %vm14733_vm5, %v7483_v58  ;;  %v5870_v12 = vadd.f32 %v13352_v21, %v5793_v59  ;;  %vm14737_vm9 = vmmov %vm14736_vm8  ;;  %v10447_v58 = vld [vmem:[#allocation3 + $0xc] sm:$0xf]  ;;  %s10698_s10 = scalar_lea.sflag [#allocation8], %s14884_s7 }
 0x87d   : > { %11016 = vmatpush1.msk.msra.mxu1 %vm14734_vm13, %v6921_v43  ;;  %11034 = vmatpush1.msk.msra.mxu0 %vm14735_vm7, %v7482_v46  ;;  %v13841_v23 = vpop.permute.xlu1 %9146  ;;  %v13843_v20 = vpop.permute.xlu0 %8493  ;;  %v703_v43 = vmul.f32 0.5, %v695_v28  ;;  %vm14743_vm13 = vcmask 932864  }
 0x87e   : > { %11017 = vmatmul.mubr.msk.f32.vlgmr.msra.gmra.mrb[22].mxu1 %vm583_vm4, %v6911_v37  ;;  %v9888_v37 = vld [vmem:[#allocation3 + $0xc] sm:$0xf]  ;;  %vm14744_vm7 = vmmov %vm14743_vm13 }
 0x87f   : > { %11035 = vmatmul.mubr.msk.f32.vlgmr.msra.gmra.mrb[22].mxu0 %vm583_vm4, %v7385_v36  ;;  %10360 = vrot.lane.b32.xlu1 %v13458_v63, %s14724_s29  ;;  %11702 = vtanh.f32 %v703_v43  ;;  %s14869_s29 = sld [smem:[#allocation27_spill]] }
 0x880   : > { %9799 = vrot.lane.b32.xlu0 %v13363_v22, %s14732_s20  ;;  %7088 = vmatprep.mubr.f32.mxu1 %v14716_v57 }
 0x881   : > { %v7012_v62 = vpop.permute.xlu1 %7011  ;;  %v7571_v13 = vpop.permute.xlu0 %7570  ;;  %7647 = vmatprep.mubr.f32.mxu0 %v14716_v57 }
 0x882   : > { %v7015_v9 = vsel %vm577_vm2, %v13572_v38, %v7012_v62  ;;  %v7016_v8 = vsel %vm577_vm2, %v7012_v62, %v13582_v5  ;;  %v7574_v30 = vsel %vm14736_vm8, %v13574_v54, %v7571_v13  ;;  %v7575_v21 = vsel %vm14737_vm9, %v7571_v13, %v13564_v55  ;;  %vm14740_vm2 = vmmov %vm14709_vm3  ;;  %v7564_v55 = vld [vmem:[%s14688_s23 + $0x10] sm:$0x1]  ;;  %v7099_v62 = vld [vmem:[%s14688_s23 + $0x1d] sm:$0x1] }
 0x883   : > { %10452 = vrot.lane.b32.xlu1 %v13363_v22, %s14738_s30  ;;  %11018 = vmatprep.subr.msk.mxu1 %vm14739_vm12, %v7016_v8  ;;  %v5875_v38 = vadd.f32 %v13350_v14, %v5793_v59  ;;  %v5878_v5 = vmul.f32 0.5, %v5870_v12  ;;  %vm14741_vm3 = vmmov %vm14740_vm2 }
 0x884   : > { %9707 = vrot.lane.b32.xlu0 %v13458_v63, %s14713_s18  ;;  %11036 = vmatprep.subr.msk.mxu0 %vm14740_vm2, %v7575_v21  ;;  %vm14742_vm5 = vmmov %vm14740_vm2 }
 0x885   : > { %11019 = vmatpush1.msk.msra.mxu1 %vm14741_vm3, %v7015_v9  ;;  %11037 = vmatpush1.msk.msra.mxu0 %vm14742_vm5, %v7574_v30  ;;  %v13878_v54 = vpop.permute.xlu1 %8591  ;;  %v13880_v46 = vpop.permute.xlu0 %9150  ;;  %v5879_v14 = vmul.f32 0.5, %v5875_v38  ;;  %11704 = vtanh.f32 %v5878_v5  ;;  %vm14746_vm8 = vmmov %vm14740_vm2  ;;  %vm14753_vm5 = vcmask 924672  }
 0x886   : > { %11020 = vmatmul.mubr.msk.f32.vlgmr.msra.gmra.mrb[22].mxu1 %vm583_vm4, %v7005_v11  ;;  %vm14747_vm9 = vmmov %vm14740_vm2 }
 0x887   : > { %11038 = vmatmul.mubr.msk.f32.vlgmr.msra.gmra.mrb[22].mxu0 %vm583_vm4, %v7564_v55  ;;  %10454 = vrot.lane.b32.xlu1 %v13458_v63, %s14738_s30  ;;  %11706 = vtanh.f32 %v5879_v14  ;;  %vm14748_vm12 = vmmov %vm14740_vm2  ;;  %v7193_v55 = vld [vmem:[%s14688_s23 + $0x24] sm:$0x1] }
 0x888   : > { %10456 = vrot.lane.b32.xlu0 %v10447_v58, %s14738_s30  ;;  %7182 = vmatprep.mubr.f32.mxu1 %v14716_v57  ;;  %v10541_v14 = vld [vmem:[#allocation3 + $0xc] sm:$0xf] }
 0x889   : > { %v7106_v45 = vpop.permute.xlu1 %7105  ;;  %v7665_v36 = vpop.permute.xlu0 %7664  ;;  %7741 = vmatprep.mubr.f32.mxu0 %v14716_v57 }
 0x88a   : > { %v7109_v59 = vsel %vm14743_vm13, %v13588_v3, %v7106_v45  ;;  %v7110_v28 = vsel %vm14744_vm7, %v7106_v45, %v13464_v52  ;;  %v7668_v48 = vsel %vm574_vm1, %v13590_v50, %v7665_v36  ;;  %v7669_v12 = vsel %vm574_vm1, %v7665_v36, %v13580_v10  ;;  %v7658_v52 = vld [vmem:[%s14688_s23 + $0x17] sm:$0x1]  ;;  %vm14749_vm1 = vmmov %vm14740_vm2  ;;  %v11701_v50 = vpop.eup %11700 }
 0x88b   : > { %9897 = vrot.lane.b32.xlu1 %v9888_v37, %s14745_s15  ;;  %11021 = vmatprep.subr.msk.mxu1 %vm14746_vm8, %v7110_v28  ;;  %v11703_v13 = vpop.eup %11702  ;;  %v708_v9 = vadd.f32 1.0, %v11701_v50  ;;  %vm14751_vm2 = vcmask 801792   ;;  %vm14754_vm13 = vmmov %vm14753_vm5  ;;  %v7287_v50 = vld [vmem:[%s14688_s23 + $0x2b] sm:$0x1] }
 0x88c   : > { %9801 = vrot.lane.b32.xlu0 %v13458_v63, %s14732_s20  ;;  %11039 = vmatprep.subr.msk.mxu0 %vm14747_vm9, %v7669_v12  ;;  %vm14752_vm3 = vmmov %vm14751_vm2  ;;  %s14883_s20 = sld [smem:[#allocation19_spill]] }
 0x88d   : > { %11022 = vmatpush1.msk.msra.mxu1 %vm14748_vm12, %v7109_v59  ;;  %11040 = vmatpush1.msk.msra.mxu0 %vm14749_vm1, %v7668_v48  ;;  %v13910_v10 = vpop.permute.xlu1 %9240  ;;  %v13912_v3 = vpop.permute.xlu0 %8587  ;;  %vm14755_vm7 = vmmov %vm14749_vm1 }
 0x88e   : > { %11023 = vmatmul.mubr.msk.f32.vlgmr.msra.gmra.mrb[22].mxu1 %vm583_vm4, %v7099_v62  ;;  %vm14756_vm8 = vmmov %vm14749_vm1 }
 0x88f   : > { %11041 = vmatmul.mubr.msk.f32.vlgmr.msra.gmra.mrb[22].mxu0 %vm583_vm4, %v7658_v52  ;;  %10548 = vrot.lane.b32.xlu1 %v13458_v63, %s14750_s0  ;;  %v11705_v21 = vpop.eup %11704  ;;  %vm14757_vm9 = vmmov %vm14749_vm1 }
 0x890   : > { %9893 = vrot.lane.b32.xlu0 %v13363_v22, %s14745_s15  ;;  %7276 = vmatprep.mubr.f32.mxu1 %v14716_v57  ;;  %vm14758_vm12 = vmmov %vm14749_vm1  ;;  %vm14759_vm1 = vcmask 670720  }
 0x891   : > { %v7200_v8 = vpop.permute.xlu1 %7199  ;;  %v7759_v30 = vpop.permute.xlu0 %7758  ;;  %7835 = vmatprep.mubr.f32.mxu0 %v14716_v57 }
 0x892   : > { %v7203_v43 = vsel %vm14751_vm2, %v13596_v0, %v7200_v8  ;;  %v7204_v11 = vsel %vm14752_vm3, %v7200_v8, %v13472_v51  ;;  %v7762_v38 = vsel %vm14753_vm5, %v13598_v35, %v7759_v30  ;;  %v7763_v5 = vsel %vm14754_vm13, %v7759_v30, %v13466_v16  ;;  %v7752_v51 = vld [vmem:[%s14688_s23 + $0x1e] sm:$0x1]  ;;  %v11707_v37 = vpop.eup %11706  ;;  %vm14760_vm2 = vmmov %vm14759_vm1  ;;  %v8039_v8 = vld [vmem:[%s14688_s23 + $0xa] sm:$0x1]  ;;  %s11150_s14 = sshll.u32 %s14883_s20, 10 }
 0x893   : > { %10546 = vrot.lane.b32.xlu1 %v13363_v22, %s14750_s0  ;;  %11024 = vmatprep.subr.msk.mxu1 %vm14755_vm7, %v7204_v11  ;;  %v710_v0 = vmul.f32 0.5, %v708_v9  ;;  %v707_v16 = vadd.f32 1.0, %v11703_v13  ;;  %v5882_v35 = vadd.f32 1.0, %v11705_v21  ;;  %v5883_v45 = vadd.f32 1.0, %v11707_v37  ;;  %vm14763_vm13 = vmmov %vm14755_vm7  ;;  %s14364_s16 = scalar_lea.hbm %s14886_s19, %s11150_s14 }
 0x894   : > { %9895 = vrot.lane.b32.xlu0 %v13458_v63, %s14745_s15  ;;  %11042 = vmatprep.subr.msk.mxu0 %vm14756_vm8, %v7763_v5  ;;  %vm14761_vm3 = vcmask 793600   ;;  %vm14764_vm8 = vmmov %vm14755_vm7 }
 0x895   : > { %11025 = vmatpush1.msk.msra.mxu1 %vm14757_vm9, %v7203_v43  ;;  %11043 = vmatpush1.msk.msra.mxu0 %vm14758_vm12, %v7762_v38  ;;  %v13944_v22 = vpop.permute.xlu1 %9343  ;;  %v13946_v58 = vpop.permute.xlu0 %9244  ;;  %v709_v63 = vmul.f32 0.5, %v707_v16  ;;  %v5884_v36 = vmul.f32 0.5, %v5882_v35  ;;  %vm14762_vm5 = vmmov %vm14761_vm3  ;;  %vm14766_vm12 = vcmask 261120   ;;  %v7940_v43 = vld [vmem:[%s14688_s23 + $0x2c] sm:$0x1] }
 0x896   : > { %11026 = vmatmul.mubr.msk.f32.vlgmr.msra.gmra.mrb[22].mxu1 %vm583_vm4, %v7193_v55  ;;  %vm14765_vm9 = vmmov %vm14755_vm7 }
 0x897   : > { %11044 = vmatmul.mubr.msk.f32.vlgmr.msra.gmra.mrb[22].mxu0 %vm583_vm4, %v7752_v51  ;;  %5533 = vperm.xlu1 %11695, %v710_v0   ;;  %v8038_v51 = vld [vmem:[%s14688_s23 + $0x3] sm:$0x1] }
 0x898   : > { %10550 = vrot.lane.b32.xlu0 %v10541_v14, %s14750_s0  ;;  %7370 = vmatprep.mubr.f32.mxu1 %v14716_v57 }
 0x899   : > { %v7294_v59 = vpop.permute.xlu1 %7293  ;;  %v7853_v28 = vpop.permute.xlu0 %7852  ;;  %7929 = vmatprep.mubr.f32.mxu0 %v14716_v57 }
 0x89a   : > { %v7297_v48 = vsel %vm14759_vm1, %v13602_v47, %v7294_v59  ;;  %v7298_v12 = vsel %vm14760_vm2, %v7294_v59, %v13482_v34  ;;  %v7856_v62 = vsel %vm14761_vm3, %v13604_v49, %v7853_v28  ;;  %v7857_v52 = vsel %vm14762_vm5, %v7853_v28, %v13474_v19  ;;  %v7846_v34 = vld [vmem:[%s14688_s23 + $0x25] sm:$0x1]  ;;  %vm14767_vm1 = vmmov %vm14766_vm12 }
 0x89b   : > { %11027 = vmatprep.subr.msk.mxu1 %vm14763_vm13, %v7298_v12  ;;  %11045 = vmatprep.subr.msk.mxu0 %vm14755_vm7, %v7857_v52  ;;  %v5885_v49 = vmul.f32 0.5, %v5883_v45  ;;  %vm14768_vm2 = vmmov %vm14755_vm7  ;;  %vm14770_vm5 = vcmask 662528   ;;  %v8310_v12 = vld [vmem:[%s14688_s23 + $0x18] sm:$0x1] }
 0x89c   : > { %10652 = vperm.xlu1 %11695, %v5884_v36   ;;  %5528 = vperm.xlu0 %11694, %v709_v63   ;;  %vm14769_vm3 = vmmov %vm14768_vm2  ;;  %v8217_v36 = vld [vmem:[%s14688_s23 + $0x11] sm:$0x1] }
 0x89d   : > { %11028 = vmatpush1.msk.msra.mxu1 %vm14764_vm8, %v7297_v48  ;;  %11046 = vmatpush1.msk.msra.mxu0 %vm14765_vm9, %v7856_v62  ;;  %v8046_v47 = vpop.permute.xlu1 %8045  ;;  %v13971_v19 = vpop.permute.xlu0 %9339  ;;  %vm14771_vm13 = vmmov %vm14770_vm5  ;;  %vm14774_vm9 = vcmask 392192   ;;  %v8860_v62 = vld [vmem:[%s14688_s23 + $0x12] sm:$0x1] }
 0x89e   : > { %11029 = vmatmul.mubr.msk.f32.vlgmr.msra.gmra.mrb[22].mxu1 %vm583_vm4, %v7287_v50  ;;  %v8049_v13 = vsel %vm14766_vm12, %v13623_v33, %v8046_v47  ;;  %v8050_v9 = vsel %vm14767_vm1, %v8046_v47, %v13641_v25  ;;  %vm14772_vm7 = vmmov %vm14768_vm2  ;;  %vm14776_vm1 = vcmask 252928  }
 0x89f   : > { %11047 = vmatmul.mubr.msk.f32.vlgmr.msra.gmra.mrb[22].mxu0 %vm583_vm4, %v7846_v34  ;;  %11051 = vmatprep.subr.msk.mxu1 %vm14768_vm2, %v8050_v9  ;;  %vm14773_vm8 = vmmov %vm14768_vm2 }
 0x8a0   : > { %10657 = vperm.xlu0 %11694, %v5885_v49   ;;  %11052 = vmatpush1.msk.msra.mxu1 %vm14769_vm3, %v8049_v13  ;;  %vm14775_vm12 = vmmov %vm14774_vm9 }
 0x8a1   : > { %8122 = vmatprep.mubr.f32.mxu1 %v14716_v57  ;;  %v13985_v30 = vpop.permute.xlu1 %9992  ;;  %v7947_v21 = vpop.permute.xlu0 %7946  ;;  %8023 = vmatprep.mubr.f32.mxu0 %v14716_v57  ;;  %vm14777_vm2 = vmmov %vm14776_vm1 }
 0x8a2   : > { %v7950_v33 = vsel %vm14770_vm5, %v13627_v17, %v7947_v21  ;;  %v7951_v25 = vsel %vm14771_vm13, %v7947_v21, %v13484_v27  ;;  %11053 = vmatmul.mubr.msk.f32.vlgmr.msra.gmra.mrb[24].mxu1 %vm583_vm4, %v8039_v8  ;;  %vm14778_vm5 = vmmov %vm14769_vm3  ;;  %v8395_v21 = vld [vmem:[%s14688_s23 + $0x1f] sm:$0x1] }
 0x8a3   : > { %11048 = vmatprep.subr.msk.mxu0 %vm14772_vm7, %v7951_v25  ;;  %8208 = vmatprep.mubr.f32.mxu1 %v14716_v57  ;;  %vm14779_vm13 = vmmov %vm14769_vm3 }
 0x8a4   : > { %11049 = vmatpush1.msk.msra.mxu0 %vm14773_vm8, %v7950_v33  ;;  %vm14780_vm7 = vmmov %vm14769_vm3  ;;  %vm14781_vm8 = vcmask 384000  }
 0x8a5   : > { %v8132_v11 = vpop.permute.xlu1 %8131  ;;  %v8689_v38 = vpop.permute.xlu0 %8688 }
 0x8a6   : > { %v8135_v17 = vsel %vm14774_vm9, %v13648_v53, %v8132_v11  ;;  %v8136_v27 = vsel %vm14775_vm12, %v8132_v11, %v13676_v29  ;;  %v8692_v5 = vsel %vm14776_vm1, %v13650_v24, %v8689_v38  ;;  %v8693_v55 = vsel %vm14777_vm2, %v8689_v38, %v13639_v6  ;;  %v8682_v53 = vld [vmem:[%s14688_s23 + $0xb] sm:$0x1]  ;;  %v8309_v29 = vld [vmem:[#allocation3 + $0x4] sm:$0xff]  ;;  %vm14782_vm9 = vmmov %vm14781_vm8 }
 0x8a7   : > { %11050 = vmatmul.mubr.msk.f32.vlgmr.msra.gmra.mrb[22].mxu0 %vm583_vm4, %v7940_v43  ;;  %11054 = vmatprep.subr.msk.mxu1 %vm14769_vm3, %v8136_v27  ;;  %vm14783_vm12 = vmmov %vm14769_vm3  ;;  %v8312_v45 = vcombine.high %v8309_v29, %v8309_v29 }
 0x8a8   : > { %11072 = vmatprep.subr.msk.mxu0 %vm14778_vm5, %v8693_v55  ;;  %11055 = vmatpush1.msk.msra.mxu1 %vm14779_vm13, %v8135_v17  ;;  %vm14784_vm1 = vmmov %vm14769_vm3  ;;  %vm14789_vm13 = vcmask 121856   ;;  %v8489_v17 = vld [vmem:[%s14688_s23 + $0x26] sm:$0x1] }
 0x8a9   : > { %11073 = vmatpush1.msk.msra.mxu0 %vm14780_vm7, %v8692_v5  ;;  %8765 = vmatprep.mubr.f32.mxu0 %v14716_v57  ;;  %v14019_v6 = vpop.permute.xlu1 %9429  ;;  %v14021_v24 = vpop.permute.xlu0 %9996  ;;  %vm14785_vm2 = vmmov %vm14784_vm1 }
 0x8aa   : > { %11056 = vmatmul.mubr.msk.f32.vlgmr.msra.gmra.mrb[24].mxu1 %vm583_vm4, %v8038_v51  ;;  %vm14786_vm3 = vmmov %vm14784_vm1 }
 0x8ab   : > { %11074 = vmatmul.mubr.msk.f32.vlgmr.msra.gmra.mrb[24].mxu0 %vm583_vm4, %v8682_v53  ;;  %8300 = vmatprep.mubr.f32.mxu1 %v14716_v57  ;;  %vm14788_vm5 = vmmov %vm14784_vm1 }
 0x8ac   : > { %8851 = vmatprep.mubr.f32.mxu0 %v14716_v57  ;;  %vm14790_vm7 = vmmov %vm14789_vm13 }
 0x8ad   : > { %v8224_v0 = vpop.permute.xlu1 %8223  ;;  %v8775_v16 = vpop.permute.xlu0 %8774 }
 0x8ae   : > { %v8227_v35 = vsel %vm711_vm10, %v13686_v60, %v8224_v0  ;;  %v8228_v14 = vsel %vm711_vm10, %v8224_v0, %v13698_v15  ;;  %v8778_v37 = vsel %vm14781_vm8, %v13688_v4, %v8775_v16  ;;  %v8779_v63 = vsel %vm14782_vm9, %v8775_v16, %v13673_v18  ;;  %v8681_v60 = vld [vmem:[%s14688_s23 + $0x4] sm:$0x1]  ;;  %vm14787_vm10 = vmmov %vm14784_vm1  ;;  %v8583_v0 = vld [vmem:[%s14688_s23 + $0x2d] sm:$0x1] }
 0x8af   : > { %11057 = vmatprep.subr.msk.mxu1 %vm14783_vm12, %v8228_v14  ;;  %11075 = vmatprep.subr.msk.mxu0 %vm14784_vm1, %v8779_v63  ;;  %vm14791_vm8 = vmmov %vm14784_vm1  ;;  %vm14792_vm9 = vcmask 1039360   ;;  %v9335_v16 = vld [vmem:[%s14688_s23 + $0xc] sm:$0x1]  ;;  %v9988_v63 = vld [vmem:[%s14688_s23 + $0xd] sm:$0x1] }
 0x8b0   : > { %11058 = vmatpush1.msk.msra.mxu1 %vm14785_vm2, %v8227_v35  ;;  %11076 = vmatpush1.msk.msra.mxu0 %vm14786_vm3, %v8778_v37  ;;  %vm14793_vm12 = vmmov %vm14784_vm1  ;;  %v9236_v35 = vld [vmem:[%s14688_s23 + $0x2e] sm:$0x1] }
 0x8b1   : > { %v14045_v4 = vpop.permute.xlu1 %10078  ;;  %11060 = vmatprep.subr.msk.mxu1 %vm14787_vm10, %v8312_v45  ;;  %v14048_v18 = vpop.permute.xlu0 %9425  ;;  %vm14794_vm2 = vmmov %vm14792_vm9  ;;  %vm14796_vm10 = vcmask 908288  }
 0x8b2   : > { %11059 = vmatmul.mubr.msk.f32.vlgmr.msra.gmra.mrb[24].mxu1 %vm583_vm4, %v8217_v36  ;;  %vm14795_vm3 = vmmov %vm14784_vm1 }
 0x8b3   : > { %11077 = vmatmul.mubr.msk.f32.vlgmr.msra.gmra.mrb[24].mxu0 %vm583_vm4, %v8681_v60  ;;  %11061 = vmatpush1.msk.msra.mxu1 %vm14788_vm5, %v8309_v29  ;;  %vm14797_vm5 = vmmov %vm14784_vm1 }
 0x8b4   : > { %8943 = vmatprep.mubr.f32.mxu0 %v14716_v57  ;;  %8384 = vmatprep.mubr.f32.mxu1 %v14716_v57 }
 0x8b5   : > { %v8961_v15 = vpop.permute.xlu1 %8960 }
 0x8b6   : > { %v8867_v59 = vpop.permute.xlu0 %8866  ;;  %v8965_v52 = vsel %vm14792_vm9, %v8961_v15, %v13737_v26  ;;  %vm14801_vm9 = vmmov %vm14784_vm1 }
 0x8b7   : > { %v8870_v28 = vsel %vm14789_vm13, %v13724_v40, %v8867_v59  ;;  %v8871_v48 = vsel %vm14790_vm7, %v8867_v59, %v13696_v2  ;;  %v8964_v40 = vsel %vm14794_vm2, %v13721_v61, %v8961_v15  ;;  %v8954_v61 = vld [vmem:[%s14688_s23 + $0x19] sm:$0x1]  ;;  %vm14798_vm13 = vmmov %vm14796_vm10  ;;  %vm14799_vm7 = vcmask 916480   ;;  %v9334_v59 = vld [vmem:[%s14688_s23 + $0x5] sm:$0x1] }
 0x8b8   : > { %11078 = vmatprep.subr.msk.mxu0 %vm14791_vm8, %v8871_v48  ;;  %vm14800_vm8 = vmmov %vm14799_vm7  ;;  %vm14803_vm2 = vcmask 777216  }
 0x8b9   : > { %11079 = vmatpush1.msk.msra.mxu0 %vm14793_vm12, %v8870_v28  ;;  %v14069_v50 = vpop.permute.xlu1 %9521  ;;  %vm14802_vm12 = vmmov %vm14784_vm1 }
 0x8ba   : > { %11081 = vmatprep.subr.msk.mxu0 %vm14784_vm1, %v8965_v52  ;;  %v14072_v2 = vpop.permute.xlu0 %10082  ;;  %11062 = vmatmul.mubr.msk.f32.vlgmr.msra.gmra.mrb[24].mxu1 %vm583_vm4, %v8310_v12 }
 0x8bb   : > { %11080 = vmatmul.mubr.msk.f32.vlgmr.msra.gmra.mrb[24].mxu0 %vm583_vm4, %v8860_v62  ;;  %8478 = vmatprep.mubr.f32.mxu1 %v14716_v57 }
 0x8bc   : > { %11082 = vmatpush1.msk.msra.mxu0 %vm14795_vm3, %v8964_v40  ;;  %9037 = vmatprep.mubr.f32.mxu0 %v14716_v57  ;;  %vm14804_vm3 = vmmov %vm14784_vm1  ;;  %v9513_v40 = vld [vmem:[%s14688_s23 + $0x13] sm:$0x1] }
 0x8bd   : > { %v9055_v26 = vpop.permute.xlu1 %9054 }
 0x8be   : > { %v9059_v34 = vsel %vm14796_vm10, %v9055_v26, %v13807_v1  ;;  %v14083_v47 = vpop.permute.xlu0 %9517  ;;  %v9058_v9 = vsel %vm14798_vm13, %v13761_v41, %v9055_v26  ;;  %vm14805_vm10 = vmmov %vm14803_vm2 }
 0x8bf   : > { %11084 = vmatprep.subr.msk.mxu0 %vm14797_vm5, %v9059_v34  ;;  %vm14806_vm5 = vcmask 785408  }
 0x8c0   : > { %vm14807_vm13 = vmmov %vm14806_vm5 }
 0x8c1   : > { %v14089_v49 = vpop.permute.xlu1 %10170 }
 0x8c2   : > { %v8402_v13 = vpop.permute.xlu0 %8401 }
 0x8c3   : > { %11083 = vmatmul.mubr.msk.f32.vlgmr.msra.gmra.mrb[24].mxu0 %vm583_vm4, %v8954_v61  ;;  %v8405_v8 = vsel %vm14799_vm7, %v13745_v56, %v8402_v13  ;;  %v8406_v1 = vsel %vm14800_vm8, %v8402_v13, %v13735_v42  ;;  %v9048_v42 = vld [vmem:[%s14688_s23 + $0x20] sm:$0x1]  ;;  %vm14808_vm7 = vmmov %vm14784_vm1 }
 0x8c4   : > { %11085 = vmatpush1.msk.msra.mxu0 %vm14801_vm9, %v9058_v9  ;;  %11063 = vmatprep.subr.msk.mxu1 %vm14802_vm12, %v8406_v1  ;;  %vm14809_vm8 = vmmov %vm14784_vm1  ;;  %vm14811_vm12 = vcmask 646144   ;;  %v9607_v1 = vld [vmem:[%s14688_s23 + $0x1a] sm:$0x1] }
 0x8c5   : > { %11064 = vmatpush1.msk.msra.mxu1 %vm14784_vm1, %v8405_v8  ;;  %v9149_v33 = vpop.permute.xlu1 %9148  ;;  %9131 = vmatprep.mubr.f32.mxu0 %v14716_v57  ;;  %vm14810_vm9 = vmmov %vm14784_vm1 }
 0x8c6   : > { %v9153_v41 = vsel %vm14803_vm2, %v9149_v33, %v13880_v46  ;;  %11065 = vmatmul.mubr.msk.f32.vlgmr.msra.gmra.mrb[24].mxu1 %vm583_vm4, %v8395_v21  ;;  %v14108_v56 = vpop.permute.xlu0 %10174  ;;  %v9152_v11 = vsel %vm14805_vm10, %v13841_v23, %v9149_v33  ;;  %vm14812_vm2 = vcmask 236544   ;;  %vm14814_vm10 = vcmask 654336  }
 0x8c7   : > { %11087 = vmatprep.subr.msk.mxu0 %vm14804_vm3, %v9153_v41  ;;  %8572 = vmatprep.mubr.f32.mxu1 %v14716_v57  ;;  %vm14813_vm3 = vmmov %vm14811_vm12 }
 0x8c9   : > { %v14115_v25 = vpop.permute.xlu1 %9615 }
 0x8ca   : > { %v8496_v43 = vpop.permute.xlu0 %8495 }
 0x8cb   : > { %11086 = vmatmul.mubr.msk.f32.vlgmr.msra.gmra.mrb[24].mxu0 %vm583_vm4, %v9048_v42  ;;  %v8499_v46 = vsel %vm14806_vm5, %v13843_v20, %v8496_v43  ;;  %v8500_v38 = vsel %vm14807_vm13, %v8496_v43, %v13805_v44  ;;  %v9142_v44 = vld [vmem:[%s14688_s23 + $0x27] sm:$0x1]  ;;  %vm14815_vm5 = vmmov %vm14814_vm10  ;;  %v10260_v42 = vld [vmem:[%s14688_s23 + $0x1b] sm:$0x1] }
 0x8cc   : > { %11088 = vmatpush1.msk.msra.mxu0 %vm14808_vm7, %v9152_v11  ;;  %11066 = vmatprep.subr.msk.mxu1 %vm14809_vm8, %v8500_v38  ;;  %vm14816_vm13 = vmmov %vm14784_vm1 }
 0x8cd   : > { %11067 = vmatpush1.msk.msra.mxu1 %vm14810_vm9, %v8499_v46  ;;  %v9243_v27 = vpop.permute.xlu1 %9242  ;;  %9225 = vmatprep.mubr.f32.mxu0 %v14716_v57  ;;  %vm14817_vm7 = vmmov %vm14784_vm1 }
 0x8ce   : > { %v9247_v23 = vsel %vm14811_vm12, %v9243_v27, %v13946_v58  ;;  %11068 = vmatmul.mubr.msk.f32.vlgmr.msra.gmra.mrb[24].mxu1 %vm583_vm4, %v8489_v17  ;;  %v14134_v20 = vpop.permute.xlu0 %9611  ;;  %v9246_v58 = vsel %vm14813_vm3, %v13910_v10, %v9243_v27  ;;  %vm14818_vm8 = vmmov %vm14784_vm1  ;;  %vm14820_vm12 = vcmask 244736   ;;  %v9701_v27 = vld [vmem:[%s14688_s23 + $0x21] sm:$0x1] }
 0x8cf   : > { %11090 = vmatprep.subr.msk.mxu0 %vm14784_vm1, %v9247_v23  ;;  %8666 = vmatprep.mubr.f32.mxu1 %v14716_v57  ;;  %vm14819_vm9 = vmmov %vm14784_vm1 }
 0x8d0   : > { %vm14821_vm1 = vmmov %vm14820_vm12 }
 0x8d1   : > { %v9995_v5 = vpop.permute.xlu1 %9994 }
 0x8d2   : > { %v9999_v55 = vsel %vm14812_vm2, %v9995_v5, %v14021_v24  ;;  %v8590_v51 = vpop.permute.xlu0 %8589  ;;  %vm14822_vm2 = vmmov %vm14817_vm7 }
 0x8d3   : > { %11089 = vmatmul.mubr.msk.f32.vlgmr.msra.gmra.mrb[24].mxu0 %vm583_vm4, %v9142_v44  ;;  %v8593_v53 = vsel %vm14814_vm10, %v13912_v3, %v8590_v51  ;;  %v8594_v29 = vsel %vm14815_vm5, %v8590_v51, %v13878_v54  ;;  %vm14823_vm3 = vmmov %vm14822_vm2  ;;  %vm14824_vm10 = vcmask 367616   ;;  %vm14825_vm5 = vcmask 236544  }
 0x8d4   : > { %11091 = vmatpush1.msk.msra.mxu0 %vm14816_vm13, %v9246_v58  ;;  %11069 = vmatprep.subr.msk.mxu1 %vm14817_vm7, %v8594_v29  ;;  %v9998_v37 = vsel %vm14825_vm5, %v13985_v30, %v9995_v5  ;;  %vm14826_vm13 = vmmov %vm14822_vm2 }
 0x8d5   : > { %11114 = vmatprep.subr.msk.mxu0 %vm14818_vm8, %v9999_v55  ;;  %11070 = vmatpush1.msk.msra.mxu1 %vm14819_vm9, %v8593_v53  ;;  %v10265_v10 = vpop.permute.xlu1 %10264  ;;  %vm14827_vm7 = vmmov %vm14822_vm2  ;;  %vm14829_vm9 = vcmask 375808  }
 0x8d6   : > { %11071 = vmatmul.mubr.msk.f32.vlgmr.msra.gmra.mrb[24].mxu1 %vm583_vm4, %v8583_v0  ;;  %v9342_v24 = vpop.permute.xlu0 %9341  ;;  %9319 = vmatprep.mubr.f32.mxu0 %v14716_v57  ;;  %vm14828_vm8 = vmmov %vm14824_vm10 }
 0x8d7   : > { %v9345_v54 = vsel %vm14820_vm12, %v13971_v19, %v9342_v24  ;;  %v9346_v3 = vsel %vm14821_vm1, %v9342_v24, %v13944_v22  ;;  %9418 = vmatprep.mubr.f32.mxu1 %v14716_v57  ;;  %vm14830_vm12 = vmmov %vm14829_vm9 }
 0x8d8   : > { %11093 = vmatprep.subr.msk.mxu1 %vm14822_vm2, %v9346_v3  ;;  %vm14831_vm1 = vmmov %vm14822_vm2  ;;  %v10448_v3 = vld [vmem:[%s14688_s23 + $0x29] sm:$0x1] }
 0x8d9   : > { %11094 = vmatpush1.msk.msra.mxu1 %vm14823_vm3, %v9345_v54  ;;  %v10081_v14 = vpop.permute.xlu1 %10080  ;;  %vm14832_vm2 = vmmov %vm14831_vm1 }
 0x8da   : > { %v10085_v19 = vsel %vm14824_vm10, %v10081_v14, %v14072_v2  ;;  %11095 = vmatmul.mubr.msk.f32.vlgmr.msra.gmra.mrb[26].mxu1 %vm583_vm4, %v9335_v16  ;;  %v10269_v22 = vpop.permute.xlu0 %10268  ;;  %v10084_v30 = vsel %vm14828_vm8, %v14045_v4, %v10081_v14  ;;  %vm14833_vm3 = vmmov %vm14831_vm1  ;;  %vm14834_vm10 = vcmask 105472  }
 0x8db   : > { %11092 = vmatmul.mubr.msk.f32.vlgmr.msra.gmra.mrb[24].mxu0 %vm583_vm4, %v9236_v35  ;;  %9504 = vmatprep.mubr.f32.mxu1 %v14716_v57  ;;  %vm14835_vm5 = vmmov %vm14831_vm1 }
 0x8dc   : > { %11115 = vmatpush1.msk.msra.mxu0 %vm14826_vm13, %v9998_v37  ;;  %10071 = vmatprep.mubr.f32.mxu0 %v14716_v57  ;;  %vm14836_vm13 = vmmov %vm14834_vm10 }
 0x8dd   : > { %11117 = vmatprep.subr.msk.mxu0 %vm14827_vm7, %v10085_v19  ;;  %v14185_v45 = vpop.permute.xlu1 %9709  ;;  %vm14837_vm7 = vcmask 113664   ;;  %v9889_v19 = vld [vmem:[%s14688_s23 + $0x2f] sm:$0x1] }
 0x8de   : > { %v9428_v36 = vpop.permute.xlu0 %9427  ;;  %vm14838_vm8 = vmmov %vm14837_vm7 }
 0x8df   : > { %11116 = vmatmul.mubr.msk.f32.vlgmr.msra.gmra.mrb[26].mxu0 %vm583_vm4, %v9988_v63  ;;  %v9431_v60 = vsel %vm14829_vm9, %v14048_v18, %v9428_v36  ;;  %v9432_v15 = vsel %vm14830_vm12, %v9428_v36, %v14019_v6  ;;  %v9987_v6 = vld [vmem:[%s14688_s23 + $0x6] sm:$0x1]  ;;  %vm14839_vm9 = vmmov %vm14831_vm1 }
 0x8e0   : > { %11118 = vmatpush1.msk.msra.mxu0 %vm14831_vm1, %v10084_v30  ;;  %11096 = vmatprep.subr.msk.mxu1 %vm14832_vm2, %v9432_v15  ;;  %vm14840_vm12 = vmmov %vm14831_vm1  ;;  %vm14841_vm2 = vcmask 1022976  }
 0x8e1   : > { %11097 = vmatpush1.msk.msra.mxu1 %vm14833_vm3, %v9431_v60  ;;  %v10173_v28 = vpop.permute.xlu1 %10172  ;;  %10157 = vmatprep.mubr.f32.mxu0 %v14716_v57  ;;  %vm14842_vm3 = vmmov %vm14831_vm1 }
 0x8e2   : > { %v10177_v4 = vsel %vm14834_vm10, %v10173_v28, %v14108_v56  ;;  %11098 = vmatmul.mubr.msk.f32.vlgmr.msra.gmra.mrb[26].mxu1 %vm583_vm4, %v9334_v59  ;;  %v9706_v18 = vpop.permute.xlu0 %9705  ;;  %v10176_v62 = vsel %vm14836_vm13, %v14089_v49, %v10173_v28  ;;  %vm14843_vm10 = vmmov %vm14841_vm2  ;;  %v5515_v56 = vstv %s5514_s17  ;;  %v14874_v59 = vlaneseq }
 0x8e3   : > { %11120 = vmatprep.subr.msk.mxu0 %vm14835_vm5, %v10177_v4  ;;  %9596 = vmatprep.mubr.f32.mxu1 %v14716_v57  ;;  %vm14844_vm5 = vcmask 1031168   ;;  %v5516_v11 = vadd.f32 %v5515_v56, %v13286_v7  ;;  %v5517_v23 = vadd.f32 %v5515_v56, %v13288_v31  ;;  %v10354_v31 = vld [vmem:[%s14688_s23 + $0x22] sm:$0x1] }
 0x8e4   : > { %vm14845_vm13 = vmmov %vm14844_vm5  ;;  %v5537_v28 = vshrl.u32 %v14874_v59, 7  ;;  %v11721_v56 = vld [vmem:[%s14871_s1] sm:$0xff] }
 0x8e5   : > { %v10359_v48 = vpop.permute.xlu1 %10358  ;;  %v5518_v44 = vmul.f32 0.5, %v5516_v11  ;;  %v5519_v55 = vmul.f32 0.5, %v5517_v23 }
 0x8e6   : > { %v9520_v12 = vpop.permute.xlu0 %9519 }
 0x8e7   : > { %11119 = vmatmul.mubr.msk.f32.vlgmr.msra.gmra.mrb[26].mxu0 %vm583_vm4, %v9987_v6  ;;  %v9523_v52 = vsel %vm14837_vm7, %v14083_v47, %v9520_v12  ;;  %v9524_v2 = vsel %vm14838_vm8, %v9520_v12, %v14069_v50  ;;  %v10166_v50 = vld [vmem:[%s14688_s23 + $0x14] sm:$0x1]  ;;  %vm14846_vm7 = vmmov %vm14831_vm1  ;;  %11708 = vtanh.f32 %v5518_v44  ;;  %v14306_v6 = vsub.s32 0, %v5537_v28 }
 0x8e8   : > { %11121 = vmatpush1.msk.msra.mxu0 %vm14839_vm9, %v10176_v62  ;;  %11099 = vmatprep.subr.msk.mxu1 %vm14840_vm12, %v9524_v2  ;;  %vm14847_vm8 = vmmov %vm14831_vm1  ;;  %vm14849_vm12 = vcmask 891904   ;;  %11710 = vtanh.f32 %v5519_v55  ;;  %v11717_v2 = vld [vmem:[%s14871_s1 + $0x10] sm:$0xff] }
 0x8e9   : > { %11100 = vmatpush1.msk.msra.mxu1 %vm14831_vm1, %v9523_v52  ;;  %v10267_v26 = vpop.permute.xlu1 %10266  ;;  %10249 = vmatprep.mubr.f32.mxu0 %v14716_v57  ;;  %vm14848_vm9 = vmmov %vm14831_vm1  ;;  %v11716_v52 = vld [vmem:[%s14869_s29 + $0x10] sm:$0xff] }
 0x8ea   : > { %v10271_v34 = vsel %vm14841_vm2, %v10267_v26, %v10269_v22  ;;  %11101 = vmatmul.mubr.msk.f32.vlgmr.msra.gmra.mrb[26].mxu1 %vm583_vm4, %v9513_v40  ;;  %v10363_v47 = vpop.permute.xlu0 %10362  ;;  %v10270_v13 = vsel %vm14843_vm10, %v10265_v10, %v10267_v26  ;;  %vm14850_vm2 = vmmov %vm14849_vm12  ;;  %v9795_v10 = vld [vmem:[%s14688_s23 + $0x28] sm:$0x1]  ;;  %v5558_v40 = vsub.f32 %v11717_v2, %v11716_v52  ;;  %v11718_v26 = vld [vmem:[%s14869_s29 + $0x18] sm:$0xff] }
 0x8eb   : > { %11123 = vmatprep.subr.msk.mxu0 %vm14842_vm3, %v10271_v34  ;;  %9690 = vmatprep.mubr.f32.mxu1 %v14716_v57  ;;  %vm14851_vm3 = vcmask 900096   ;;  %v11719_v34 = vld [vmem:[%s14871_s1 + $0x18] sm:$0xff] }
 0x8ec   : > { %vm14852_vm10 = vmmov %vm14851_vm3 }
 0x8ed   : > { %v9804_v61 = vpop.permute.xlu1 %9803 }
 0x8ee   : > { %v9614_v49 = vpop.permute.xlu0 %9613 }
 0x8ef   : > { %11122 = vmatmul.mubr.msk.f32.vlgmr.msra.gmra.mrb[26].mxu0 %vm583_vm4, %v10166_v50  ;;  %v9617_v9 = vsel %vm14844_vm5, %v14134_v20, %v9614_v49  ;;  %v9618_v8 = vsel %vm14845_vm13, %v9614_v49, %v14115_v25  ;;  %vm14853_vm5 = vmmov %vm14831_vm1  ;;  %v5554_v49 = vmul.f32 4.0, %v11716_v52 }
 0x8f0   : > { %11124 = vmatpush1.msk.msra.mxu0 %vm14846_vm7, %v10270_v13  ;;  %11102 = vmatprep.subr.msk.mxu1 %vm14847_vm8, %v9618_v8  ;;  %vm14854_vm13 = vmmov %vm14831_vm1  ;;  %vm14856_vm8 = vcmask 760832   ;;  %v5555_v13 = vmul.f32 4.0, %v11718_v26 }
 0x8f1   : > { %11103 = vmatpush1.msk.msra.mxu1 %vm14848_vm9, %v9617_v9  ;;  %v10361_v21 = vpop.permute.xlu1 %10360  ;;  %10343 = vmatprep.mubr.f32.mxu0 %v14716_v57  ;;  %vm14855_vm7 = vmmov %vm14831_vm1  ;;  %v11709_v22 = vpop.eup %11708 }
 0x8f2   : > { %v10365_v33 = vsel %vm14849_vm12, %v10361_v21, %v10363_v47  ;;  %11104 = vmatmul.mubr.msk.f32.vlgmr.msra.gmra.mrb[26].mxu1 %vm583_vm4, %v9607_v1  ;;  %v9800_v41 = vpop.permute.xlu0 %9799  ;;  %v10364_v46 = vsel %vm14850_vm2, %v10359_v48, %v10361_v21  ;;  %vm14857_vm9 = vmmov %vm14831_vm1  ;;  %v11711_v63 = vpop.eup %11710  ;;  %v5522_v60 = vadd.f32 1.0, %v11709_v22  ;;  %v5559_v47 = vsub.f32 %v11719_v34, %v11718_v26 }
 0x8f3   : > { %11126 = vmatprep.subr.msk.mxu0 %vm14831_vm1, %v10365_v33  ;;  %9784 = vmatprep.mubr.f32.mxu1 %v14716_v57  ;;  %vm14858_vm12 = vmmov %vm14856_vm8  ;;  %vm14859_vm1 = vcmask 769024   ;;  %v5523_v15 = vadd.f32 1.0, %v11711_v63 }
 0x8f4   : > { %vm14860_vm2 = vmmov %vm14859_vm1  ;;  %v5524_v4 = vmul.f32 0.5, %v5522_v60 }
 0x8f5   : > { %v10453_v25 = vpop.permute.xlu1 %10452 }
 0x8f6   : > { %v9708_v43 = vpop.permute.xlu0 %9707  ;;  %v5539_v48 = vrot.slane %v5524_v4, %v14306_v6 }
 0x8f7   : > { %11125 = vmatmul.mubr.msk.f32.vlgmr.msra.gmra.mrb[26].mxu0 %vm583_vm4, %v10260_v42  ;;  %v9711_v38 = vsel %vm14851_vm3, %v9706_v18, %v9708_v43  ;;  %v9712_v17 = vsel %vm14852_vm10, %v9708_v43, %v14185_v45  ;;  %vm14861_vm3 = vmmov %vm14853_vm5  ;;  %v5525_v18 = vmul.f32 0.5, %v5523_v15  ;;  %v11723_v43 = vld [vmem:[%s14871_s1 + $0x8] sm:$0xff] }
 0x8f8   : > { %11127 = vmatpush1.msk.msra.mxu0 %vm14853_vm5, %v10364_v46  ;;  %11105 = vmatprep.subr.msk.mxu1 %vm14854_vm13, %v9712_v17  ;;  %vm14862_vm10 = vmmov %vm14861_vm3  ;;  %vm14864_vm13 = vcmask 637952  }
 0x8f9   : > { %11106 = vmatpush1.msk.msra.mxu1 %vm14855_vm7, %v9711_v38  ;;  %v10455_v7 = vpop.permute.xlu1 %10454  ;;  %10437 = vmatprep.mubr.f32.mxu0 %v14716_v57  ;;  %vm14863_vm5 = vmmov %vm14861_vm3  ;;  %v5543_v12 = vrot.slane %v5525_v18, %v14306_v6 }
 0x8fa   : > { %11107 = vmatmul.mubr.msk.f32.vlgmr.msra.gmra.mrb[26].mxu1 %vm583_vm4, %v9701_v27  ;;  %v10457_v20 = vpop.permute.xlu0 %10456  ;;  %v10458_v53 = vsel %vm14858_vm12, %v10453_v25, %v10455_v7  ;;  %vm14865_vm7 = vmmov %vm14864_vm13  ;;  %vm14868_vm12 = vcmask 629760   ;;  %v11722_v25 = vld [vmem:[%s14869_s29 + $0x8] sm:$0xff] }
 0x8fb   : > { %v10459_v5 = vsel %vm14856_vm8, %v10455_v7, %v10457_v20  ;;  %9878 = vmatprep.mubr.f32.mxu1 %v14716_v57  ;;  %vm14866_vm8 = vmmov %vm14861_vm3  ;;  %v5557_v11 = vsub.f32 %v11723_v43, %v11722_v25  ;;  %v5553_v7 = vmul.f32 4.0, %v11722_v25 }
 0x8fc   : > { %11129 = vmatprep.subr.msk.mxu0 %vm14857_vm9, %v10459_v5  ;;  %vm14867_vm9 = vmmov %vm14861_vm3 }
 0x8fd   : > { %v9898_v51 = vpop.permute.xlu1 %9897 }
 0x8fe   : > { %v9802_v58 = vpop.permute.xlu0 %9801 }
 0x8ff   : > { %11128 = vmatmul.mubr.msk.f32.vlgmr.msra.gmra.mrb[26].mxu0 %vm583_vm4, %v10354_v31  ;;  %v9805_v29 = vsel %vm14859_vm1, %v9800_v41, %v9802_v58  ;;  %v9806_v0 = vsel %vm14860_vm2, %v9802_v58, %v9804_v61  ;;  %vm14870_vm1 = vmmov %vm14868_vm12  ;;  %v11720_v41 = vld [vmem:[%s14869_s29] sm:$0xff] }
 0x900   : > { %11130 = vmatpush1.msk.msra.mxu0 %vm14861_vm3, %v10458_v53  ;;  %11108 = vmatprep.subr.msk.mxu1 %vm14862_vm10, %v9806_v0  ;;  %vm14872_vm2 = vmmov %vm14861_vm3  ;;  %v5556_v42 = vsub.f32 %v11721_v56, %v11720_v41  ;;  %v5552_v23 = vmul.f32 4.0, %v11720_v41  ;;  %vm14877_vm10 = vcmp.ge.s32.totalorder %v13246_v32, 3 }
 0x901   : > { %11109 = vmatpush1.msk.msra.mxu1 %vm14863_vm5, %v9805_v29  ;;  %10531 = vmatprep.mubr.f32.mxu0 %v14716_v57  ;;  %v10549_v54 = vpop.permute.xlu1 %10548  ;;  %vm14873_vm3 = vmmov %vm14872_vm2  ;;  %vm14878_vm5 = vcmp.ge.s32.totalorder %v13244_v39, 1 }
 0x902   : > { %11110 = vmatmul.mubr.msk.f32.vlgmr.msra.gmra.mrb[26].mxu1 %vm583_vm4, %v9795_v10  ;;  %v9894_v24 = vpop.permute.xlu0 %9893 }
 0x903   : > { %9972 = vmatprep.mubr.f32.mxu1 %v14716_v57 }
 0x905   : > { %v10547_v37 = vpop.permute.xlu1 %10546 }
 0x906   : > { %v9896_v16 = vpop.permute.xlu0 %9895  ;;  %v10552_v30 = vsel %vm14870_vm1, %v10547_v37, %v10549_v54 }
 0x907   : > { %11131 = vmatmul.mubr.msk.f32.vlgmr.msra.gmra.mrb[26].mxu0 %vm583_vm4, %v10448_v3  ;;  %v9899_v35 = vsel %vm14864_vm13, %v9894_v24, %v9896_v16  ;;  %v9900_v14 = vsel %vm14865_vm7, %v9896_v16, %v9898_v51  ;;  %vm14880_vm13 = vcmp.le.s32.totalorder %v13244_v39, 14  ;;  %vm14882_vm7 = vcmp.le.s32.totalorder %v13246_v32, 12 }
 0x908   : > { %11111 = vmatprep.subr.msk.mxu1 %vm14866_vm8, %v9900_v14  ;;  %10625 = vmatprep.mubr.f32.mxu0 %v14716_v57  ;;  %v10542_v57 = vld [vmem:[%s14688_s23 + $0x30] sm:$0x1]  ;;  %s14875_s23 = sld [smem:[#allocation25_spill]] }
 0x909   : > { %11112 = vmatpush1.msk.msra.mxu1 %vm14867_vm9, %v9899_v35 }
 0x90a   : > { %11113 = vmatmul.mubr.msk.f32.vlgmr.msra.gmra.mrb[26].mxu1 %vm583_vm4, %v9889_v19  ;;  %v10551_v45 = vpop.permute.xlu0 %10550 }
 0x90b   : > { %v10553_v36 = vsel %vm14868_vm12, %v10549_v54, %v10551_v45 }
 0x90c   : > { %11132 = vmatprep.subr.msk.mxu0 %vm14872_vm2, %v10553_v36 }
 0x90d   : > { %11133 = vmatpush1.msk.msra.mxu0 %vm14873_vm3, %v10552_v30 }
 0x90e   : > { %s14319_s2 = scalar_lea.vmem [#allocation11], %s14875_s23 }
 0x90f   : > { %11134 = vmatmul.mubr.msk.f32.vlgmr.msra.gmra.mrb[26].mxu0 %vm583_vm4, %v10542_v57  ;;  %vm14876_vm4 = vcmp.ge.s32.totalorder %v13244_v39, 2  ;;  %s10712_s13 = sshll.u32 %s14319_s2, 4  ;;  %s14366_s13 = int_to_ptr.vmem [resolvable:$true] %s10712_s13 }
 0x910   : > { %s11794_s15 = scalar_lea.vmem %s14366_s13, 1024  ;;  %p11801_p5 = scmp.lt.s32.totalorder %s14366_s13, %s11799_s12 }
 0x911   : > { %p11795_p13 = scmp.ne.s32.totalorder %s14366_s13, %s11794_s15  ;;  %p11802_p7 = scmp.lt.s32.totalorder %s11800_s22, %s11794_s15 }
 0x913   : > { %p11796_p12 = pnand %p11795_p13, %p14887_p1  ;;  %p11803_p9 = por %p11802_p7, %p11801_p5 }
 0x915   : > { %p11797_p10 = pneg %p11796_p12 }
 0x916   : > { %v5534_v62 = vpop.permute.xlu1 %5533 }
 0x917   : > { %v5546_v50 = vadd.f32 %v5539_v48, %v5534_v62  ;;  %v5547_v61 = vadd.f32 %v5543_v12, %v5534_v62  ;;  %p11804_p11 = pnand %p11803_p9, %p11797_p10 }
 0x919   : > { %v5550_v9 = vadd.f32 1.0, %v5546_v50  ;;  %v5551_v8 = vadd.f32 1.0, %v5547_v61  ;;  %v10639_v50 = vstv %s10638_s3 }
 0x91b   : > { %v5562_v1 = vmul.f32 %v5558_v40, %v5550_v9  ;;  %v5563_v21 = vmul.f32 %v5559_v47, %v5551_v8  ;;  %v5529_v33 = vpop.permute.xlu0 %5528 }
 0x91c   : > { %v5544_v46 = vadd.f32 %v5539_v48, %v5529_v33  ;;  %v5545_v38 = vadd.f32 %v5543_v12, %v5529_v33 }
 0x91d   : > { %v5566_v17 = vadd.f32 %v5562_v1, %v5554_v49  ;;  %v5567_v27 = vadd.f32 %v5563_v21, %v5555_v13 }
 0x91e   : > { %v5548_v20 = vadd.f32 1.0, %v5544_v46  ;;  %v5549_v44 = vadd.f32 1.0, %v5545_v38 }
 0x91f   : > { %5570 = vst [vmem:[%s14319_s2 + $0x10] sm:$0xff] %v5566_v17  ;;  %5571 = vst [vmem:[%s14319_s2 + $0x18] sm:$0xff] %v5567_v27  ;;  %v10658_v46 = vpop.permute.xlu0 %10657  ;;  %v11724_v17 = vld [vmem:[%s14869_s29 + $0x20] sm:$0xff] }
 0x920   : > { %v5560_v5 = vmul.f32 %v5556_v42, %v5548_v20  ;;  %v5561_v55 = vmul.f32 %v5557_v11, %v5549_v44  ;;  %v10653_v11 = vpop.permute.xlu1 %10652  ;;  %v11725_v27 = vld [vmem:[%s14871_s1 + $0x20] sm:$0xff]  ;;  %v11727_v20 = vld [vmem:[%s14871_s1 + $0x30] sm:$0xff] }
 0x922   : > { %v5564_v31 = vadd.f32 %v5560_v5, %v5552_v23  ;;  %v5565_v51 = vadd.f32 %v5561_v55, %v5553_v7  ;;  %v10680_v23 = vsub.f32 %v11725_v27, %v11724_v17  ;;  %v11726_v7 = vld [vmem:[%s14869_s29 + $0x30] sm:$0xff] }
 0x923   : > { %v10682_v44 = vsub.f32 %v11727_v20, %v11726_v7 }
 0x924   : > { %5568 = vst [vmem:[%s14319_s2] sm:$0xff] %v5564_v31  ;;  %5569 = vst [vmem:[%s14319_s2 + $0x8] sm:$0xff] %v5565_v51  ;;  %v11728_v31 = vld [vmem:[%s14869_s29 + $0x28] sm:$0xff] }
 0x925   : > { %v11729_v51 = vld [vmem:[%s14871_s1 + $0x28] sm:$0xff] }
 0x945   : > { %v6719_v58 = vpop.f32.mrb[20].mxu0 }
 0x946   : > { %v6721_v53 = vpop.f32.mrb[21].mxu0  ;;  %v6726_v0 = vsel %vm350_vm6, %v6719_v58, 0.0  ;;  %vm14879_vm6 = vcmp.ge.s32.totalorder %v13246_v32, 1  ;;  %v10681_v58 = vsub.f32 %v11729_v51, %v11728_v31 }
 0x947   : > { %v6727_v54 = vsel %vm14877_vm10, %v6721_v53, 0.0  ;;  %v11730_v53 = vld [vmem:[%s14869_s29 + $0x38] sm:$0xff] }
 0x971   : > { %v7372_v29 = vpop.f32.mrb[22].mxu1 }
 0x972   : > { %v7379_v10 = vsel %vm14876_vm4, %v7372_v29, 0.0  ;;  %v7374_v24 = vpop.f32.mrb[23].mxu1  ;;  %v11731_v29 = vld [vmem:[%s14871_s1 + $0x38] sm:$0xff] }
 0x973   : > { %v7381_v3 = vadd.f32 %v7379_v10, %v6726_v0  ;;  %v7380_v16 = vsel %vm357_vm0, %v7374_v24, 0.0  ;;  %vm14881_vm0 = vcmp.le.s32.totalorder %v13246_v32, 14  ;;  %v10683_v0 = vsub.f32 %v11731_v29, %v11730_v53 }
 0x974   : > { %v7382_v35 = vadd.f32 %v7380_v16, %v6727_v54  ;;  %v10676_v54 = vmul.f32 4.0, %v11724_v17 }
 0x97a   : > { %v8025_v14 = vpop.f32.mrb[22].mxu0 }
 0x97b   : > { %v8032_v19 = vsel %vm14878_vm5, %v8025_v14, 0.0  ;;  %v8027_v22 = vpop.f32.mrb[23].mxu0  ;;  %v10679_v14 = vmul.f32 4.0, %v11730_v53 }
 0x97c   : > { %v8034_v37 = vadd.f32 %v8032_v19, %v7381_v3  ;;  %v8033_v63 = vsel %vm14879_vm6, %v8027_v22, 0.0 }
 0x97d   : > { %v8035_v45 = vadd.f32 %v8033_v63, %v7382_v35  ;;  %v10677_v35 = vmul.f32 4.0, %v11728_v31 }
 0x9a9   : > { %v8668_v36 = vpop.f32.mrb[24].mxu1 }
 0x9aa   : > { %v8677_v30 = vadd.f32 %v8668_v36, %v8034_v37  ;;  %v8670_v57 = vpop.f32.mrb[25].mxu1 }
 0x9ab   : > { %v8678_v60 = vadd.f32 %v8670_v57, %v8035_v45 }
 0x9ae   : > { %v9321_v15 = vpop.f32.mrb[24].mxu0 }
 0x9af   : > { %v9328_v59 = vsel %vm14880_vm13, %v9321_v15, 0.0  ;;  %v9323_v28 = vpop.f32.mrb[25].mxu0 }
 0x9b0   : > { %v9330_v4 = vadd.f32 %v9328_v59, %v8677_v30  ;;  %v9329_v18 = vsel %vm14881_vm0, %v9323_v28, 0.0 }
 0x9b1   : > { %v9331_v48 = vadd.f32 %v9329_v18, %v8678_v60 }
 0x9dd   : > { %v9974_v12 = vpop.f32.mrb[26].mxu1 }
 0x9de   : > { %v9981_v62 = vsel %vm382_vm11, %v9974_v12, 0.0  ;;  %v9976_v52 = vpop.f32.mrb[27].mxu1 }
 0x9df   : > { %v9983_v2 = vadd.f32 %v9981_v62, %v9330_v4  ;;  %v9982_v40 = vsel %vm383_vm14, %v9976_v52, 0.0 }
 0x9e0   : > { %v9984_v26 = vadd.f32 %v9982_v40, %v9331_v48 }
 0x9e2   : > { %v10627_v34 = vpop.f32.mrb[26].mxu0 }
 0x9e3   : > { %v10634_v47 = vsel %vm388_vm15, %v10627_v34, 0.0  ;;  %v10629_v61 = vpop.f32.mrb[27].mxu0 }
 0x9e4   : > { %v10636_v49 = vadd.f32 %v10634_v47, %v9983_v2  ;;  %v10635_v13 = vsel %vm14882_vm7, %v10629_v61, 0.0 }
 0x9e5   : > { %v10637_v9 = vadd.f32 %v10635_v13, %v9984_v26 }
 0x9e6   : > { %v10640_v8 = vadd.f32 %v10639_v50, %v10636_v49 }
 0x9e7   : > { %v10641_v1 = vadd.f32 %v10639_v50, %v10637_v9 }
 0x9e8   : > { %v10642_v21 = vmul.f32 0.5, %v10640_v8 }
 0x9e9   : > { %v10643_v33 = vmul.f32 0.5, %v10641_v1 }
 0x9ea   : > { %11712 = vtanh.f32 %v10642_v21 }
 0x9eb   : > { %11714 = vtanh.f32 %v10643_v33 }
 0x9f4   : > { %v11713_v41 = vpop.eup %11712 }
 0x9f5   : > { %v11715_v39 = vpop.eup %11714  ;;  %v10646_v56 = vadd.f32 1.0, %v11713_v41 }
 0x9f6   : > { %v10647_v42 = vadd.f32 1.0, %v11715_v39 }
 0x9f7   : > { %v10648_v25 = vmul.f32 0.5, %v10646_v56 }
 0x9f8   : > { %v10649_v32 = vmul.f32 0.5, %v10647_v42 }
 0x9f9   : > { %v10663_v43 = vrot.slane %v10648_v25, %v14306_v6 }
 0x9fa   : > { %v10667_v38 = vrot.slane %v10649_v32, %v14306_v6  ;;  %v10678_v6 = vmul.f32 4.0, %v11726_v7 }
 0x9fb   : > { %v10668_v5 = vadd.f32 %v10663_v43, %v10653_v11  ;;  %v10670_v55 = vadd.f32 %v10663_v43, %v10658_v46 }
 0x9fc   : > { %v10669_v10 = vadd.f32 %v10667_v38, %v10653_v11  ;;  %v10671_v24 = vadd.f32 %v10667_v38, %v10658_v46 }
 0x9fd   : > { %v10672_v3 = vadd.f32 1.0, %v10668_v5  ;;  %v10674_v16 = vadd.f32 1.0, %v10670_v55 }
 0x9fe   : > { %v10673_v19 = vadd.f32 1.0, %v10669_v10  ;;  %v10675_v22 = vadd.f32 1.0, %v10671_v24 }
 0x9ff   : > { %v10684_v37 = vmul.f32 %v10680_v23, %v10672_v3  ;;  %v10686_v63 = vmul.f32 %v10682_v44, %v10674_v16 }
 0xa00   : > { %v10685_v45 = vmul.f32 %v10681_v58, %v10673_v19  ;;  %v10687_v36 = vmul.f32 %v10683_v0, %v10675_v22 }
 0xa01   : > { %v10688_v30 = vadd.f32 %v10684_v37, %v10676_v54  ;;  %v10690_v57 = vadd.f32 %v10686_v63, %v10678_v6 }
 0xa02   : > { %v10689_v60 = vadd.f32 %v10685_v45, %v10677_v35  ;;  %v10691_v15 = vadd.f32 %v10687_v36, %v10679_v14 }
 0xa03   : > { %11135 = vst [vmem:[%s14319_s2 + $0x20] sm:$0xff] %v10688_v30  ;;  %11137 = vst [vmem:[%s14319_s2 + $0x30] sm:$0xff] %v10690_v57 }
 0xa04   : > { %11136 = vst [vmem:[%s14319_s2 + $0x28] sm:$0xff] %v10689_v60  ;;  %11138 = vst [vmem:[%s14319_s2 + $0x38] sm:$0xff] %v10691_v15 }
 0xa05   : > { %11807 = shalt.err (!%p11804_p11)
}
 0xa06   : > { %s11808_s21 = scalar_lea.hbm %s14364_s16, 1024  ;;  %s11812_s6 = scalar_lea.hbm %s14886_s19, 2048 }
 0xa07   : > { %p11809_p3 = scmp.ne.s32.totalorder %s14364_s16, %s11808_s21  ;;  %p11813_p2 = scmp.lt.u32.totalorder %s14364_s16, %s14886_s19 }
 0xa08   : > { %p11814_p4 = scmp.lt.u32.totalorder %s11812_s6, %s11808_s21  ;;  %p11816_p13 = scmp.lt.u32.totalorder %s11808_s21, %s14364_s16 }
 0xa09   : > { %p11810_p8 = pnand %p11809_p3, %p14887_p1 }
 0xa0a   : > { %p11815_p6 = por %p11814_p4, %p11813_p2 }
 0xa0b   : > { %p11811_p0 = pneg %p11810_p8 }
 0xa0c   : > { %p11817_p12 = por %p11816_p13, %p11815_p6 }
 0xa0e   : > { %p11818_p10 = pnand %p11817_p12, %p11811_p0 }
 0xa10   : > { %11821 = shalt.err (!%p11818_p10)
}
 0xa11   : > { %s11926_s26 = smov 256  }
 0xa12   : > { %11589 = dma.vmem_to_hbm [thread:$0]  (%p14887_p1), %s14366_s13, 1024, %s14364_s16, %s10698_s10, %s11926_s26, %s11926_s26, %s14648_s8  }
 0xa13 PF: > { %s14888_s11 = sld [smem:[#allocation15_spill]]  ;;  %s14889_s9 = sld [smem:[#allocation23_spill]] }
 0xa14   : > { %s14890_s29 = sld [smem:[#allocation18_spill]] }
 0xa19   : > { %s10727_s1 = sand.u32 1, %s14888_s11   ;;  %p14891_p5 = scmp.ne.s32.totalorder %s14889_s9, 0 }
 0xa1a   : > { %p14892_p7 = scmp.ge.s32.totalorder %s14890_s29, 2  ;;  %s10728_s4 = scalar_lea.sflag [#allocation8], %s10727_s1 }
 0xa1c   : > { %p11599_p9 = pnand %p14892_p7, %p14891_p5 }
 0xa1e   : > { %11847 = dma.done.wait (!%p11599_p9), %s10728_s4, 1024  }
 0xa1f   : > { %11849 = vsyncadd (!%p11599_p9), %s10728_s4, 4294966272  ;;  %s14893_s28 = sld [smem:[#allocation20_spill]]  ;;  %s14894_s25 = sld [smem:[#allocation16_spill]] }
 0xa20   : > { %s14895_s26 = sld [smem:[#allocation17_spill]]  ;;  %s14896_s27 = sld [smem:[#allocation21_spill]] }
 0xa25   : > { %p24_p11 = scmp.ge.s32.totalorder %s14893_s28, 4  }
 0xa27   :  { %26 = sbr.rel (!%p24_p11) target bundleno = 15 (0xf), region = 105 }
 0xa2e   :  { %10733 = vsyncpa [#allocation7], 1 }
 0xa2f   :  { %10735 = vsyncpa [#allocation7 + $0x1], 1 }
 0xa30   :  { %10736 = vsyncpa [#allocation10], 1 }
 0xa31   :  { %10738 = vsyncpa [#allocation10 + $0x1], 1 }
 0xa32   :  { %10739 = vsyncpa [#allocation8], 1 }
 0xa33   :  { %10741 = vsyncpa [#allocation8 + $0x1], 1 }

</bundles_post_ra>
